<compile_context>
chip_gen: v6e
topology: v6e:2x2x1
jax: 0.10.0
libtpu: 0.0.40
codegen_flags: <defaults>
</compile_context>

<pallas_src>
import math
import functools

import jax
import jax.numpy as jnp
from jax.experimental import pallas as pl
from jax.experimental.pallas import tpu as pltpu


# ------------------------------------------------------------------------ small helpers
def _round_up(n, m):
    return ((n + m - 1) // m) * m


def _pick_tile(n, target):
    """Largest tile that divides n and is a multiple of 8 (or n itself), <= target."""
    if n <= target:
        return n
    t = (target // 8) * 8
    while t >= 8:
        if n % t == 0:
            return t
        t -= 8
    return n


def _vmem_limit_bytes(S, Hp, Hh, Op, tq, pq, Dp, weight_bufs):
    """Footprint-based VMEM request, capped by the actual generation's capacity."""
    f32b, bf16b = 4, 2
    weights = weight_bufs * ((3 * Hp * Hh + 2 * Hh * Op) * bf16b + 8 * Op * f32b)
    streams = 2 * (S * Hp * bf16b                       # x (bf16, per batch)
                   + tq * 128 * f32b                    # noise (lane-padded)
                   + 8 * (Hp + 3 * Hh + 2 * Op) * f32b  # per-batch style/demod vectors
                   + tq * Op * f32b)                    # output tile
    scratch = 3 * S * Hh * bf16b                        # Q/K/V head-slab scratch
    live = (pq * Hp * f32b + pq * 3 * Hh * (f32b + bf16b)   # prologue temporaries
            + 2 * tq * S * f32b                             # scores + exp
            + 2 * tq * Op * f32b + 3 * tq * Dp * f32b)      # accumulators + head tiles
    est = weights + streams + scratch + live + (4 << 20)
    try:                                 # generation-aware cap (64 MiB/TC on v7x)
        cap = int(pltpu.get_tpu_info().vmem_capacity_bytes) - (8 << 20)
    except Exception:
        cap = 64 << 20
    return int(min(max(est, 16 << 20), max(cap, 32 << 20)))


# ----------------------------------------------------------------------------- kernel
def _encoder_kernel(num_heads, dp, h_real, hp, s_full, tq, pq,
                    x_ref, noise_ref, s1_ref, mod_ref, wd_ref, ud_ref,
                    qkvw_ref, wwt_ref, uwt_ref, bias_ref,
                    out_ref, qkv_sc):
    """Grid = (batch, q_tile). qkv_sc holds per-head Q/K/V slabs for the current batch."""
    f32, bf16 = jnp.float32, jnp.bfloat16
    qi = pl.program_id(1)

    # -------- per-batch prologue: modulate + InstanceNorm + fused Q/K/V projection -----
    @pl.when(qi == 0)
    def _prologue():
        inv_h = 1.0 / float(h_real)
        s1 = s1_ref[...]            # (1, Hp)    styles1 (zero in padded lanes)
        mod = mod_ref[...]          # (1, 3*Hh)  [q_d*scale | k_d | v_d*styles2], head-padded

        def project_block(i, carry):
            r = pl.multiple_of(i * pq, pq)
            xb = x_ref[pl.ds(r, pq), :].astype(f32)                # (pq, Hp)
            xm = xb * s1
            mu = jnp.sum(xm, axis=-1, keepdims=True) * inv_h
            diff = xm - mu
            if hp != h_real:                                        # keep padded lanes at 0
                lane = jax.lax.broadcasted_iota(jnp.int32, diff.shape, 1)
                diff = jnp.where(lane < h_real, diff, 0.0)
            var = jnp.sum(diff * diff, axis=-1, keepdims=True) * inv_h
            xn = (diff * jax.lax.rsqrt(var + 1e-5)).astype(bf16)
            # one fused modulated Q/K/V projection on the MXU (bf16 in, f32 accumulate)
            qkv = jnp.dot(xn, qkvw_ref[...], preferred_element_type=f32)   # (pq, 3*Hh)
            qkv = (qkv * mod).astype(bf16)
            for j in range(3 * num_heads):       # static, 128-lane-aligned slab stores
                qkv_sc[j, pl.ds(r, pq), :] = qkv[:, j * dp:(j + 1) * dp]
            return carry

        jax.lax.fori_loop(0, s_full // pq, project_block, 0)

    # -------- per-q-tile attention + per-head output/skip projections ------------------
    qrow = pl.multiple_of(qi * tq, tq)

    def head_body(h, carry):
        y_attn, y_skip = carry
        qh = qkv_sc[h, pl.ds(qrow, tq), :]                 # (tq, Dp) bf16 (scale folded in)
        kh = qkv_sc[num_heads + h]                         # (S, Dp)  bf16
        vh = qkv_sc[2 * num_heads + h]                     # (S, Dp)  bf16
        a = jax.lax.dot_general(qh, kh, dimension_numbers=(((1,), (1,)), ((), ())),
                                preferred_element_type=f32)            # (tq, S)
        a = a - jnp.max(a, axis=-1, keepdims=True)
        e = jnp.exp(a)
        p = e * pl.reciprocal(jnp.sum(e, axis=-1, keepdims=True), approx=True)
        ho = jnp.dot(p.astype(bf16), vh, preferred_element_type=f32).astype(bf16)
        y_attn = y_attn + jnp.dot(ho, wwt_ref[h], preferred_element_type=f32)   # (tq, Op)
        v_tile = qkv_sc[2 * num_heads + h, pl.ds(qrow, tq), :]                  # (tq, Dp)
        y_skip = y_skip + jnp.dot(v_tile, uwt_ref[h], preferred_element_type=f32)
        return (y_attn, y_skip)

    zeros = jnp.zeros(out_ref.shape, f32)
    y_attn, y_skip = jax.lax.fori_loop(0, num_heads, head_body, (zeros, zeros),
                                       unroll=num_heads <= 4)

    # -------- epilogue: demod, noise (broadcast over lanes), bias, leaky_relu(0.2) -----
    # conv_clamp is applied in the wrapper when provided (None in this configuration).
    y = y_attn * wd_ref[...] + y_skip * ud_ref[...]
    y = y + noise_ref[...] + bias_ref[...]
    out_ref[...] = jnp.where(y >= 0.0, y, 0.2 * y)


# ----------------------------------------------------------------------------- wrapper
def encoder_layer(x, w, params, *, num_heads, noise_mode='const', conv_clamp=None,
                  gain=1.0, noise_key=None, q_tile=None, prologue_tile=None):
    assert noise_mode in ('random', 'const', 'none')
    B, S, H = x.shape
    O = params['bias'].shape[0]
    w_dim = w.shape[1]
    assert H % num_heads == 0
    depth = H // num_heads

    f32, bf16 = jnp.float32, jnp.bfloat16
    Hp = _round_up(H, 128)                 # lane-dense hidden (contraction) dim
    Op = _round_up(O, 128)                 # lane-dense output dim
    Dp = _round_up(depth, 128)             # per-head 128-lane slab width
    Hh = num_heads * Dp
    tq = q_tile if q_tile is not None else _pick_tile(S, 512)        # attention q-tile
    pq = prologue_tile if prologue_tile is not None else _pick_tile(S, 256)
    assert S % tq == 0 and (tq == S or tq % 8 == 0)
    assert S % pq == 0 and (pq == S or pq % 8 == 0)
    nq = S // tq

    # ---- hoisted per-batch style + demodulation math (plain XLA, once per call) -------
    fc_gain = 1.0 / math.sqrt(w_dim)       # FullyConnectedLayer.weight_gain (lr_mult=1)
    styles = (w.astype(f32) @ params['affine_w'].astype(f32).T) * fc_gain \
             + params['affine_b'].astype(f32)
    s1, s2 = styles[:, :H], styles[:, H:]
    qW = params['q_weight'].astype(f32)
    kW = params['k_weight'].astype(f32)
    vW = params['v_weight'].astype(f32)
    wW = params['w_weight'].astype(f32)
    uW = params['u_weight'].astype(f32)

    def dcoef(W, s):                       # rsqrt(sum_i (W[o,i]*s[b,i])^2 + 1e-8)
        return jax.lax.rsqrt((s * s) @ (W * W).T + 1e-8)

    q_d = dcoef(qW, s1) * (depth ** -0.5)  # attention scale folded into Q
    k_d = dcoef(kW, s1)
    v_m = dcoef(vW, s1) * s2               # V demod * styles2 (attention V and skip)
    w_d = dcoef(wW, s2)
    u_d = dcoef(uW, s2)

    # ---- head-slab layout: each head's `depth` channels land at a 128-aligned offset --
    def head_cols(m):                      # (..., H) -> (..., Hh), zero-padded per head
        if Dp == depth:
            return m
        pad = [(0, 0)] * (m.ndim - 1) + [(0, Dp - depth)]
        return jnp.concatenate(
            [jnp.pad(m[..., h * depth:(h + 1) * depth], pad) for h in range(num_heads)],
            axis=-1)

    def head_rows_3d(m):                   # (H, N) -> (num_heads, Dp, N), zero-padded
        return jnp.stack(
            [jnp.pad(m[h * depth:(h + 1) * depth, :], ((0, Dp - depth), (0, 0)))
             for h in range(num_heads)], axis=0)

    def qkv_weight_slab(W):                # (H, H) -> (Hp, Hh)
        return jnp.pad(head_cols(W.T), ((0, Hp - H), (0, 0)))

    qkvw = jnp.concatenate(
        [qkv_weight_slab(qW), qkv_weight_slab(kW), qkv_weight_slab(vW)],
        axis=1).astype(bf16)                                            # (Hp, 3*Hh) bf16
    wwt = jnp.pad(head_rows_3d(wW.T), ((0, 0), (0, 0), (0, Op - O))).astype(bf16)
    uwt = jnp.pad(head_rows_3d(uW.T), ((0, 0), (0, 0), (0, Op - O))).astype(bf16)
    bias2d = jnp.pad(params['bias'].astype(f32).reshape(1, O), ((0, 0), (0, Op - O)))

    s1p = jnp.pad(s1, ((0, 0), (0, Hp - H))).reshape(B, 1, Hp)
    qkv_mod = jnp.concatenate([head_cols(q_d), head_cols(k_d), head_cols(v_m)],
                              axis=-1).reshape(B, 1, 3 * Hh)
    wdp = jnp.pad(w_d, ((0, 0), (0, Op - O))).reshape(B, 1, Op)
    udp = jnp.pad(u_d, ((0, 0), (0, Op - O))).reshape(B, 1, Op)

    # ---- noise: per-position scalar stream (B, S, 1), broadcast over lanes in-kernel --
    if noise_mode == 'random':
        if noise_key is None:
            noise_key = jax.random.PRNGKey(1)
        noise = jax.random.normal(noise_key, (B, S, 1), f32) * params['noise_strength']
    elif noise_mode == 'const':
        noise = jnp.broadcast_to(
            (params['noise_const'] * params['noise_strength']).reshape(1, S, 1), (B, S, 1))
    else:
        noise = jnp.zeros((B, S, 1), f32)
    noise = noise.astype(f32)

    xp = jnp.pad(x.astype(bf16), ((0, 0), (0, 0), (0, Hp - H)))          # bf16 x stream

    kernel = functools.partial(_encoder_kernel, num_heads, Dp, H, Hp, S, tq, pq)

    def build_and_run(single_buffer_weights):
        def const_spec(shape):
            zeros_idx = (0,) * len(shape)
            idx = lambda b, qi: zeros_idx
            if single_buffer_weights:
                return pl.BlockSpec(shape, idx, pipeline_mode=pl.Buffered(1))
            return pl.BlockSpec(shape, idx)

        grid_spec = pltpu.PrefetchScalarGridSpec(
            num_scalar_prefetch=0,
            grid=(B, nq),
            in_specs=[
                pl.BlockSpec((None, S, Hp), lambda b, qi: (b, 0, 0)),       # x  (bf16)
                pl.BlockSpec((None, tq, 1), lambda b, qi: (b, qi, 0)),      # noise
                pl.BlockSpec((None, 1, Hp), lambda b, qi: (b, 0, 0)),       # styles1
                pl.BlockSpec((None, 1, 3 * Hh), lambda b, qi: (b, 0, 0)),   # qkv demod/mod
                pl.BlockSpec((None, 1, Op), lambda b, qi: (b, 0, 0)),       # w demod
                pl.BlockSpec((None, 1, Op), lambda b, qi: (b, 0, 0)),       # u demod
                const_spec((Hp, 3 * Hh)),                                   # fused QKV weight
                const_spec((num_heads, Dp, Op)),                            # W head slabs
                const_spec((num_heads, Dp, Op)),                            # U head slabs
                const_spec((1, Op)),                                        # output bias
            ],
            out_specs=pl.BlockSpec((None, tq, Op), lambda b, qi: (b, qi, 0)),
            scratch_shapes=[pltpu.VMEM((3 * num_heads, S, Dp), bf16)],      # Q|K|V slabs
        )
        return pl.pallas_call(
            kernel,
            out_shape=jax.ShapeDtypeStruct((B, S, Op), jnp.float32),
            grid_spec=grid_spec,
            compiler_params=pltpu.CompilerParams(
                dimension_semantics=("parallel", "arbitrary"),
                vmem_limit_bytes=_vmem_limit_bytes(
                    S, Hp, Hh, Op, tq, pq, Dp,
                    weight_bufs=1 if single_buffer_weights else 2)),
        )(xp, noise, s1p, qkv_mod, wdp, udp, qkvw, wwt, uwt, bias2d)

    try:
        out = build_and_run(True)       # single-buffer constant weights (v7x headroom)
    except Exception:
        out = build_and_run(False)      # fallback if pipeline_mode/Buffered unsupported

    if Op != O:
        out = out[:, :, :O]
    if conv_clamp is not None:
        act_clamp = conv_clamp * gain
        out = jnp.clip(out, -act_clamp, act_clamp)
    return out


# ----------------------------------------------------------------------------- params
def init_params(key, h_dim, w_dim, out_dim, seq_length):
    ks = jax.random.split(key, 7)
    lim = 1.0 / math.sqrt(h_dim)
    return {
        # FullyConnectedLayer(w_dim, 2*h_dim, bias_init=1): weight ~ N(0,1), bias = 1
        'affine_w': jax.random.normal(ks[0], (2 * h_dim, w_dim), jnp.float32),
        'affine_b': jnp.ones((2 * h_dim,), jnp.float32),
        # attention weights ~ U(-1/sqrt(h_dim), 1/sqrt(h_dim))
        'q_weight': jax.random.uniform(ks[1], (h_dim, h_dim), jnp.float32, -lim, lim),
        'k_weight': jax.random.uniform(ks[2], (h_dim, h_dim), jnp.float32, -lim, lim),
        'v_weight': jax.random.uniform(ks[3], (h_dim, h_dim), jnp.float32, -lim, lim),
        'w_weight': jax.random.uniform(ks[4], (out_dim, h_dim), jnp.float32, -lim, lim),
        'u_weight': jax.random.uniform(ks[5], (out_dim, h_dim), jnp.float32, -lim, lim),
        'noise_const': jax.random.normal(ks[6], (seq_length, 1), jnp.float32),
        'noise_strength': jnp.zeros((), jnp.float32),
        'bias': jnp.zeros((out_dim,), jnp.float32),
    }


# ----------------------------------------------------------------------------- pure-JAX reference
def reference_forward(x, w, p, *, num_heads, noise_mode='const', conv_clamp=None, gain=1.0):
    B, S, H = x.shape
    depth = H // num_heads
    w_dim = w.shape[1]
    styles = (w @ p['affine_w'].T) * (1.0 / math.sqrt(w_dim)) + p['affine_b']
    s1, s2 = styles[:, :H], styles[:, H:]
    xm = x * s1[:, None, :]
    mu = xm.mean(-1, keepdims=True)
    var = ((xm - mu) ** 2).mean(-1, keepdims=True)
    xn = (xm - mu) / jnp.sqrt(var + 1e-5)

    def dcoef(wt, s):
        return 1.0 / jnp.sqrt(jnp.sum((wt[None] * s[:, None, :]) ** 2, axis=2) + 1e-8)

    q_d, k_d, v_d = dcoef(p['q_weight'], s1), dcoef(p['k_weight'], s1), dcoef(p['v_weight'], s1)
    w_d, u_d = dcoef(p['w_weight'], s2), dcoef(p['u_weight'], s2)
    qv = (xn @ p['q_weight'].T) * q_d[:, None, :]
    kv = (xn @ p['k_weight'].T) * k_d[:, None, :]
    vv = (xn @ p['v_weight'].T) * v_d[:, None, :] * s2[:, None, :]
    skip = vv
    qh = qv.reshape(B, S, num_heads, depth).transpose(0, 2, 1, 3)
    kh = kv.reshape(B, S, num_heads, depth).transpose(0, 2, 1, 3)
    vh = vv.reshape(B, S, num_heads, depth).transpose(0, 2, 1, 3)
    attn = jnp.einsum('bhqd,bhkd->bhqk', qh, kh) * (depth ** -0.5)
    attn = jax.nn.softmax(attn, axis=-1)
    ao = jnp.einsum('bhqk,bhkd->bhqd', attn, vh).transpose(0, 2, 1, 3).reshape(B, S, H)
    y = (ao @ p['w_weight'].T) * w_d[:, None, :] + (skip @ p['u_weight'].T) * u_d[:, None, :]
    if noise_mode == 'const':
        y = y + (p['noise_const'] * p['noise_strength'])[None]
    y = y + p['bias']
    y = jnp.where(y >= 0, y, 0.2 * y)
    if conv_clamp is not None:
        y = jnp.clip(y, -conv_clamp * gain, conv_clamp * gain)
    return y


# ----------------------------------------------------------------------------- main
if __name__ == "__main__":
    B = 2

    # --- test 1: Encoderlayer(h_dim=32, w_dim=16, out_dim=32, seq=8, depth=8, minimum_head=1)
    h_dim, w_dim, out_dim, seq_length, depth_ctor, minimum_head = 32, 16, 32, 8, 8, 1
    num_heads = max(minimum_head, h_dim // depth_ctor)   # = 4
    key = jax.random.PRNGKey(0)
    kp, kx, kw, kb = jax.random.split(key, 4)
    params = init_params(kp, h_dim, w_dim, out_dim, seq_length)
    params['noise_strength'] = jnp.float32(0.1)
    params['bias'] = 0.1 * jax.random.normal(kb, (out_dim,), jnp.float32)
    x = jax.random.normal(kx, (B, seq_length, h_dim), jnp.float32)
    w = jax.random.normal(kw, (B, w_dim), jnp.float32)

    out = encoder_layer(x, w, params, num_heads=num_heads, noise_mode='const')
    out = jax.block_until_ready(out)
    ref = reference_forward(x, w, params, num_heads=num_heads, noise_mode='const')
    assert out.shape == (B, seq_length, out_dim)
    err1 = float(jnp.max(jnp.abs(out - ref)))
    # bf16 streams/MXU + approx reciprocal loosen tolerance vs. the all-f32 reference
    assert jnp.allclose(out, ref, atol=5e-2, rtol=5e-2), err1

    # --- test 2: exercises q-tiling (2 tiles), prologue row blocks (2), out_dim != 128k
    h_dim2, w_dim2, out_dim2, seq_length2, num_heads2 = 64, 8, 48, 16, 4
    kp2, kx2, kw2, kb2 = jax.random.split(jax.random.PRNGKey(1), 4)
    params2 = init_params(kp2, h_dim2, w_dim2, out_dim2, seq_length2)
    params2['noise_strength'] = jnp.float32(0.05)
    params2['bias'] = 0.1 * jax.random.normal(kb2, (out_dim2,), jnp.float32)
    x2 = jax.random.normal(kx2, (B, seq_length2, h_dim2), jnp.float32)
    w2 = jax.random.normal(kw2, (B, w_dim2), jnp.float32)

    out2 = encoder_layer(x2, w2, params2, num_heads=num_heads2, noise_mode='const',
                         q_tile=8, prologue_tile=8)
    out2 = jax.block_until_ready(out2)
    ref2 = reference_forward(x2, w2, params2, num_heads=num_heads2, noise_mode='const')
    assert out2.shape == (B, seq_length2, out_dim2)
    err2 = float(jnp.max(jnp.abs(out2 - ref2)))
    assert jnp.allclose(out2, ref2, atol=5e-2, rtol=5e-2), err2

    print("KERNEL_OK")
</pallas_src>

<mosaic_0001>
module attributes {stable_mosaic.version = 11 : i64} {
  func.func @_encoder_kernel(%arg0: i32, %arg1: i32, %arg2: memref<1x8x128xbf16, #tpu.memory_space<vmem>>, %arg3: memref<1x8x1xf32, #tpu.memory_space<vmem>>, %arg4: memref<1x1x128xf32, #tpu.memory_space<vmem>>, %arg5: memref<1x1x1536xf32, #tpu.memory_space<vmem>>, %arg6: memref<1x1x128xf32, #tpu.memory_space<vmem>>, %arg7: memref<1x1x128xf32, #tpu.memory_space<vmem>>, %arg8: memref<128x1536xbf16, #tpu.memory_space<vmem>>, %arg9: memref<4x128x128xbf16, #tpu.memory_space<vmem>>, %arg10: memref<4x128x128xbf16, #tpu.memory_space<vmem>>, %arg11: memref<1x128xf32, #tpu.memory_space<vmem>>, %arg12: memref<1x8x128xf32, #tpu.memory_space<vmem>>, %arg13: memref<12x8x128xbf16, #tpu.memory_space<vmem>>) attributes {dimension_semantics = [#tpu.dimension_semantics<parallel>, #tpu.dimension_semantics<arbitrary>], iteration_bounds = array<i64: 2, 1>, scalar_prefetch = 0 : i64, scratch_operands = 1 : i64, tpu.core_type = #tpu.core_type<tc>, window_params = [{transform_indices = @transform_0, window_bounds = array<i64: 1, 8, 128>}, {transform_indices = @transform_1, window_bounds = array<i64: 1, 8, 1>}, {transform_indices = @transform_2, window_bounds = array<i64: 1, 1, 128>}, {transform_indices = @transform_3, window_bounds = array<i64: 1, 1, 1536>}, {transform_indices = @transform_4, window_bounds = array<i64: 1, 1, 128>}, {transform_indices = @transform_5, window_bounds = array<i64: 1, 1, 128>}, {pipeline_mode = #tpu.pipeline_mode<synchronous>, transform_indices = @transform_6, window_bounds = array<i64: 128, 1536>}, {pipeline_mode = #tpu.pipeline_mode<synchronous>, transform_indices = @transform_7, window_bounds = array<i64: 4, 128, 128>}, {pipeline_mode = #tpu.pipeline_mode<synchronous>, transform_indices = @transform_8, window_bounds = array<i64: 4, 128, 128>}, {pipeline_mode = #tpu.pipeline_mode<synchronous>, transform_indices = @transform_9, window_bounds = array<i64: 1, 128>}, {transform_indices = @transform_10, window_bounds = array<i64: 1, 8, 128>}]} {
    %c0_i32 = arith.constant 0 : i32
    %0 = arith.cmpi eq, %arg1, %c0_i32 : i32
    %1 = arith.extui %0 : i1 to i32
    %c0_i32_0 = arith.constant 0 : i32
    %2 = arith.cmpi ne, %1, %c0_i32_0 : i32
    scf.if %2 {
      %c0_93 = arith.constant 0 : index
      %c0_94 = arith.constant 0 : index
      %c0_95 = arith.constant 0 : index
      %194 = vector.load %arg4[%c0_93, %c0_94, %c0_95] : memref<1x1x128xf32, #tpu.memory_space<vmem>>, vector<1x1x128xf32>
      %195 = vector.shape_cast %194 : vector<1x1x128xf32> to vector<1x128xf32>
      %c0_96 = arith.constant 0 : index
      %c0_97 = arith.constant 0 : index
      %c0_98 = arith.constant 0 : index
      %196 = vector.load %arg5[%c0_96, %c0_97, %c0_98] : memref<1x1x1536xf32, #tpu.memory_space<vmem>>, vector<1x1x1536xf32>
      %197 = vector.shape_cast %196 : vector<1x1x1536xf32> to vector<1x1536xf32>
      %c0_i32_99 = arith.constant 0 : i32
      %c8_i32_100 = arith.constant 8 : i32
      %198 = arith.muli %c0_i32_99, %c8_i32_100 : i32
      %199 = tpu.assume_multiple %198, 8 : i32
      %c0_101 = arith.constant 0 : index
      %200 = arith.index_cast %199 : i32 to index
      %c0_102 = arith.constant 0 : index
      %201 = vector.load %arg2[%c0_101, %200, %c0_102] : memref<1x8x128xbf16, #tpu.memory_space<vmem>>, vector<1x8x128xbf16>
      %202 = vector.shape_cast %201 : vector<1x8x128xbf16> to vector<8x128xbf16>
      %203 = arith.extf %202 : vector<8x128xbf16> to vector<8x128xf32>
      %204 = vector.broadcast %195 : vector<1x128xf32> to vector<8x128xf32>
      %205 = arith.mulf %203, %204 : vector<8x128xf32>
      %cst_103 = arith.constant dense<0.000000e+00> : vector<8xf32>
      %206 = vector.multi_reduction <add>, %205, %cst_103 [1] : vector<8x128xf32> to vector<8xf32>
      %207 = vector.shape_cast %206 : vector<8xf32> to vector<8x1xf32>
      %cst_104 = arith.constant 3.125000e-02 : f32
      %208 = vector.broadcast %cst_104 : f32 to vector<8x1xf32>
      %209 = arith.mulf %207, %208 : vector<8x1xf32>
      %210 = vector.broadcast %209 : vector<8x1xf32> to vector<8x128xf32>
      %211 = arith.subf %205, %210 : vector<8x128xf32>
      %212 = tpu.iota {dimensions = array<i32: 1>} : vector<8x128xi32>
      %c32_i32 = arith.constant 32 : i32
      %213 = vector.broadcast %c32_i32 : i32 to vector<8x128xi32>
      %214 = arith.cmpi slt, %212, %213 : vector<8x128xi32>
      %cst_105 = arith.constant 0.000000e+00 : f32
      %215 = vector.broadcast %cst_105 : f32 to vector<8x128xf32>
      %216 = arith.select %214, %211, %215 : vector<8x128xi1>, vector<8x128xf32>
      %217 = arith.mulf %216, %216 : vector<8x128xf32>
      %cst_106 = arith.constant dense<0.000000e+00> : vector<8xf32>
      %218 = vector.multi_reduction <add>, %217, %cst_106 [1] : vector<8x128xf32> to vector<8xf32>
      %219 = vector.shape_cast %218 : vector<8xf32> to vector<8x1xf32>
      %cst_107 = arith.constant 3.125000e-02 : f32
      %220 = vector.broadcast %cst_107 : f32 to vector<8x1xf32>
      %221 = arith.mulf %219, %220 : vector<8x1xf32>
      %cst_108 = arith.constant 9.99999974E-6 : f32
      %222 = vector.broadcast %cst_108 : f32 to vector<8x1xf32>
      %223 = arith.addf %221, %222 : vector<8x1xf32>
      %224 = math.rsqrt %223 : vector<8x1xf32>
      %225 = vector.broadcast %224 : vector<8x1xf32> to vector<8x128xf32>
      %226 = arith.mulf %216, %225 : vector<8x128xf32>
      %227 = arith.truncf %226 : vector<8x128xf32> to vector<8x128xbf16>
      %c0_109 = arith.constant 0 : index
      %c0_110 = arith.constant 0 : index
      %228 = vector.load %arg8[%c0_109, %c0_110] : memref<128x1536xbf16, #tpu.memory_space<vmem>>, vector<128x1536xbf16>
      %cst_111 = arith.constant dense<0.000000e+00> : vector<8x1536xf32>
      %229 = tpu.matmul %227, %228, %cst_111 {dimension_numbers = #tpu.dot_dimension_numbers<[1], [0], [0], [1], [0, 0, 1, 1], [], []>} : vector<8x128xbf16>, vector<128x1536xbf16>, vector<8x1536xf32> -> vector<8x1536xf32>
      %230 = vector.broadcast %197 : vector<1x1536xf32> to vector<8x1536xf32>
      %231 = arith.mulf %229, %230 : vector<8x1536xf32>
      %232 = arith.truncf %231 : vector<8x1536xf32> to vector<8x1536xbf16>
      %233 = vector.extract_strided_slice %232 {offsets = [0, 0], sizes = [8, 128], strides = [1, 1]} : vector<8x1536xbf16> to vector<8x128xbf16>
      %c0_112 = arith.constant 0 : index
      %234 = arith.index_cast %199 : i32 to index
      %c0_113 = arith.constant 0 : index
      %235 = vector.load %arg13[%c0_112, %234, %c0_113] : memref<12x8x128xbf16, #tpu.memory_space<vmem>>, vector<1x8x128xbf16>
      %236 = vector.shape_cast %235 : vector<1x8x128xbf16> to vector<8x128xbf16>
      %237 = vector.shape_cast %233 : vector<8x128xbf16> to vector<1x8x128xbf16>
      tpu.vector_store %arg13[%c0_112, %234, %c0_113], %237 {strides = array<i32>} : memref<12x8x128xbf16, #tpu.memory_space<vmem>>, vector<1x8x128xbf16>,
      %238 = vector.extract_strided_slice %232 {offsets = [0, 128], sizes = [8, 128], strides = [1, 1]} : vector<8x1536xbf16> to vector<8x128xbf16>
      %c1 = arith.constant 1 : index
      %239 = arith.index_cast %199 : i32 to index
      %c0_114 = arith.constant 0 : index
      %240 = vector.load %arg13[%c1, %239, %c0_114] : memref<12x8x128xbf16, #tpu.memory_space<vmem>>, vector<1x8x128xbf16>
      %241 = vector.shape_cast %240 : vector<1x8x128xbf16> to vector<8x128xbf16>
      %242 = vector.shape_cast %238 : vector<8x128xbf16> to vector<1x8x128xbf16>
      tpu.vector_store %arg13[%c1, %239, %c0_114], %242 {strides = array<i32>} : memref<12x8x128xbf16, #tpu.memory_space<vmem>>, vector<1x8x128xbf16>,
      %243 = vector.extract_strided_slice %232 {offsets = [0, 256], sizes = [8, 128], strides = [1, 1]} : vector<8x1536xbf16> to vector<8x128xbf16>
      %c2 = arith.constant 2 : index
      %244 = arith.index_cast %199 : i32 to index
      %c0_115 = arith.constant 0 : index
      %245 = vector.load %arg13[%c2, %244, %c0_115] : memref<12x8x128xbf16, #tpu.memory_space<vmem>>, vector<1x8x128xbf16>
      %246 = vector.shape_cast %245 : vector<1x8x128xbf16> to vector<8x128xbf16>
      %247 = vector.shape_cast %243 : vector<8x128xbf16> to vector<1x8x128xbf16>
      tpu.vector_store %arg13[%c2, %244, %c0_115], %247 {strides = array<i32>} : memref<12x8x128xbf16, #tpu.memory_space<vmem>>, vector<1x8x128xbf16>,
      %248 = vector.extract_strided_slice %232 {offsets = [0, 384], sizes = [8, 128], strides = [1, 1]} : vector<8x1536xbf16> to vector<8x128xbf16>
      %c3 = arith.constant 3 : index
      %249 = arith.index_cast %199 : i32 to index
      %c0_116 = arith.constant 0 : index
      %250 = vector.load %arg13[%c3, %249, %c0_116] : memref<12x8x128xbf16, #tpu.memory_space<vmem>>, vector<1x8x128xbf16>
      %251 = vector.shape_cast %250 : vector<1x8x128xbf16> to vector<8x128xbf16>
      %252 = vector.shape_cast %248 : vector<8x128xbf16> to vector<1x8x128xbf16>
      tpu.vector_store %arg13[%c3, %249, %c0_116], %252 {strides = array<i32>} : memref<12x8x128xbf16, #tpu.memory_space<vmem>>, vector<1x8x128xbf16>,
      %253 = vector.extract_strided_slice %232 {offsets = [0, 512], sizes = [8, 128], strides = [1, 1]} : vector<8x1536xbf16> to vector<8x128xbf16>
      %c4 = arith.constant 4 : index
      %254 = arith.index_cast %199 : i32 to index
      %c0_117 = arith.constant 0 : index
      %255 = vector.load %arg13[%c4, %254, %c0_117] : memref<12x8x128xbf16, #tpu.memory_space<vmem>>, vector<1x8x128xbf16>
      %256 = vector.shape_cast %255 : vector<1x8x128xbf16> to vector<8x128xbf16>
      %257 = vector.shape_cast %253 : vector<8x128xbf16> to vector<1x8x128xbf16>
      tpu.vector_store %arg13[%c4, %254, %c0_117], %257 {strides = array<i32>} : memref<12x8x128xbf16, #tpu.memory_space<vmem>>, vector<1x8x128xbf16>,
      %258 = vector.extract_strided_slice %232 {offsets = [0, 640], sizes = [8, 128], strides = [1, 1]} : vector<8x1536xbf16> to vector<8x128xbf16>
      %c5 = arith.constant 5 : index
      %259 = arith.index_cast %199 : i32 to index
      %c0_118 = arith.constant 0 : index
      %260 = vector.load %arg13[%c5, %259, %c0_118] : memref<12x8x128xbf16, #tpu.memory_space<vmem>>, vector<1x8x128xbf16>
      %261 = vector.shape_cast %260 : vector<1x8x128xbf16> to vector<8x128xbf16>
      %262 = vector.shape_cast %258 : vector<8x128xbf16> to vector<1x8x128xbf16>
      tpu.vector_store %arg13[%c5, %259, %c0_118], %262 {strides = array<i32>} : memref<12x8x128xbf16, #tpu.memory_space<vmem>>, vector<1x8x128xbf16>,
      %263 = vector.extract_strided_slice %232 {offsets = [0, 768], sizes = [8, 128], strides = [1, 1]} : vector<8x1536xbf16> to vector<8x128xbf16>
      %c6 = arith.constant 6 : index
      %264 = arith.index_cast %199 : i32 to index
      %c0_119 = arith.constant 0 : index
      %265 = vector.load %arg13[%c6, %264, %c0_119] : memref<12x8x128xbf16, #tpu.memory_space<vmem>>, vector<1x8x128xbf16>
      %266 = vector.shape_cast %265 : vector<1x8x128xbf16> to vector<8x128xbf16>
      %267 = vector.shape_cast %263 : vector<8x128xbf16> to vector<1x8x128xbf16>
      tpu.vector_store %arg13[%c6, %264, %c0_119], %267 {strides = array<i32>} : memref<12x8x128xbf16, #tpu.memory_space<vmem>>, vector<1x8x128xbf16>,
      %268 = vector.extract_strided_slice %232 {offsets = [0, 896], sizes = [8, 128], strides = [1, 1]} : vector<8x1536xbf16> to vector<8x128xbf16>
      %c7 = arith.constant 7 : index
      %269 = arith.index_cast %199 : i32 to index
      %c0_120 = arith.constant 0 : index
      %270 = vector.load %arg13[%c7, %269, %c0_120] : memref<12x8x128xbf16, #tpu.memory_space<vmem>>, vector<1x8x128xbf16>
      %271 = vector.shape_cast %270 : vector<1x8x128xbf16> to vector<8x128xbf16>
      %272 = vector.shape_cast %268 : vector<8x128xbf16> to vector<1x8x128xbf16>
      tpu.vector_store %arg13[%c7, %269, %c0_120], %272 {strides = array<i32>} : memref<12x8x128xbf16, #tpu.memory_space<vmem>>, vector<1x8x128xbf16>,
      %273 = vector.extract_strided_slice %232 {offsets = [0, 1024], sizes = [8, 128], strides = [1, 1]} : vector<8x1536xbf16> to vector<8x128xbf16>
      %c8 = arith.constant 8 : index
      %274 = arith.index_cast %199 : i32 to index
      %c0_121 = arith.constant 0 : index
      %275 = vector.load %arg13[%c8, %274, %c0_121] : memref<12x8x128xbf16, #tpu.memory_space<vmem>>, vector<1x8x128xbf16>
      %276 = vector.shape_cast %275 : vector<1x8x128xbf16> to vector<8x128xbf16>
      %277 = vector.shape_cast %273 : vector<8x128xbf16> to vector<1x8x128xbf16>
      tpu.vector_store %arg13[%c8, %274, %c0_121], %277 {strides = array<i32>} : memref<12x8x128xbf16, #tpu.memory_space<vmem>>, vector<1x8x128xbf16>,
      %278 = vector.extract_strided_slice %232 {offsets = [0, 1152], sizes = [8, 128], strides = [1, 1]} : vector<8x1536xbf16> to vector<8x128xbf16>
      %c9 = arith.constant 9 : index
      %279 = arith.index_cast %199 : i32 to index
      %c0_122 = arith.constant 0 : index
      %280 = vector.load %arg13[%c9, %279, %c0_122] : memref<12x8x128xbf16, #tpu.memory_space<vmem>>, vector<1x8x128xbf16>
      %281 = vector.shape_cast %280 : vector<1x8x128xbf16> to vector<8x128xbf16>
      %282 = vector.shape_cast %278 : vector<8x128xbf16> to vector<1x8x128xbf16>
      tpu.vector_store %arg13[%c9, %279, %c0_122], %282 {strides = array<i32>} : memref<12x8x128xbf16, #tpu.memory_space<vmem>>, vector<1x8x128xbf16>,
      %283 = vector.extract_strided_slice %232 {offsets = [0, 1280], sizes = [8, 128], strides = [1, 1]} : vector<8x1536xbf16> to vector<8x128xbf16>
      %c10 = arith.constant 10 : index
      %284 = arith.index_cast %199 : i32 to index
      %c0_123 = arith.constant 0 : index
      %285 = vector.load %arg13[%c10, %284, %c0_123] : memref<12x8x128xbf16, #tpu.memory_space<vmem>>, vector<1x8x128xbf16>
      %286 = vector.shape_cast %285 : vector<1x8x128xbf16> to vector<8x128xbf16>
      %287 = vector.shape_cast %283 : vector<8x128xbf16> to vector<1x8x128xbf16>
      tpu.vector_store %arg13[%c10, %284, %c0_123], %287 {strides = array<i32>} : memref<12x8x128xbf16, #tpu.memory_space<vmem>>, vector<1x8x128xbf16>,
      %288 = vector.extract_strided_slice %232 {offsets = [0, 1408], sizes = [8, 128], strides = [1, 1]} : vector<8x1536xbf16> to vector<8x128xbf16>
      %c11 = arith.constant 11 : index
      %289 = arith.index_cast %199 : i32 to index
      %c0_124 = arith.constant 0 : index
      %290 = vector.load %arg13[%c11, %289, %c0_124] : memref<12x8x128xbf16, #tpu.memory_space<vmem>>, vector<1x8x128xbf16>
      %291 = vector.shape_cast %290 : vector<1x8x128xbf16> to vector<8x128xbf16>
      %292 = vector.shape_cast %288 : vector<8x128xbf16> to vector<1x8x128xbf16>
      tpu.vector_store %arg13[%c11, %289, %c0_124], %292 {strides = array<i32>} : memref<12x8x128xbf16, #tpu.memory_space<vmem>>, vector<1x8x128xbf16>,
      %c1_i32_125 = arith.constant 1 : i32
    } else {
    }
    %c8_i32 = arith.constant 8 : i32
    %3 = arith.muli %arg1, %c8_i32 : i32
    %4 = tpu.assume_multiple %3, 8 : i32
    %cst = arith.constant 0.000000e+00 : f32
    %5 = vector.broadcast %cst : f32 to vector<8x128xf32>
    %c0_i32_1 = arith.constant 0 : i32
    %6 = arith.index_cast %c0_i32_1 : i32 to index
    %7 = arith.index_cast %4 : i32 to index
    %c0 = arith.constant 0 : index
    %8 = vector.load %arg13[%6, %7, %c0] : memref<12x8x128xbf16, #tpu.memory_space<vmem>>, vector<1x8x128xbf16>
    %9 = vector.shape_cast %8 : vector<1x8x128xbf16> to vector<8x128xbf16>
    %c4_i32 = arith.constant 4 : i32
    %10 = arith.addi %c4_i32, %c0_i32_1 : i32
    %11 = arith.index_cast %10 : i32 to index
    %c0_2 = arith.constant 0 : index
    %c0_3 = arith.constant 0 : index
    %12 = vector.load %arg13[%11, %c0_2, %c0_3] : memref<12x8x128xbf16, #tpu.memory_space<vmem>>, vector<1x8x128xbf16>
    %13 = vector.shape_cast %12 : vector<1x8x128xbf16> to vector<8x128xbf16>
    %c8_i32_4 = arith.constant 8 : i32
    %14 = arith.addi %c8_i32_4, %c0_i32_1 : i32
    %15 = arith.index_cast %14 : i32 to index
    %c0_5 = arith.constant 0 : index
    %c0_6 = arith.constant 0 : index
    %16 = vector.load %arg13[%15, %c0_5, %c0_6] : memref<12x8x128xbf16, #tpu.memory_space<vmem>>, vector<1x8x128xbf16>
    %17 = vector.shape_cast %16 : vector<1x8x128xbf16> to vector<8x128xbf16>
    %cst_7 = arith.constant dense<0.000000e+00> : vector<8x8xf32>
    %18 = tpu.matmul %9, %13, %cst_7 {dimension_numbers = #tpu.dot_dimension_numbers<[1], [1], [0], [0], [0, 0, 1, 0], [], []>} : vector<8x128xbf16>, vector<8x128xbf16>, vector<8x8xf32> -> vector<8x8xf32>
    %cst_8 = arith.constant dense<0xFF800000> : vector<8xf32>
    %19 = vector.multi_reduction <maximumf>, %18, %cst_8 [1] : vector<8x8xf32> to vector<8xf32>
    %20 = vector.shape_cast %19 : vector<8xf32> to vector<8x1xf32>
    %21 = vector.broadcast %20 : vector<8x1xf32> to vector<8x8xf32>
    %22 = arith.subf %18, %21 : vector<8x8xf32>
    %23 = math.exp %22 : vector<8x8xf32>
    %cst_9 = arith.constant dense<0.000000e+00> : vector<8xf32>
    %24 = vector.multi_reduction <add>, %23, %cst_9 [1] : vector<8x8xf32> to vector<8xf32>
    %25 = vector.shape_cast %24 : vector<8xf32> to vector<8x1xf32>
    %26 = tpu.reciprocal %25 {approx = true} : vector<8x1xf32> -> vector<8x1xf32>
    %27 = vector.broadcast %26 : vector<8x1xf32> to vector<8x8xf32>
    %28 = arith.mulf %23, %27 : vector<8x8xf32>
    %29 = arith.truncf %28 : vector<8x8xf32> to vector<8x8xbf16>
    %cst_10 = arith.constant dense<0.000000e+00> : vector<8x128xf32>
    %30 = tpu.matmul %29, %17, %cst_10 {dimension_numbers = #tpu.dot_dimension_numbers<[1], [0], [0], [1], [0, 0, 1, 1], [], []>} : vector<8x8xbf16>, vector<8x128xbf16>, vector<8x128xf32> -> vector<8x128xf32>
    %31 = arith.truncf %30 : vector<8x128xf32> to vector<8x128xbf16>
    %32 = arith.index_cast %c0_i32_1 : i32 to index
    %c0_11 = arith.constant 0 : index
    %c0_12 = arith.constant 0 : index
    %33 = vector.load %arg9[%32, %c0_11, %c0_12] : memref<4x128x128xbf16, #tpu.memory_space<vmem>>, vector<1x128x128xbf16>
    %34 = vector.shape_cast %33 : vector<1x128x128xbf16> to vector<128x128xbf16>
    %cst_13 = arith.constant dense<0.000000e+00> : vector<8x128xf32>
    %35 = tpu.matmul %31, %34, %cst_13 {dimension_numbers = #tpu.dot_dimension_numbers<[1], [0], [0], [1], [0, 0, 1, 1], [], []>} : vector<8x128xbf16>, vector<128x128xbf16>, vector<8x128xf32> -> vector<8x128xf32>
    %36 = arith.addf %5, %35 : vector<8x128xf32>
    %c8_i32_14 = arith.constant 8 : i32
    %37 = arith.addi %c8_i32_14, %c0_i32_1 : i32
    %38 = arith.index_cast %37 : i32 to index
    %39 = arith.index_cast %4 : i32 to index
    %c0_15 = arith.constant 0 : index
    %40 = vector.load %arg13[%38, %39, %c0_15] : memref<12x8x128xbf16, #tpu.memory_space<vmem>>, vector<1x8x128xbf16>
    %41 = vector.shape_cast %40 : vector<1x8x128xbf16> to vector<8x128xbf16>
    %42 = arith.index_cast %c0_i32_1 : i32 to index
    %c0_16 = arith.constant 0 : index
    %c0_17 = arith.constant 0 : index
    %43 = vector.load %arg10[%42, %c0_16, %c0_17] : memref<4x128x128xbf16, #tpu.memory_space<vmem>>, vector<1x128x128xbf16>
    %44 = vector.shape_cast %43 : vector<1x128x128xbf16> to vector<128x128xbf16>
    %cst_18 = arith.constant dense<0.000000e+00> : vector<8x128xf32>
    %45 = tpu.matmul %41, %44, %cst_18 {dimension_numbers = #tpu.dot_dimension_numbers<[1], [0], [0], [1], [0, 0, 1, 1], [], []>} : vector<8x128xbf16>, vector<128x128xbf16>, vector<8x128xf32> -> vector<8x128xf32>
    %46 = arith.addf %5, %45 : vector<8x128xf32>
    %c1_i32 = arith.constant 1 : i32
    %47 = arith.index_cast %c1_i32 : i32 to index
    %48 = arith.index_cast %4 : i32 to index
    %c0_19 = arith.constant 0 : index
    %49 = vector.load %arg13[%47, %48, %c0_19] : memref<12x8x128xbf16, #tpu.memory_space<vmem>>, vector<1x8x128xbf16>
    %50 = vector.shape_cast %49 : vector<1x8x128xbf16> to vector<8x128xbf16>
    %c4_i32_20 = arith.constant 4 : i32
    %51 = arith.addi %c4_i32_20, %c1_i32 : i32
    %52 = arith.index_cast %51 : i32 to index
    %c0_21 = arith.constant 0 : index
    %c0_22 = arith.constant 0 : index
    %53 = vector.load %arg13[%52, %c0_21, %c0_22] : memref<12x8x128xbf16, #tpu.memory_space<vmem>>, vector<1x8x128xbf16>
    %54 = vector.shape_cast %53 : vector<1x8x128xbf16> to vector<8x128xbf16>
    %c8_i32_23 = arith.constant 8 : i32
    %55 = arith.addi %c8_i32_23, %c1_i32 : i32
    %56 = arith.index_cast %55 : i32 to index
    %c0_24 = arith.constant 0 : index
    %c0_25 = arith.constant 0 : index
    %57 = vector.load %arg13[%56, %c0_24, %c0_25] : memref<12x8x128xbf16, #tpu.memory_space<vmem>>, vector<1x8x128xbf16>
    %58 = vector.shape_cast %57 : vector<1x8x128xbf16> to vector<8x128xbf16>
    %cst_26 = arith.constant dense<0.000000e+00> : vector<8x8xf32>
    %59 = tpu.matmul %50, %54, %cst_26 {dimension_numbers = #tpu.dot_dimension_numbers<[1], [1], [0], [0], [0, 0, 1, 0], [], []>} : vector<8x128xbf16>, vector<8x128xbf16>, vector<8x8xf32> -> vector<8x8xf32>
    %cst_27 = arith.constant dense<0xFF800000> : vector<8xf32>
    %60 = vector.multi_reduction <maximumf>, %59, %cst_27 [1] : vector<8x8xf32> to vector<8xf32>
    %61 = vector.shape_cast %60 : vector<8xf32> to vector<8x1xf32>
    %62 = vector.broadcast %61 : vector<8x1xf32> to vector<8x8xf32>
    %63 = arith.subf %59, %62 : vector<8x8xf32>
    %64 = math.exp %63 : vector<8x8xf32>
    %cst_28 = arith.constant dense<0.000000e+00> : vector<8xf32>
    %65 = vector.multi_reduction <add>, %64, %cst_28 [1] : vector<8x8xf32> to vector<8xf32>
    %66 = vector.shape_cast %65 : vector<8xf32> to vector<8x1xf32>
    %67 = tpu.reciprocal %66 {approx = true} : vector<8x1xf32> -> vector<8x1xf32>
    %68 = vector.broadcast %67 : vector<8x1xf32> to vector<8x8xf32>
    %69 = arith.mulf %64, %68 : vector<8x8xf32>
    %70 = arith.truncf %69 : vector<8x8xf32> to vector<8x8xbf16>
    %cst_29 = arith.constant dense<0.000000e+00> : vector<8x128xf32>
    %71 = tpu.matmul %70, %58, %cst_29 {dimension_numbers = #tpu.dot_dimension_numbers<[1], [0], [0], [1], [0, 0, 1, 1], [], []>} : vector<8x8xbf16>, vector<8x128xbf16>, vector<8x128xf32> -> vector<8x128xf32>
    %72 = arith.truncf %71 : vector<8x128xf32> to vector<8x128xbf16>
    %73 = arith.index_cast %c1_i32 : i32 to index
    %c0_30 = arith.constant 0 : index
    %c0_31 = arith.constant 0 : index
    %74 = vector.load %arg9[%73, %c0_30, %c0_31] : memref<4x128x128xbf16, #tpu.memory_space<vmem>>, vector<1x128x128xbf16>
    %75 = vector.shape_cast %74 : vector<1x128x128xbf16> to vector<128x128xbf16>
    %cst_32 = arith.constant dense<0.000000e+00> : vector<8x128xf32>
    %76 = tpu.matmul %72, %75, %cst_32 {dimension_numbers = #tpu.dot_dimension_numbers<[1], [0], [0], [1], [0, 0, 1, 1], [], []>} : vector<8x128xbf16>, vector<128x128xbf16>, vector<8x128xf32> -> vector<8x128xf32>
    %77 = arith.addf %36, %76 : vector<8x128xf32>
    %c8_i32_33 = arith.constant 8 : i32
    %78 = arith.addi %c8_i32_33, %c1_i32 : i32
    %79 = arith.index_cast %78 : i32 to index
    %80 = arith.index_cast %4 : i32 to index
    %c0_34 = arith.constant 0 : index
    %81 = vector.load %arg13[%79, %80, %c0_34] : memref<12x8x128xbf16, #tpu.memory_space<vmem>>, vector<1x8x128xbf16>
    %82 = vector.shape_cast %81 : vector<1x8x128xbf16> to vector<8x128xbf16>
    %83 = arith.index_cast %c1_i32 : i32 to index
    %c0_35 = arith.constant 0 : index
    %c0_36 = arith.constant 0 : index
    %84 = vector.load %arg10[%83, %c0_35, %c0_36] : memref<4x128x128xbf16, #tpu.memory_space<vmem>>, vector<1x128x128xbf16>
    %85 = vector.shape_cast %84 : vector<1x128x128xbf16> to vector<128x128xbf16>
    %cst_37 = arith.constant dense<0.000000e+00> : vector<8x128xf32>
    %86 = tpu.matmul %82, %85, %cst_37 {dimension_numbers = #tpu.dot_dimension_numbers<[1], [0], [0], [1], [0, 0, 1, 1], [], []>} : vector<8x128xbf16>, vector<128x128xbf16>, vector<8x128xf32> -> vector<8x128xf32>
    %87 = arith.addf %46, %86 : vector<8x128xf32>
    %c2_i32 = arith.constant 2 : i32
    %88 = arith.index_cast %c2_i32 : i32 to index
    %89 = arith.index_cast %4 : i32 to index
    %c0_38 = arith.constant 0 : index
    %90 = vector.load %arg13[%88, %89, %c0_38] : memref<12x8x128xbf16, #tpu.memory_space<vmem>>, vector<1x8x128xbf16>
    %91 = vector.shape_cast %90 : vector<1x8x128xbf16> to vector<8x128xbf16>
    %c4_i32_39 = arith.constant 4 : i32
    %92 = arith.addi %c4_i32_39, %c2_i32 : i32
    %93 = arith.index_cast %92 : i32 to index
    %c0_40 = arith.constant 0 : index
    %c0_41 = arith.constant 0 : index
    %94 = vector.load %arg13[%93, %c0_40, %c0_41] : memref<12x8x128xbf16, #tpu.memory_space<vmem>>, vector<1x8x128xbf16>
    %95 = vector.shape_cast %94 : vector<1x8x128xbf16> to vector<8x128xbf16>
    %c8_i32_42 = arith.constant 8 : i32
    %96 = arith.addi %c8_i32_42, %c2_i32 : i32
    %97 = arith.index_cast %96 : i32 to index
    %c0_43 = arith.constant 0 : index
    %c0_44 = arith.constant 0 : index
    %98 = vector.load %arg13[%97, %c0_43, %c0_44] : memref<12x8x128xbf16, #tpu.memory_space<vmem>>, vector<1x8x128xbf16>
    %99 = vector.shape_cast %98 : vector<1x8x128xbf16> to vector<8x128xbf16>
    %cst_45 = arith.constant dense<0.000000e+00> : vector<8x8xf32>
    %100 = tpu.matmul %91, %95, %cst_45 {dimension_numbers = #tpu.dot_dimension_numbers<[1], [1], [0], [0], [0, 0, 1, 0], [], []>} : vector<8x128xbf16>, vector<8x128xbf16>, vector<8x8xf32> -> vector<8x8xf32>
    %cst_46 = arith.constant dense<0xFF800000> : vector<8xf32>
    %101 = vector.multi_reduction <maximumf>, %100, %cst_46 [1] : vector<8x8xf32> to vector<8xf32>
    %102 = vector.shape_cast %101 : vector<8xf32> to vector<8x1xf32>
    %103 = vector.broadcast %102 : vector<8x1xf32> to vector<8x8xf32>
    %104 = arith.subf %100, %103 : vector<8x8xf32>
    %105 = math.exp %104 : vector<8x8xf32>
    %cst_47 = arith.constant dense<0.000000e+00> : vector<8xf32>
    %106 = vector.multi_reduction <add>, %105, %cst_47 [1] : vector<8x8xf32> to vector<8xf32>
    %107 = vector.shape_cast %106 : vector<8xf32> to vector<8x1xf32>
    %108 = tpu.reciprocal %107 {approx = true} : vector<8x1xf32> -> vector<8x1xf32>
    %109 = vector.broadcast %108 : vector<8x1xf32> to vector<8x8xf32>
    %110 = arith.mulf %105, %109 : vector<8x8xf32>
    %111 = arith.truncf %110 : vector<8x8xf32> to vector<8x8xbf16>
    %cst_48 = arith.constant dense<0.000000e+00> : vector<8x128xf32>
    %112 = tpu.matmul %111, %99, %cst_48 {dimension_numbers = #tpu.dot_dimension_numbers<[1], [0], [0], [1], [0, 0, 1, 1], [], []>} : vector<8x8xbf16>, vector<8x128xbf16>, vector<8x128xf32> -> vector<8x128xf32>
    %113 = arith.truncf %112 : vector<8x128xf32> to vector<8x128xbf16>
    %114 = arith.index_cast %c2_i32 : i32 to index
    %c0_49 = arith.constant 0 : index
    %c0_50 = arith.constant 0 : index
    %115 = vector.load %arg9[%114, %c0_49, %c0_50] : memref<4x128x128xbf16, #tpu.memory_space<vmem>>, vector<1x128x128xbf16>
    %116 = vector.shape_cast %115 : vector<1x128x128xbf16> to vector<128x128xbf16>
    %cst_51 = arith.constant dense<0.000000e+00> : vector<8x128xf32>
    %117 = tpu.matmul %113, %116, %cst_51 {dimension_numbers = #tpu.dot_dimension_numbers<[1], [0], [0], [1], [0, 0, 1, 1], [], []>} : vector<8x128xbf16>, vector<128x128xbf16>, vector<8x128xf32> -> vector<8x128xf32>
    %118 = arith.addf %77, %117 : vector<8x128xf32>
    %c8_i32_52 = arith.constant 8 : i32
    %119 = arith.addi %c8_i32_52, %c2_i32 : i32
    %120 = arith.index_cast %119 : i32 to index
    %121 = arith.index_cast %4 : i32 to index
    %c0_53 = arith.constant 0 : index
    %122 = vector.load %arg13[%120, %121, %c0_53] : memref<12x8x128xbf16, #tpu.memory_space<vmem>>, vector<1x8x128xbf16>
    %123 = vector.shape_cast %122 : vector<1x8x128xbf16> to vector<8x128xbf16>
    %124 = arith.index_cast %c2_i32 : i32 to index
    %c0_54 = arith.constant 0 : index
    %c0_55 = arith.constant 0 : index
    %125 = vector.load %arg10[%124, %c0_54, %c0_55] : memref<4x128x128xbf16, #tpu.memory_space<vmem>>, vector<1x128x128xbf16>
    %126 = vector.shape_cast %125 : vector<1x128x128xbf16> to vector<128x128xbf16>
    %cst_56 = arith.constant dense<0.000000e+00> : vector<8x128xf32>
    %127 = tpu.matmul %123, %126, %cst_56 {dimension_numbers = #tpu.dot_dimension_numbers<[1], [0], [0], [1], [0, 0, 1, 1], [], []>} : vector<8x128xbf16>, vector<128x128xbf16>, vector<8x128xf32> -> vector<8x128xf32>
    %128 = arith.addf %87, %127 : vector<8x128xf32>
    %c3_i32 = arith.constant 3 : i32
    %129 = arith.index_cast %c3_i32 : i32 to index
    %130 = arith.index_cast %4 : i32 to index
    %c0_57 = arith.constant 0 : index
    %131 = vector.load %arg13[%129, %130, %c0_57] : memref<12x8x128xbf16, #tpu.memory_space<vmem>>, vector<1x8x128xbf16>
    %132 = vector.shape_cast %131 : vector<1x8x128xbf16> to vector<8x128xbf16>
    %c4_i32_58 = arith.constant 4 : i32
    %133 = arith.addi %c4_i32_58, %c3_i32 : i32
    %134 = arith.index_cast %133 : i32 to index
    %c0_59 = arith.constant 0 : index
    %c0_60 = arith.constant 0 : index
    %135 = vector.load %arg13[%134, %c0_59, %c0_60] : memref<12x8x128xbf16, #tpu.memory_space<vmem>>, vector<1x8x128xbf16>
    %136 = vector.shape_cast %135 : vector<1x8x128xbf16> to vector<8x128xbf16>
    %c8_i32_61 = arith.constant 8 : i32
    %137 = arith.addi %c8_i32_61, %c3_i32 : i32
    %138 = arith.index_cast %137 : i32 to index
    %c0_62 = arith.constant 0 : index
    %c0_63 = arith.constant 0 : index
    %139 = vector.load %arg13[%138, %c0_62, %c0_63] : memref<12x8x128xbf16, #tpu.memory_space<vmem>>, vector<1x8x128xbf16>
    %140 = vector.shape_cast %139 : vector<1x8x128xbf16> to vector<8x128xbf16>
    %cst_64 = arith.constant dense<0.000000e+00> : vector<8x8xf32>
    %141 = tpu.matmul %132, %136, %cst_64 {dimension_numbers = #tpu.dot_dimension_numbers<[1], [1], [0], [0], [0, 0, 1, 0], [], []>} : vector<8x128xbf16>, vector<8x128xbf16>, vector<8x8xf32> -> vector<8x8xf32>
    %cst_65 = arith.constant dense<0xFF800000> : vector<8xf32>
    %142 = vector.multi_reduction <maximumf>, %141, %cst_65 [1] : vector<8x8xf32> to vector<8xf32>
    %143 = vector.shape_cast %142 : vector<8xf32> to vector<8x1xf32>
    %144 = vector.broadcast %143 : vector<8x1xf32> to vector<8x8xf32>
    %145 = arith.subf %141, %144 : vector<8x8xf32>
    %146 = math.exp %145 : vector<8x8xf32>
    %cst_66 = arith.constant dense<0.000000e+00> : vector<8xf32>
    %147 = vector.multi_reduction <add>, %146, %cst_66 [1] : vector<8x8xf32> to vector<8xf32>
    %148 = vector.shape_cast %147 : vector<8xf32> to vector<8x1xf32>
    %149 = tpu.reciprocal %148 {approx = true} : vector<8x1xf32> -> vector<8x1xf32>
    %150 = vector.broadcast %149 : vector<8x1xf32> to vector<8x8xf32>
    %151 = arith.mulf %146, %150 : vector<8x8xf32>
    %152 = arith.truncf %151 : vector<8x8xf32> to vector<8x8xbf16>
    %cst_67 = arith.constant dense<0.000000e+00> : vector<8x128xf32>
    %153 = tpu.matmul %152, %140, %cst_67 {dimension_numbers = #tpu.dot_dimension_numbers<[1], [0], [0], [1], [0, 0, 1, 1], [], []>} : vector<8x8xbf16>, vector<8x128xbf16>, vector<8x128xf32> -> vector<8x128xf32>
    %154 = arith.truncf %153 : vector<8x128xf32> to vector<8x128xbf16>
    %155 = arith.index_cast %c3_i32 : i32 to index
    %c0_68 = arith.constant 0 : index
    %c0_69 = arith.constant 0 : index
    %156 = vector.load %arg9[%155, %c0_68, %c0_69] : memref<4x128x128xbf16, #tpu.memory_space<vmem>>, vector<1x128x128xbf16>
    %157 = vector.shape_cast %156 : vector<1x128x128xbf16> to vector<128x128xbf16>
    %cst_70 = arith.constant dense<0.000000e+00> : vector<8x128xf32>
    %158 = tpu.matmul %154, %157, %cst_70 {dimension_numbers = #tpu.dot_dimension_numbers<[1], [0], [0], [1], [0, 0, 1, 1], [], []>} : vector<8x128xbf16>, vector<128x128xbf16>, vector<8x128xf32> -> vector<8x128xf32>
    %159 = arith.addf %118, %158 : vector<8x128xf32>
    %c8_i32_71 = arith.constant 8 : i32
    %160 = arith.addi %c8_i32_71, %c3_i32 : i32
    %161 = arith.index_cast %160 : i32 to index
    %162 = arith.index_cast %4 : i32 to index
    %c0_72 = arith.constant 0 : index
    %163 = vector.load %arg13[%161, %162, %c0_72] : memref<12x8x128xbf16, #tpu.memory_space<vmem>>, vector<1x8x128xbf16>
    %164 = vector.shape_cast %163 : vector<1x8x128xbf16> to vector<8x128xbf16>
    %165 = arith.index_cast %c3_i32 : i32 to index
    %c0_73 = arith.constant 0 : index
    %c0_74 = arith.constant 0 : index
    %166 = vector.load %arg10[%165, %c0_73, %c0_74] : memref<4x128x128xbf16, #tpu.memory_space<vmem>>, vector<1x128x128xbf16>
    %167 = vector.shape_cast %166 : vector<1x128x128xbf16> to vector<128x128xbf16>
    %cst_75 = arith.constant dense<0.000000e+00> : vector<8x128xf32>
    %168 = tpu.matmul %164, %167, %cst_75 {dimension_numbers = #tpu.dot_dimension_numbers<[1], [0], [0], [1], [0, 0, 1, 1], [], []>} : vector<8x128xbf16>, vector<128x128xbf16>, vector<8x128xf32> -> vector<8x128xf32>
    %169 = arith.addf %128, %168 : vector<8x128xf32>
    %c4_i32_76 = arith.constant 4 : i32
    %c0_77 = arith.constant 0 : index
    %c0_78 = arith.constant 0 : index
    %c0_79 = arith.constant 0 : index
    %170 = vector.load %arg6[%c0_77, %c0_78, %c0_79] : memref<1x1x128xf32, #tpu.memory_space<vmem>>, vector<1x1x128xf32>
    %171 = vector.shape_cast %170 : vector<1x1x128xf32> to vector<1x128xf32>
    %172 = vector.broadcast %171 : vector<1x128xf32> to vector<8x128xf32>
    %173 = arith.mulf %159, %172 : vector<8x128xf32>
    %c0_80 = arith.constant 0 : index
    %c0_81 = arith.constant 0 : index
    %c0_82 = arith.constant 0 : index
    %174 = vector.load %arg7[%c0_80, %c0_81, %c0_82] : memref<1x1x128xf32, #tpu.memory_space<vmem>>, vector<1x1x128xf32>
    %175 = vector.shape_cast %174 : vector<1x1x128xf32> to vector<1x128xf32>
    %176 = vector.broadcast %175 : vector<1x128xf32> to vector<8x128xf32>
    %177 = arith.mulf %169, %176 : vector<8x128xf32>
    %178 = arith.addf %173, %177 : vector<8x128xf32>
    %c0_83 = arith.constant 0 : index
    %c0_84 = arith.constant 0 : index
    %c0_85 = arith.constant 0 : index
    %179 = vector.load %arg3[%c0_83, %c0_84, %c0_85] : memref<1x8x1xf32, #tpu.memory_space<vmem>>, vector<1x8x1xf32>
    %180 = vector.shape_cast %179 : vector<1x8x1xf32> to vector<8x1xf32>
    %181 = vector.broadcast %180 : vector<8x1xf32> to vector<8x128xf32>
    %182 = arith.addf %178, %181 : vector<8x128xf32>
    %c0_86 = arith.constant 0 : index
    %c0_87 = arith.constant 0 : index
    %183 = vector.load %arg11[%c0_86, %c0_87] : memref<1x128xf32, #tpu.memory_space<vmem>>, vector<1x128xf32>
    %184 = vector.broadcast %183 : vector<1x128xf32> to vector<8x128xf32>
    %185 = arith.addf %182, %184 : vector<8x128xf32>
    %cst_88 = arith.constant 0.000000e+00 : f32
    %186 = vector.broadcast %cst_88 : f32 to vector<8x128xf32>
    %187 = arith.cmpf oge, %185, %186 : vector<8x128xf32>
    %cst_89 = arith.constant 2.000000e-01 : f32
    %188 = vector.broadcast %cst_89 : f32 to vector<8x128xf32>
    %189 = arith.mulf %188, %185 : vector<8x128xf32>
    %190 = arith.select %187, %185, %189 : vector<8x128xi1>, vector<8x128xf32>
    %c0_90 = arith.constant 0 : index
    %c0_91 = arith.constant 0 : index
    %c0_92 = arith.constant 0 : index
    %191 = vector.load %arg12[%c0_90, %c0_91, %c0_92] : memref<1x8x128xf32, #tpu.memory_space<vmem>>, vector<1x8x128xf32>
    %192 = vector.shape_cast %191 : vector<1x8x128xf32> to vector<8x128xf32>
    %193 = vector.shape_cast %190 : vector<8x128xf32> to vector<1x8x128xf32>
    tpu.vector_store %arg12[%c0_90, %c0_91, %c0_92], %193 {strides = array<i32>} : memref<1x8x128xf32, #tpu.memory_space<vmem>>, vector<1x8x128xf32>,
    return
  }
  func.func @transform_0(%arg0: i32, %arg1: i32) -> (i32, i32, i32) {
    %c0_i32 = arith.constant 0 : i32
    %c0_i32_0 = arith.constant 0 : i32
    %c0_i32_1 = arith.constant 0 : i32
    return %arg0, %c0_i32, %c0_i32_0 : i32, i32, i32
  }
  func.func @transform_1(%arg0: i32, %arg1: i32) -> (i32, i32, i32) {
    %c0_i32 = arith.constant 0 : i32
    %c0_i32_0 = arith.constant 0 : i32
    return %arg0, %arg1, %c0_i32 : i32, i32, i32
  }
  func.func @transform_2(%arg0: i32, %arg1: i32) -> (i32, i32, i32) {
    %c0_i32 = arith.constant 0 : i32
    %c0_i32_0 = arith.constant 0 : i32
    %c0_i32_1 = arith.constant 0 : i32
    return %arg0, %c0_i32, %c0_i32_0 : i32, i32, i32
  }
  func.func @transform_3(%arg0: i32, %arg1: i32) -> (i32, i32, i32) {
    %c0_i32 = arith.constant 0 : i32
    %c0_i32_0 = arith.constant 0 : i32
    %c0_i32_1 = arith.constant 0 : i32
    return %arg0, %c0_i32, %c0_i32_0 : i32, i32, i32
  }
  func.func @transform_4(%arg0: i32, %arg1: i32) -> (i32, i32, i32) {
    %c0_i32 = arith.constant 0 : i32
    %c0_i32_0 = arith.constant 0 : i32
    %c0_i32_1 = arith.constant 0 : i32
    return %arg0, %c0_i32, %c0_i32_0 : i32, i32, i32
  }
  func.func @transform_5(%arg0: i32, %arg1: i32) -> (i32, i32, i32) {
    %c0_i32 = arith.constant 0 : i32
    %c0_i32_0 = arith.constant 0 : i32
    %c0_i32_1 = arith.constant 0 : i32
    return %arg0, %c0_i32, %c0_i32_0 : i32, i32, i32
  }
  func.func @transform_6(%arg0: i32, %arg1: i32) -> (i32, i32) {
    %c0_i32 = arith.constant 0 : i32
    %c0_i32_0 = arith.constant 0 : i32
    %c0_i32_1 = arith.constant 0 : i32
    return %c0_i32, %c0_i32_0 : i32, i32
  }
  func.func @transform_7(%arg0: i32, %arg1: i32) -> (i32, i32, i32) {
    %c0_i32 = arith.constant 0 : i32
    %c0_i32_0 = arith.constant 0 : i32
    %c0_i32_1 = arith.constant 0 : i32
    %c0_i32_2 = arith.constant 0 : i32
    return %c0_i32, %c0_i32_0, %c0_i32_1 : i32, i32, i32
  }
  func.func @transform_8(%arg0: i32, %arg1: i32) -> (i32, i32, i32) {
    %c0_i32 = arith.constant 0 : i32
    %c0_i32_0 = arith.constant 0 : i32
    %c0_i32_1 = arith.constant 0 : i32
    %c0_i32_2 = arith.constant 0 : i32
    return %c0_i32, %c0_i32_0, %c0_i32_1 : i32, i32, i32
  }
  func.func @transform_9(%arg0: i32, %arg1: i32) -> (i32, i32) {
    %c0_i32 = arith.constant 0 : i32
    %c0_i32_0 = arith.constant 0 : i32
    %c0_i32_1 = arith.constant 0 : i32
    return %c0_i32, %c0_i32_0 : i32, i32
  }
  func.func @transform_10(%arg0: i32, %arg1: i32) -> (i32, i32, i32) {
    %c0_i32 = arith.constant 0 : i32
    %c0_i32_0 = arith.constant 0 : i32
    return %arg0, %arg1, %c0_i32 : i32, i32, i32
  }
}

module attributes {stable_mosaic.version = 11 : i64} {
  func.func @_encoder_kernel(%arg0: i32, %arg1: i32, %arg2: memref<1x8x128xbf16, #tpu.memory_space<vmem>>, %arg3: memref<1x8x1xf32, #tpu.memory_space<vmem>>, %arg4: memref<1x1x128xf32, #tpu.memory_space<vmem>>, %arg5: memref<1x1x1536xf32, #tpu.memory_space<vmem>>, %arg6: memref<1x1x128xf32, #tpu.memory_space<vmem>>, %arg7: memref<1x1x128xf32, #tpu.memory_space<vmem>>, %arg8: memref<128x1536xbf16, #tpu.memory_space<vmem>>, %arg9: memref<4x128x128xbf16, #tpu.memory_space<vmem>>, %arg10: memref<4x128x128xbf16, #tpu.memory_space<vmem>>, %arg11: memref<1x128xf32, #tpu.memory_space<vmem>>, %arg12: memref<1x8x128xf32, #tpu.memory_space<vmem>>, %arg13: memref<12x8x128xbf16, #tpu.memory_space<vmem>>) attributes {dimension_semantics = [#tpu.dimension_semantics<parallel>, #tpu.dimension_semantics<arbitrary>], iteration_bounds = array<i64: 2, 1>, scalar_prefetch = 0 : i64, scratch_operands = 1 : i64, tpu.core_type = #tpu.core_type<tc>, window_params = [{transform_indices = @transform_0, window_bounds = array<i64: 1, 8, 128>}, {transform_indices = @transform_1, window_bounds = array<i64: 1, 8, 1>}, {transform_indices = @transform_2, window_bounds = array<i64: 1, 1, 128>}, {transform_indices = @transform_3, window_bounds = array<i64: 1, 1, 1536>}, {transform_indices = @transform_4, window_bounds = array<i64: 1, 1, 128>}, {transform_indices = @transform_5, window_bounds = array<i64: 1, 1, 128>}, {pipeline_mode = #tpu.pipeline_mode<synchronous>, transform_indices = @transform_6, window_bounds = array<i64: 128, 1536>}, {pipeline_mode = #tpu.pipeline_mode<synchronous>, transform_indices = @transform_7, window_bounds = array<i64: 4, 128, 128>}, {pipeline_mode = #tpu.pipeline_mode<synchronous>, transform_indices = @transform_8, window_bounds = array<i64: 4, 128, 128>}, {pipeline_mode = #tpu.pipeline_mode<synchronous>, transform_indices = @transform_9, window_bounds = array<i64: 1, 128>}, {transform_indices = @transform_10, window_bounds = array<i64: 1, 8, 128>}]} {
    %c0_i32 = arith.constant 0 : i32
    %0 = arith.cmpi eq, %arg1, %c0_i32 : i32
    %1 = arith.extui %0 : i1 to i32
    %c0_i32_0 = arith.constant 0 : i32
    %2 = arith.cmpi ne, %1, %c0_i32_0 : i32
    scf.if %2 {
      %c0_93 = arith.constant 0 : index
      %c0_94 = arith.constant 0 : index
      %c0_95 = arith.constant 0 : index
      %194 = vector.load %arg4[%c0_93, %c0_94, %c0_95] : memref<1x1x128xf32, #tpu.memory_space<vmem>>, vector<1x1x128xf32>
      %195 = vector.shape_cast %194 : vector<1x1x128xf32> to vector<1x128xf32>
      %c0_96 = arith.constant 0 : index
      %c0_97 = arith.constant 0 : index
      %c0_98 = arith.constant 0 : index
      %196 = vector.load %arg5[%c0_96, %c0_97, %c0_98] : memref<1x1x1536xf32, #tpu.memory_space<vmem>>, vector<1x1x1536xf32>
      %197 = vector.shape_cast %196 : vector<1x1x1536xf32> to vector<1x1536xf32>
      %c0_i32_99 = arith.constant 0 : i32
      %c8_i32_100 = arith.constant 8 : i32
      %198 = arith.muli %c0_i32_99, %c8_i32_100 : i32
      %199 = tpu.assume_multiple %198, 8 : i32
      %c0_101 = arith.constant 0 : index
      %200 = arith.index_cast %199 : i32 to index
      %c0_102 = arith.constant 0 : index
      %201 = vector.load %arg2[%c0_101, %200, %c0_102] : memref<1x8x128xbf16, #tpu.memory_space<vmem>>, vector<1x8x128xbf16>
      %202 = vector.shape_cast %201 : vector<1x8x128xbf16> to vector<8x128xbf16>
      %203 = arith.extf %202 : vector<8x128xbf16> to vector<8x128xf32>
      %204 = vector.broadcast %195 : vector<1x128xf32> to vector<8x128xf32>
      %205 = arith.mulf %203, %204 : vector<8x128xf32>
      %cst_103 = arith.constant dense<0.000000e+00> : vector<8xf32>
      %206 = vector.multi_reduction <add>, %205, %cst_103 [1] : vector<8x128xf32> to vector<8xf32>
      %207 = vector.shape_cast %206 : vector<8xf32> to vector<8x1xf32>
      %cst_104 = arith.constant 3.125000e-02 : f32
      %208 = vector.broadcast %cst_104 : f32 to vector<8x1xf32>
      %209 = arith.mulf %207, %208 : vector<8x1xf32>
      %210 = vector.broadcast %209 : vector<8x1xf32> to vector<8x128xf32>
      %211 = arith.subf %205, %210 : vector<8x128xf32>
      %212 = tpu.iota {dimensions = array<i32: 1>} : vector<8x128xi32>
      %c32_i32 = arith.constant 32 : i32
      %213 = vector.broadcast %c32_i32 : i32 to vector<8x128xi32>
      %214 = arith.cmpi slt, %212, %213 : vector<8x128xi32>
      %cst_105 = arith.constant 0.000000e+00 : f32
      %215 = vector.broadcast %cst_105 : f32 to vector<8x128xf32>
      %216 = arith.select %214, %211, %215 : vector<8x128xi1>, vector<8x128xf32>
      %217 = arith.mulf %216, %216 : vector<8x128xf32>
      %cst_106 = arith.constant dense<0.000000e+00> : vector<8xf32>
      %218 = vector.multi_reduction <add>, %217, %cst_106 [1] : vector<8x128xf32> to vector<8xf32>
      %219 = vector.shape_cast %218 : vector<8xf32> to vector<8x1xf32>
      %cst_107 = arith.constant 3.125000e-02 : f32
      %220 = vector.broadcast %cst_107 : f32 to vector<8x1xf32>
      %221 = arith.mulf %219, %220 : vector<8x1xf32>
      %cst_108 = arith.constant 9.99999974E-6 : f32
      %222 = vector.broadcast %cst_108 : f32 to vector<8x1xf32>
      %223 = arith.addf %221, %222 : vector<8x1xf32>
      %224 = math.rsqrt %223 : vector<8x1xf32>
      %225 = vector.broadcast %224 : vector<8x1xf32> to vector<8x128xf32>
      %226 = arith.mulf %216, %225 : vector<8x128xf32>
      %227 = arith.truncf %226 : vector<8x128xf32> to vector<8x128xbf16>
      %c0_109 = arith.constant 0 : index
      %c0_110 = arith.constant 0 : index
      %228 = vector.load %arg8[%c0_109, %c0_110] : memref<128x1536xbf16, #tpu.memory_space<vmem>>, vector<128x1536xbf16>
      %cst_111 = arith.constant dense<0.000000e+00> : vector<8x1536xf32>
      %229 = tpu.matmul %227, %228, %cst_111 {dimension_numbers = #tpu.dot_dimension_numbers<[1], [0], [0], [1], [0, 0, 1, 1], [], []>} : vector<8x128xbf16>, vector<128x1536xbf16>, vector<8x1536xf32> -> vector<8x1536xf32>
      %230 = vector.broadcast %197 : vector<1x1536xf32> to vector<8x1536xf32>
      %231 = arith.mulf %229, %230 : vector<8x1536xf32>
      %232 = arith.truncf %231 : vector<8x1536xf32> to vector<8x1536xbf16>
      %233 = vector.extract_strided_slice %232 {offsets = [0, 0], sizes = [8, 128], strides = [1, 1]} : vector<8x1536xbf16> to vector<8x128xbf16>
      %c0_112 = arith.constant 0 : index
      %234 = arith.index_cast %199 : i32 to index
      %c0_113 = arith.constant 0 : index
      %235 = vector.load %arg13[%c0_112, %234, %c0_113] : memref<12x8x128xbf16, #tpu.memory_space<vmem>>, vector<1x8x128xbf16>
      %236 = vector.shape_cast %235 : vector<1x8x128xbf16> to vector<8x128xbf16>
      %237 = vector.shape_cast %233 : vector<8x128xbf16> to vector<1x8x128xbf16>
      tpu.vector_store %arg13[%c0_112, %234, %c0_113], %237 {strides = array<i32>} : memref<12x8x128xbf16, #tpu.memory_space<vmem>>, vector<1x8x128xbf16>,
      %238 = vector.extract_strided_slice %232 {offsets = [0, 128], sizes = [8, 128], strides = [1, 1]} : vector<8x1536xbf16> to vector<8x128xbf16>
      %c1 = arith.constant 1 : index
      %239 = arith.index_cast %199 : i32 to index
      %c0_114 = arith.constant 0 : index
      %240 = vector.load %arg13[%c1, %239, %c0_114] : memref<12x8x128xbf16, #tpu.memory_space<vmem>>, vector<1x8x128xbf16>
      %241 = vector.shape_cast %240 : vector<1x8x128xbf16> to vector<8x128xbf16>
      %242 = vector.shape_cast %238 : vector<8x128xbf16> to vector<1x8x128xbf16>
      tpu.vector_store %arg13[%c1, %239, %c0_114], %242 {strides = array<i32>} : memref<12x8x128xbf16, #tpu.memory_space<vmem>>, vector<1x8x128xbf16>,
      %243 = vector.extract_strided_slice %232 {offsets = [0, 256], sizes = [8, 128], strides = [1, 1]} : vector<8x1536xbf16> to vector<8x128xbf16>
      %c2 = arith.constant 2 : index
      %244 = arith.index_cast %199 : i32 to index
      %c0_115 = arith.constant 0 : index
      %245 = vector.load %arg13[%c2, %244, %c0_115] : memref<12x8x128xbf16, #tpu.memory_space<vmem>>, vector<1x8x128xbf16>
      %246 = vector.shape_cast %245 : vector<1x8x128xbf16> to vector<8x128xbf16>
      %247 = vector.shape_cast %243 : vector<8x128xbf16> to vector<1x8x128xbf16>
      tpu.vector_store %arg13[%c2, %244, %c0_115], %247 {strides = array<i32>} : memref<12x8x128xbf16, #tpu.memory_space<vmem>>, vector<1x8x128xbf16>,
      %248 = vector.extract_strided_slice %232 {offsets = [0, 384], sizes = [8, 128], strides = [1, 1]} : vector<8x1536xbf16> to vector<8x128xbf16>
      %c3 = arith.constant 3 : index
      %249 = arith.index_cast %199 : i32 to index
      %c0_116 = arith.constant 0 : index
      %250 = vector.load %arg13[%c3, %249, %c0_116] : memref<12x8x128xbf16, #tpu.memory_space<vmem>>, vector<1x8x128xbf16>
      %251 = vector.shape_cast %250 : vector<1x8x128xbf16> to vector<8x128xbf16>
      %252 = vector.shape_cast %248 : vector<8x128xbf16> to vector<1x8x128xbf16>
      tpu.vector_store %arg13[%c3, %249, %c0_116], %252 {strides = array<i32>} : memref<12x8x128xbf16, #tpu.memory_space<vmem>>, vector<1x8x128xbf16>,
      %253 = vector.extract_strided_slice %232 {offsets = [0, 512], sizes = [8, 128], strides = [1, 1]} : vector<8x1536xbf16> to vector<8x128xbf16>
      %c4 = arith.constant 4 : index
      %254 = arith.index_cast %199 : i32 to index
      %c0_117 = arith.constant 0 : index
      %255 = vector.load %arg13[%c4, %254, %c0_117] : memref<12x8x128xbf16, #tpu.memory_space<vmem>>, vector<1x8x128xbf16>
      %256 = vector.shape_cast %255 : vector<1x8x128xbf16> to vector<8x128xbf16>
      %257 = vector.shape_cast %253 : vector<8x128xbf16> to vector<1x8x128xbf16>
      tpu.vector_store %arg13[%c4, %254, %c0_117], %257 {strides = array<i32>} : memref<12x8x128xbf16, #tpu.memory_space<vmem>>, vector<1x8x128xbf16>,
      %258 = vector.extract_strided_slice %232 {offsets = [0, 640], sizes = [8, 128], strides = [1, 1]} : vector<8x1536xbf16> to vector<8x128xbf16>
      %c5 = arith.constant 5 : index
      %259 = arith.index_cast %199 : i32 to index
      %c0_118 = arith.constant 0 : index
      %260 = vector.load %arg13[%c5, %259, %c0_118] : memref<12x8x128xbf16, #tpu.memory_space<vmem>>, vector<1x8x128xbf16>
      %261 = vector.shape_cast %260 : vector<1x8x128xbf16> to vector<8x128xbf16>
      %262 = vector.shape_cast %258 : vector<8x128xbf16> to vector<1x8x128xbf16>
      tpu.vector_store %arg13[%c5, %259, %c0_118], %262 {strides = array<i32>} : memref<12x8x128xbf16, #tpu.memory_space<vmem>>, vector<1x8x128xbf16>,
      %263 = vector.extract_strided_slice %232 {offsets = [0, 768], sizes = [8, 128], strides = [1, 1]} : vector<8x1536xbf16> to vector<8x128xbf16>
      %c6 = arith.constant 6 : index
      %264 = arith.index_cast %199 : i32 to index
      %c0_119 = arith.constant 0 : index
      %265 = vector.load %arg13[%c6, %264, %c0_119] : memref<12x8x128xbf16, #tpu.memory_space<vmem>>, vector<1x8x128xbf16>
      %266 = vector.shape_cast %265 : vector<1x8x128xbf16> to vector<8x128xbf16>
      %267 = vector.shape_cast %263 : vector<8x128xbf16> to vector<1x8x128xbf16>
      tpu.vector_store %arg13[%c6, %264, %c0_119], %267 {strides = array<i32>} : memref<12x8x128xbf16, #tpu.memory_space<vmem>>, vector<1x8x128xbf16>,
      %268 = vector.extract_strided_slice %232 {offsets = [0, 896], sizes = [8, 128], strides = [1, 1]} : vector<8x1536xbf16> to vector<8x128xbf16>
      %c7 = arith.constant 7 : index
      %269 = arith.index_cast %199 : i32 to index
      %c0_120 = arith.constant 0 : index
      %270 = vector.load %arg13[%c7, %269, %c0_120] : memref<12x8x128xbf16, #tpu.memory_space<vmem>>, vector<1x8x128xbf16>
      %271 = vector.shape_cast %270 : vector<1x8x128xbf16> to vector<8x128xbf16>
      %272 = vector.shape_cast %268 : vector<8x128xbf16> to vector<1x8x128xbf16>
      tpu.vector_store %arg13[%c7, %269, %c0_120], %272 {strides = array<i32>} : memref<12x8x128xbf16, #tpu.memory_space<vmem>>, vector<1x8x128xbf16>,
      %273 = vector.extract_strided_slice %232 {offsets = [0, 1024], sizes = [8, 128], strides = [1, 1]} : vector<8x1536xbf16> to vector<8x128xbf16>
      %c8 = arith.constant 8 : index
      %274 = arith.index_cast %199 : i32 to index
      %c0_121 = arith.constant 0 : index
      %275 = vector.load %arg13[%c8, %274, %c0_121] : memref<12x8x128xbf16, #tpu.memory_space<vmem>>, vector<1x8x128xbf16>
      %276 = vector.shape_cast %275 : vector<1x8x128xbf16> to vector<8x128xbf16>
      %277 = vector.shape_cast %273 : vector<8x128xbf16> to vector<1x8x128xbf16>
      tpu.vector_store %arg13[%c8, %274, %c0_121], %277 {strides = array<i32>} : memref<12x8x128xbf16, #tpu.memory_space<vmem>>, vector<1x8x128xbf16>,
      %278 = vector.extract_strided_slice %232 {offsets = [0, 1152], sizes = [8, 128], strides = [1, 1]} : vector<8x1536xbf16> to vector<8x128xbf16>
      %c9 = arith.constant 9 : index
      %279 = arith.index_cast %199 : i32 to index
      %c0_122 = arith.constant 0 : index
      %280 = vector.load %arg13[%c9, %279, %c0_122] : memref<12x8x128xbf16, #tpu.memory_space<vmem>>, vector<1x8x128xbf16>
      %281 = vector.shape_cast %280 : vector<1x8x128xbf16> to vector<8x128xbf16>
      %282 = vector.shape_cast %278 : vector<8x128xbf16> to vector<1x8x128xbf16>
      tpu.vector_store %arg13[%c9, %279, %c0_122], %282 {strides = array<i32>} : memref<12x8x128xbf16, #tpu.memory_space<vmem>>, vector<1x8x128xbf16>,
      %283 = vector.extract_strided_slice %232 {offsets = [0, 1280], sizes = [8, 128], strides = [1, 1]} : vector<8x1536xbf16> to vector<8x128xbf16>
      %c10 = arith.constant 10 : index
      %284 = arith.index_cast %199 : i32 to index
      %c0_123 = arith.constant 0 : index
      %285 = vector.load %arg13[%c10, %284, %c0_123] : memref<12x8x128xbf16, #tpu.memory_space<vmem>>, vector<1x8x128xbf16>
      %286 = vector.shape_cast %285 : vector<1x8x128xbf16> to vector<8x128xbf16>
      %287 = vector.shape_cast %283 : vector<8x128xbf16> to vector<1x8x128xbf16>
      tpu.vector_store %arg13[%c10, %284, %c0_123], %287 {strides = array<i32>} : memref<12x8x128xbf16, #tpu.memory_space<vmem>>, vector<1x8x128xbf16>,
      %288 = vector.extract_strided_slice %232 {offsets = [0, 1408], sizes = [8, 128], strides = [1, 1]} : vector<8x1536xbf16> to vector<8x128xbf16>
      %c11 = arith.constant 11 : index
      %289 = arith.index_cast %199 : i32 to index
      %c0_124 = arith.constant 0 : index
      %290 = vector.load %arg13[%c11, %289, %c0_124] : memref<12x8x128xbf16, #tpu.memory_space<vmem>>, vector<1x8x128xbf16>
      %291 = vector.shape_cast %290 : vector<1x8x128xbf16> to vector<8x128xbf16>
      %292 = vector.shape_cast %288 : vector<8x128xbf16> to vector<1x8x128xbf16>
      tpu.vector_store %arg13[%c11, %289, %c0_124], %292 {strides = array<i32>} : memref<12x8x128xbf16, #tpu.memory_space<vmem>>, vector<1x8x128xbf16>,
      %c1_i32_125 = arith.constant 1 : i32
    } else {
    }
    %c8_i32 = arith.constant 8 : i32
    %3 = arith.muli %arg1, %c8_i32 : i32
    %4 = tpu.assume_multiple %3, 8 : i32
    %cst = arith.constant 0.000000e+00 : f32
    %5 = vector.broadcast %cst : f32 to vector<8x128xf32>
    %c0_i32_1 = arith.constant 0 : i32
    %6 = arith.index_cast %c0_i32_1 : i32 to index
    %7 = arith.index_cast %4 : i32 to index
    %c0 = arith.constant 0 : index
    %8 = vector.load %arg13[%6, %7, %c0] : memref<12x8x128xbf16, #tpu.memory_space<vmem>>, vector<1x8x128xbf16>
    %9 = vector.shape_cast %8 : vector<1x8x128xbf16> to vector<8x128xbf16>
    %c4_i32 = arith.constant 4 : i32
    %10 = arith.addi %c4_i32, %c0_i32_1 : i32
    %11 = arith.index_cast %10 : i32 to index
    %c0_2 = arith.constant 0 : index
    %c0_3 = arith.constant 0 : index
    %12 = vector.load %arg13[%11, %c0_2, %c0_3] : memref<12x8x128xbf16, #tpu.memory_space<vmem>>, vector<1x8x128xbf16>
    %13 = vector.shape_cast %12 : vector<1x8x128xbf16> to vector<8x128xbf16>
    %c8_i32_4 = arith.constant 8 : i32
    %14 = arith.addi %c8_i32_4, %c0_i32_1 : i32
    %15 = arith.index_cast %14 : i32 to index
    %c0_5 = arith.constant 0 : index
    %c0_6 = arith.constant 0 : index
    %16 = vector.load %arg13[%15, %c0_5, %c0_6] : memref<12x8x128xbf16, #tpu.memory_space<vmem>>, vector<1x8x128xbf16>
    %17 = vector.shape_cast %16 : vector<1x8x128xbf16> to vector<8x128xbf16>
    %cst_7 = arith.constant dense<0.000000e+00> : vector<8x8xf32>
    %18 = tpu.matmul %9, %13, %cst_7 {dimension_numbers = #tpu.dot_dimension_numbers<[1], [1], [0], [0], [0, 0, 1, 0], [], []>} : vector<8x128xbf16>, vector<8x128xbf16>, vector<8x8xf32> -> vector<8x8xf32>
    %cst_8 = arith.constant dense<0xFF800000> : vector<8xf32>
    %19 = vector.multi_reduction <maximumf>, %18, %cst_8 [1] : vector<8x8xf32> to vector<8xf32>
    %20 = vector.shape_cast %19 : vector<8xf32> to vector<8x1xf32>
    %21 = vector.broadcast %20 : vector<8x1xf32> to vector<8x8xf32>
    %22 = arith.subf %18, %21 : vector<8x8xf32>
    %23 = math.exp %22 : vector<8x8xf32>
    %cst_9 = arith.constant dense<0.000000e+00> : vector<8xf32>
    %24 = vector.multi_reduction <add>, %23, %cst_9 [1] : vector<8x8xf32> to vector<8xf32>
    %25 = vector.shape_cast %24 : vector<8xf32> to vector<8x1xf32>
    %26 = tpu.reciprocal %25 {approx = true} : vector<8x1xf32> -> vector<8x1xf32>
    %27 = vector.broadcast %26 : vector<8x1xf32> to vector<8x8xf32>
    %28 = arith.mulf %23, %27 : vector<8x8xf32>
    %29 = arith.truncf %28 : vector<8x8xf32> to vector<8x8xbf16>
    %cst_10 = arith.constant dense<0.000000e+00> : vector<8x128xf32>
    %30 = tpu.matmul %29, %17, %cst_10 {dimension_numbers = #tpu.dot_dimension_numbers<[1], [0], [0], [1], [0, 0, 1, 1], [], []>} : vector<8x8xbf16>, vector<8x128xbf16>, vector<8x128xf32> -> vector<8x128xf32>
    %31 = arith.truncf %30 : vector<8x128xf32> to vector<8x128xbf16>
    %32 = arith.index_cast %c0_i32_1 : i32 to index
    %c0_11 = arith.constant 0 : index
    %c0_12 = arith.constant 0 : index
    %33 = vector.load %arg9[%32, %c0_11, %c0_12] : memref<4x128x128xbf16, #tpu.memory_space<vmem>>, vector<1x128x128xbf16>
    %34 = vector.shape_cast %33 : vector<1x128x128xbf16> to vector<128x128xbf16>
    %cst_13 = arith.constant dense<0.000000e+00> : vector<8x128xf32>
    %35 = tpu.matmul %31, %34, %cst_13 {dimension_numbers = #tpu.dot_dimension_numbers<[1], [0], [0], [1], [0, 0, 1, 1], [], []>} : vector<8x128xbf16>, vector<128x128xbf16>, vector<8x128xf32> -> vector<8x128xf32>
    %36 = arith.addf %5, %35 : vector<8x128xf32>
    %c8_i32_14 = arith.constant 8 : i32
    %37 = arith.addi %c8_i32_14, %c0_i32_1 : i32
    %38 = arith.index_cast %37 : i32 to index
    %39 = arith.index_cast %4 : i32 to index
    %c0_15 = arith.constant 0 : index
    %40 = vector.load %arg13[%38, %39, %c0_15] : memref<12x8x128xbf16, #tpu.memory_space<vmem>>, vector<1x8x128xbf16>
    %41 = vector.shape_cast %40 : vector<1x8x128xbf16> to vector<8x128xbf16>
    %42 = arith.index_cast %c0_i32_1 : i32 to index
    %c0_16 = arith.constant 0 : index
    %c0_17 = arith.constant 0 : index
    %43 = vector.load %arg10[%42, %c0_16, %c0_17] : memref<4x128x128xbf16, #tpu.memory_space<vmem>>, vector<1x128x128xbf16>
    %44 = vector.shape_cast %43 : vector<1x128x128xbf16> to vector<128x128xbf16>
    %cst_18 = arith.constant dense<0.000000e+00> : vector<8x128xf32>
    %45 = tpu.matmul %41, %44, %cst_18 {dimension_numbers = #tpu.dot_dimension_numbers<[1], [0], [0], [1], [0, 0, 1, 1], [], []>} : vector<8x128xbf16>, vector<128x128xbf16>, vector<8x128xf32> -> vector<8x128xf32>
    %46 = arith.addf %5, %45 : vector<8x128xf32>
    %c1_i32 = arith.constant 1 : i32
    %47 = arith.index_cast %c1_i32 : i32 to index
    %48 = arith.index_cast %4 : i32 to index
    %c0_19 = arith.constant 0 : index
    %49 = vector.load %arg13[%47, %48, %c0_19] : memref<12x8x128xbf16, #tpu.memory_space<vmem>>, vector<1x8x128xbf16>
    %50 = vector.shape_cast %49 : vector<1x8x128xbf16> to vector<8x128xbf16>
    %c4_i32_20 = arith.constant 4 : i32
    %51 = arith.addi %c4_i32_20, %c1_i32 : i32
    %52 = arith.index_cast %51 : i32 to index
    %c0_21 = arith.constant 0 : index
    %c0_22 = arith.constant 0 : index
    %53 = vector.load %arg13[%52, %c0_21, %c0_22] : memref<12x8x128xbf16, #tpu.memory_space<vmem>>, vector<1x8x128xbf16>
    %54 = vector.shape_cast %53 : vector<1x8x128xbf16> to vector<8x128xbf16>
    %c8_i32_23 = arith.constant 8 : i32
    %55 = arith.addi %c8_i32_23, %c1_i32 : i32
    %56 = arith.index_cast %55 : i32 to index
    %c0_24 = arith.constant 0 : index
    %c0_25 = arith.constant 0 : index
    %57 = vector.load %arg13[%56, %c0_24, %c0_25] : memref<12x8x128xbf16, #tpu.memory_space<vmem>>, vector<1x8x128xbf16>
    %58 = vector.shape_cast %57 : vector<1x8x128xbf16> to vector<8x128xbf16>
    %cst_26 = arith.constant dense<0.000000e+00> : vector<8x8xf32>
    %59 = tpu.matmul %50, %54, %cst_26 {dimension_numbers = #tpu.dot_dimension_numbers<[1], [1], [0], [0], [0, 0, 1, 0], [], []>} : vector<8x128xbf16>, vector<8x128xbf16>, vector<8x8xf32> -> vector<8x8xf32>
    %cst_27 = arith.constant dense<0xFF800000> : vector<8xf32>
    %60 = vector.multi_reduction <maximumf>, %59, %cst_27 [1] : vector<8x8xf32> to vector<8xf32>
    %61 = vector.shape_cast %60 : vector<8xf32> to vector<8x1xf32>
    %62 = vector.broadcast %61 : vector<8x1xf32> to vector<8x8xf32>
    %63 = arith.subf %59, %62 : vector<8x8xf32>
    %64 = math.exp %63 : vector<8x8xf32>
    %cst_28 = arith.constant dense<0.000000e+00> : vector<8xf32>
    %65 = vector.multi_reduction <add>, %64, %cst_28 [1] : vector<8x8xf32> to vector<8xf32>
    %66 = vector.shape_cast %65 : vector<8xf32> to vector<8x1xf32>
    %67 = tpu.reciprocal %66 {approx = true} : vector<8x1xf32> -> vector<8x1xf32>
    %68 = vector.broadcast %67 : vector<8x1xf32> to vector<8x8xf32>
    %69 = arith.mulf %64, %68 : vector<8x8xf32>
    %70 = arith.truncf %69 : vector<8x8xf32> to vector<8x8xbf16>
    %cst_29 = arith.constant dense<0.000000e+00> : vector<8x128xf32>
    %71 = tpu.matmul %70, %58, %cst_29 {dimension_numbers = #tpu.dot_dimension_numbers<[1], [0], [0], [1], [0, 0, 1, 1], [], []>} : vector<8x8xbf16>, vector<8x128xbf16>, vector<8x128xf32> -> vector<8x128xf32>
    %72 = arith.truncf %71 : vector<8x128xf32> to vector<8x128xbf16>
    %73 = arith.index_cast %c1_i32 : i32 to index
    %c0_30 = arith.constant 0 : index
    %c0_31 = arith.constant 0 : index
    %74 = vector.load %arg9[%73, %c0_30, %c0_31] : memref<4x128x128xbf16, #tpu.memory_space<vmem>>, vector<1x128x128xbf16>
    %75 = vector.shape_cast %74 : vector<1x128x128xbf16> to vector<128x128xbf16>
    %cst_32 = arith.constant dense<0.000000e+00> : vector<8x128xf32>
    %76 = tpu.matmul %72, %75, %cst_32 {dimension_numbers = #tpu.dot_dimension_numbers<[1], [0], [0], [1], [0, 0, 1, 1], [], []>} : vector<8x128xbf16>, vector<128x128xbf16>, vector<8x128xf32> -> vector<8x128xf32>
    %77 = arith.addf %36, %76 : vector<8x128xf32>
    %c8_i32_33 = arith.constant 8 : i32
    %78 = arith.addi %c8_i32_33, %c1_i32 : i32
    %79 = arith.index_cast %78 : i32 to index
    %80 = arith.index_cast %4 : i32 to index
    %c0_34 = arith.constant 0 : index
    %81 = vector.load %arg13[%79, %80, %c0_34] : memref<12x8x128xbf16, #tpu.memory_space<vmem>>, vector<1x8x128xbf16>
    %82 = vector.shape_cast %81 : vector<1x8x128xbf16> to vector<8x128xbf16>
    %83 = arith.index_cast %c1_i32 : i32 to index
    %c0_35 = arith.constant 0 : index
    %c0_36 = arith.constant 0 : index
    %84 = vector.load %arg10[%83, %c0_35, %c0_36] : memref<4x128x128xbf16, #tpu.memory_space<vmem>>, vector<1x128x128xbf16>
    %85 = vector.shape_cast %84 : vector<1x128x128xbf16> to vector<128x128xbf16>
    %cst_37 = arith.constant dense<0.000000e+00> : vector<8x128xf32>
    %86 = tpu.matmul %82, %85, %cst_37 {dimension_numbers = #tpu.dot_dimension_numbers<[1], [0], [0], [1], [0, 0, 1, 1], [], []>} : vector<8x128xbf16>, vector<128x128xbf16>, vector<8x128xf32> -> vector<8x128xf32>
    %87 = arith.addf %46, %86 : vector<8x128xf32>
    %c2_i32 = arith.constant 2 : i32
    %88 = arith.index_cast %c2_i32 : i32 to index
    %89 = arith.index_cast %4 : i32 to index
    %c0_38 = arith.constant 0 : index
    %90 = vector.load %arg13[%88, %89, %c0_38] : memref<12x8x128xbf16, #tpu.memory_space<vmem>>, vector<1x8x128xbf16>
    %91 = vector.shape_cast %90 : vector<1x8x128xbf16> to vector<8x128xbf16>
    %c4_i32_39 = arith.constant 4 : i32
    %92 = arith.addi %c4_i32_39, %c2_i32 : i32
    %93 = arith.index_cast %92 : i32 to index
    %c0_40 = arith.constant 0 : index
    %c0_41 = arith.constant 0 : index
    %94 = vector.load %arg13[%93, %c0_40, %c0_41] : memref<12x8x128xbf16, #tpu.memory_space<vmem>>, vector<1x8x128xbf16>
    %95 = vector.shape_cast %94 : vector<1x8x128xbf16> to vector<8x128xbf16>
    %c8_i32_42 = arith.constant 8 : i32
    %96 = arith.addi %c8_i32_42, %c2_i32 : i32
    %97 = arith.index_cast %96 : i32 to index
    %c0_43 = arith.constant 0 : index
    %c0_44 = arith.constant 0 : index
    %98 = vector.load %arg13[%97, %c0_43, %c0_44] : memref<12x8x128xbf16, #tpu.memory_space<vmem>>, vector<1x8x128xbf16>
    %99 = vector.shape_cast %98 : vector<1x8x128xbf16> to vector<8x128xbf16>
    %cst_45 = arith.constant dense<0.000000e+00> : vector<8x8xf32>
    %100 = tpu.matmul %91, %95, %cst_45 {dimension_numbers = #tpu.dot_dimension_numbers<[1], [1], [0], [0], [0, 0, 1, 0], [], []>} : vector<8x128xbf16>, vector<8x128xbf16>, vector<8x8xf32> -> vector<8x8xf32>
    %cst_46 = arith.constant dense<0xFF800000> : vector<8xf32>
    %101 = vector.multi_reduction <maximumf>, %100, %cst_46 [1] : vector<8x8xf32> to vector<8xf32>
    %102 = vector.shape_cast %101 : vector<8xf32> to vector<8x1xf32>
    %103 = vector.broadcast %102 : vector<8x1xf32> to vector<8x8xf32>
    %104 = arith.subf %100, %103 : vector<8x8xf32>
    %105 = math.exp %104 : vector<8x8xf32>
    %cst_47 = arith.constant dense<0.000000e+00> : vector<8xf32>
    %106 = vector.multi_reduction <add>, %105, %cst_47 [1] : vector<8x8xf32> to vector<8xf32>
    %107 = vector.shape_cast %106 : vector<8xf32> to vector<8x1xf32>
    %108 = tpu.reciprocal %107 {approx = true} : vector<8x1xf32> -> vector<8x1xf32>
    %109 = vector.broadcast %108 : vector<8x1xf32> to vector<8x8xf32>
    %110 = arith.mulf %105, %109 : vector<8x8xf32>
    %111 = arith.truncf %110 : vector<8x8xf32> to vector<8x8xbf16>
    %cst_48 = arith.constant dense<0.000000e+00> : vector<8x128xf32>
    %112 = tpu.matmul %111, %99, %cst_48 {dimension_numbers = #tpu.dot_dimension_numbers<[1], [0], [0], [1], [0, 0, 1, 1], [], []>} : vector<8x8xbf16>, vector<8x128xbf16>, vector<8x128xf32> -> vector<8x128xf32>
    %113 = arith.truncf %112 : vector<8x128xf32> to vector<8x128xbf16>
    %114 = arith.index_cast %c2_i32 : i32 to index
    %c0_49 = arith.constant 0 : index
    %c0_50 = arith.constant 0 : index
    %115 = vector.load %arg9[%114, %c0_49, %c0_50] : memref<4x128x128xbf16, #tpu.memory_space<vmem>>, vector<1x128x128xbf16>
    %116 = vector.shape_cast %115 : vector<1x128x128xbf16> to vector<128x128xbf16>
    %cst_51 = arith.constant dense<0.000000e+00> : vector<8x128xf32>
    %117 = tpu.matmul %113, %116, %cst_51 {dimension_numbers = #tpu.dot_dimension_numbers<[1], [0], [0], [1], [0, 0, 1, 1], [], []>} : vector<8x128xbf16>, vector<128x128xbf16>, vector<8x128xf32> -> vector<8x128xf32>
    %118 = arith.addf %77, %117 : vector<8x128xf32>
    %c8_i32_52 = arith.constant 8 : i32
    %119 = arith.addi %c8_i32_52, %c2_i32 : i32
    %120 = arith.index_cast %119 : i32 to index
    %121 = arith.index_cast %4 : i32 to index
    %c0_53 = arith.constant 0 : index
    %122 = vector.load %arg13[%120, %121, %c0_53] : memref<12x8x128xbf16, #tpu.memory_space<vmem>>, vector<1x8x128xbf16>
    %123 = vector.shape_cast %122 : vector<1x8x128xbf16> to vector<8x128xbf16>
    %124 = arith.index_cast %c2_i32 : i32 to index
    %c0_54 = arith.constant 0 : index
    %c0_55 = arith.constant 0 : index
    %125 = vector.load %arg10[%124, %c0_54, %c0_55] : memref<4x128x128xbf16, #tpu.memory_space<vmem>>, vector<1x128x128xbf16>
    %126 = vector.shape_cast %125 : vector<1x128x128xbf16> to vector<128x128xbf16>
    %cst_56 = arith.constant dense<0.000000e+00> : vector<8x128xf32>
    %127 = tpu.matmul %123, %126, %cst_56 {dimension_numbers = #tpu.dot_dimension_numbers<[1], [0], [0], [1], [0, 0, 1, 1], [], []>} : vector<8x128xbf16>, vector<128x128xbf16>, vector<8x128xf32> -> vector<8x128xf32>
    %128 = arith.addf %87, %127 : vector<8x128xf32>
    %c3_i32 = arith.constant 3 : i32
    %129 = arith.index_cast %c3_i32 : i32 to index
    %130 = arith.index_cast %4 : i32 to index
    %c0_57 = arith.constant 0 : index
    %131 = vector.load %arg13[%129, %130, %c0_57] : memref<12x8x128xbf16, #tpu.memory_space<vmem>>, vector<1x8x128xbf16>
    %132 = vector.shape_cast %131 : vector<1x8x128xbf16> to vector<8x128xbf16>
    %c4_i32_58 = arith.constant 4 : i32
    %133 = arith.addi %c4_i32_58, %c3_i32 : i32
    %134 = arith.index_cast %133 : i32 to index
    %c0_59 = arith.constant 0 : index
    %c0_60 = arith.constant 0 : index
    %135 = vector.load %arg13[%134, %c0_59, %c0_60] : memref<12x8x128xbf16, #tpu.memory_space<vmem>>, vector<1x8x128xbf16>
    %136 = vector.shape_cast %135 : vector<1x8x128xbf16> to vector<8x128xbf16>
    %c8_i32_61 = arith.constant 8 : i32
    %137 = arith.addi %c8_i32_61, %c3_i32 : i32
    %138 = arith.index_cast %137 : i32 to index
    %c0_62 = arith.constant 0 : index
    %c0_63 = arith.constant 0 : index
    %139 = vector.load %arg13[%138, %c0_62, %c0_63] : memref<12x8x128xbf16, #tpu.memory_space<vmem>>, vector<1x8x128xbf16>
    %140 = vector.shape_cast %139 : vector<1x8x128xbf16> to vector<8x128xbf16>
    %cst_64 = arith.constant dense<0.000000e+00> : vector<8x8xf32>
    %141 = tpu.matmul %132, %136, %cst_64 {dimension_numbers = #tpu.dot_dimension_numbers<[1], [1], [0], [0], [0, 0, 1, 0], [], []>} : vector<8x128xbf16>, vector<8x128xbf16>, vector<8x8xf32> -> vector<8x8xf32>
    %cst_65 = arith.constant dense<0xFF800000> : vector<8xf32>
    %142 = vector.multi_reduction <maximumf>, %141, %cst_65 [1] : vector<8x8xf32> to vector<8xf32>
    %143 = vector.shape_cast %142 : vector<8xf32> to vector<8x1xf32>
    %144 = vector.broadcast %143 : vector<8x1xf32> to vector<8x8xf32>
    %145 = arith.subf %141, %144 : vector<8x8xf32>
    %146 = math.exp %145 : vector<8x8xf32>
    %cst_66 = arith.constant dense<0.000000e+00> : vector<8xf32>
    %147 = vector.multi_reduction <add>, %146, %cst_66 [1] : vector<8x8xf32> to vector<8xf32>
    %148 = vector.shape_cast %147 : vector<8xf32> to vector<8x1xf32>
    %149 = tpu.reciprocal %148 {approx = true} : vector<8x1xf32> -> vector<8x1xf32>
    %150 = vector.broadcast %149 : vector<8x1xf32> to vector<8x8xf32>
    %151 = arith.mulf %146, %150 : vector<8x8xf32>
    %152 = arith.truncf %151 : vector<8x8xf32> to vector<8x8xbf16>
    %cst_67 = arith.constant dense<0.000000e+00> : vector<8x128xf32>
    %153 = tpu.matmul %152, %140, %cst_67 {dimension_numbers = #tpu.dot_dimension_numbers<[1], [0], [0], [1], [0, 0, 1, 1], [], []>} : vector<8x8xbf16>, vector<8x128xbf16>, vector<8x128xf32> -> vector<8x128xf32>
    %154 = arith.truncf %153 : vector<8x128xf32> to vector<8x128xbf16>
    %155 = arith.index_cast %c3_i32 : i32 to index
    %c0_68 = arith.constant 0 : index
    %c0_69 = arith.constant 0 : index
    %156 = vector.load %arg9[%155, %c0_68, %c0_69] : memref<4x128x128xbf16, #tpu.memory_space<vmem>>, vector<1x128x128xbf16>
    %157 = vector.shape_cast %156 : vector<1x128x128xbf16> to vector<128x128xbf16>
    %cst_70 = arith.constant dense<0.000000e+00> : vector<8x128xf32>
    %158 = tpu.matmul %154, %157, %cst_70 {dimension_numbers = #tpu.dot_dimension_numbers<[1], [0], [0], [1], [0, 0, 1, 1], [], []>} : vector<8x128xbf16>, vector<128x128xbf16>, vector<8x128xf32> -> vector<8x128xf32>
    %159 = arith.addf %118, %158 : vector<8x128xf32>
    %c8_i32_71 = arith.constant 8 : i32
    %160 = arith.addi %c8_i32_71, %c3_i32 : i32
    %161 = arith.index_cast %160 : i32 to index
    %162 = arith.index_cast %4 : i32 to index
    %c0_72 = arith.constant 0 : index
    %163 = vector.load %arg13[%161, %162, %c0_72] : memref<12x8x128xbf16, #tpu.memory_space<vmem>>, vector<1x8x128xbf16>
    %164 = vector.shape_cast %163 : vector<1x8x128xbf16> to vector<8x128xbf16>
    %165 = arith.index_cast %c3_i32 : i32 to index
    %c0_73 = arith.constant 0 : index
    %c0_74 = arith.constant 0 : index
    %166 = vector.load %arg10[%165, %c0_73, %c0_74] : memref<4x128x128xbf16, #tpu.memory_space<vmem>>, vector<1x128x128xbf16>
    %167 = vector.shape_cast %166 : vector<1x128x128xbf16> to vector<128x128xbf16>
    %cst_75 = arith.constant dense<0.000000e+00> : vector<8x128xf32>
    %168 = tpu.matmul %164, %167, %cst_75 {dimension_numbers = #tpu.dot_dimension_numbers<[1], [0], [0], [1], [0, 0, 1, 1], [], []>} : vector<8x128xbf16>, vector<128x128xbf16>, vector<8x128xf32> -> vector<8x128xf32>
    %169 = arith.addf %128, %168 : vector<8x128xf32>
    %c4_i32_76 = arith.constant 4 : i32
    %c0_77 = arith.constant 0 : index
    %c0_78 = arith.constant 0 : index
    %c0_79 = arith.constant 0 : index
    %170 = vector.load %arg6[%c0_77, %c0_78, %c0_79] : memref<1x1x128xf32, #tpu.memory_space<vmem>>, vector<1x1x128xf32>
    %171 = vector.shape_cast %170 : vector<1x1x128xf32> to vector<1x128xf32>
    %172 = vector.broadcast %171 : vector<1x128xf32> to vector<8x128xf32>
    %173 = arith.mulf %159, %172 : vector<8x128xf32>
    %c0_80 = arith.constant 0 : index
    %c0_81 = arith.constant 0 : index
    %c0_82 = arith.constant 0 : index
    %174 = vector.load %arg7[%c0_80, %c0_81, %c0_82] : memref<1x1x128xf32, #tpu.memory_space<vmem>>, vector<1x1x128xf32>
    %175 = vector.shape_cast %174 : vector<1x1x128xf32> to vector<1x128xf32>
    %176 = vector.broadcast %175 : vector<1x128xf32> to vector<8x128xf32>
    %177 = arith.mulf %169, %176 : vector<8x128xf32>
    %178 = arith.addf %173, %177 : vector<8x128xf32>
    %c0_83 = arith.constant 0 : index
    %c0_84 = arith.constant 0 : index
    %c0_85 = arith.constant 0 : index
    %179 = vector.load %arg3[%c0_83, %c0_84, %c0_85] : memref<1x8x1xf32, #tpu.memory_space<vmem>>, vector<1x8x1xf32>
    %180 = vector.shape_cast %179 : vector<1x8x1xf32> to vector<8x1xf32>
    %181 = vector.broadcast %180 : vector<8x1xf32> to vector<8x128xf32>
    %182 = arith.addf %178, %181 : vector<8x128xf32>
    %c0_86 = arith.constant 0 : index
    %c0_87 = arith.constant 0 : index
    %183 = vector.load %arg11[%c0_86, %c0_87] : memref<1x128xf32, #tpu.memory_space<vmem>>, vector<1x128xf32>
    %184 = vector.broadcast %183 : vector<1x128xf32> to vector<8x128xf32>
    %185 = arith.addf %182, %184 : vector<8x128xf32>
    %cst_88 = arith.constant 0.000000e+00 : f32
    %186 = vector.broadcast %cst_88 : f32 to vector<8x128xf32>
    %187 = arith.cmpf oge, %185, %186 : vector<8x128xf32>
    %cst_89 = arith.constant 2.000000e-01 : f32
    %188 = vector.broadcast %cst_89 : f32 to vector<8x128xf32>
    %189 = arith.mulf %188, %185 : vector<8x128xf32>
    %190 = arith.select %187, %185, %189 : vector<8x128xi1>, vector<8x128xf32>
    %c0_90 = arith.constant 0 : index
    %c0_91 = arith.constant 0 : index
    %c0_92 = arith.constant 0 : index
    %191 = vector.load %arg12[%c0_90, %c0_91, %c0_92] : memref<1x8x128xf32, #tpu.memory_space<vmem>>, vector<1x8x128xf32>
    %192 = vector.shape_cast %191 : vector<1x8x128xf32> to vector<8x128xf32>
    %193 = vector.shape_cast %190 : vector<8x128xf32> to vector<1x8x128xf32>
    tpu.vector_store %arg12[%c0_90, %c0_91, %c0_92], %193 {strides = array<i32>} : memref<1x8x128xf32, #tpu.memory_space<vmem>>, vector<1x8x128xf32>,
    return
  }
  func.func @transform_0(%arg0: i32, %arg1: i32) -> (i32, i32, i32) {
    %c0_i32 = arith.constant 0 : i32
    %c0_i32_0 = arith.constant 0 : i32
    %c0_i32_1 = arith.constant 0 : i32
    return %arg0, %c0_i32, %c0_i32_0 : i32, i32, i32
  }
  func.func @transform_1(%arg0: i32, %arg1: i32) -> (i32, i32, i32) {
    %c0_i32 = arith.constant 0 : i32
    %c0_i32_0 = arith.constant 0 : i32
    return %arg0, %arg1, %c0_i32 : i32, i32, i32
  }
  func.func @transform_2(%arg0: i32, %arg1: i32) -> (i32, i32, i32) {
    %c0_i32 = arith.constant 0 : i32
    %c0_i32_0 = arith.constant 0 : i32
    %c0_i32_1 = arith.constant 0 : i32
    return %arg0, %c0_i32, %c0_i32_0 : i32, i32, i32
  }
  func.func @transform_3(%arg0: i32, %arg1: i32) -> (i32, i32, i32) {
    %c0_i32 = arith.constant 0 : i32
    %c0_i32_0 = arith.constant 0 : i32
    %c0_i32_1 = arith.constant 0 : i32
    return %arg0, %c0_i32, %c0_i32_0 : i32, i32, i32
  }
  func.func @transform_4(%arg0: i32, %arg1: i32) -> (i32, i32, i32) {
    %c0_i32 = arith.constant 0 : i32
    %c0_i32_0 = arith.constant 0 : i32
    %c0_i32_1 = arith.constant 0 : i32
    return %arg0, %c0_i32, %c0_i32_0 : i32, i32, i32
  }
  func.func @transform_5(%arg0: i32, %arg1: i32) -> (i32, i32, i32) {
    %c0_i32 = arith.constant 0 : i32
    %c0_i32_0 = arith.constant 0 : i32
    %c0_i32_1 = arith.constant 0 : i32
    return %arg0, %c0_i32, %c0_i32_0 : i32, i32, i32
  }
  func.func @transform_6(%arg0: i32, %arg1: i32) -> (i32, i32) {
    %c0_i32 = arith.constant 0 : i32
    %c0_i32_0 = arith.constant 0 : i32
    %c0_i32_1 = arith.constant 0 : i32
    return %c0_i32, %c0_i32_0 : i32, i32
  }
  func.func @transform_7(%arg0: i32, %arg1: i32) -> (i32, i32, i32) {
    %c0_i32 = arith.constant 0 : i32
    %c0_i32_0 = arith.constant 0 : i32
    %c0_i32_1 = arith.constant 0 : i32
    %c0_i32_2 = arith.constant 0 : i32
    return %c0_i32, %c0_i32_0, %c0_i32_1 : i32, i32, i32
  }
  func.func @transform_8(%arg0: i32, %arg1: i32) -> (i32, i32, i32) {
    %c0_i32 = arith.constant 0 : i32
    %c0_i32_0 = arith.constant 0 : i32
    %c0_i32_1 = arith.constant 0 : i32
    %c0_i32_2 = arith.constant 0 : i32
    return %c0_i32, %c0_i32_0, %c0_i32_1 : i32, i32, i32
  }
  func.func @transform_9(%arg0: i32, %arg1: i32) -> (i32, i32) {
    %c0_i32 = arith.constant 0 : i32
    %c0_i32_0 = arith.constant 0 : i32
    %c0_i32_1 = arith.constant 0 : i32
    return %c0_i32, %c0_i32_0 : i32, i32
  }
  func.func @transform_10(%arg0: i32, %arg1: i32) -> (i32, i32, i32) {
    %c0_i32 = arith.constant 0 : i32
    %c0_i32_0 = arith.constant 0 : i32
    return %arg0, %arg1, %c0_i32 : i32, i32, i32
  }
}

</mosaic_0001>

<bundles_post_ra>
// kernel: tpu_custom_call.1
= control target key start
LH: loop header
LB: loop body
LE: loop exit
PB: predicated region body
PF: predicated region fallthrough
CT: control target
= control target key end

     0   :  { %s4538_s0 = inlined_call_operand.vmem [shape: bf16[2,8,128], index: 0, kind: input, shape index: {}]   ;;  %s4539_s1 = inlined_call_operand.vmem [shape: f32[2,8,1], index: 1, kind: input, shape index: {}]   ;;  %s4540_s2 = inlined_call_operand.vmem [shape: f32[2,1,128], index: 2, kind: input, shape index: {}]   ;;  %s4541_s3 = inlined_call_operand.hbm [shape: f32[2,1,1536], index: 3, kind: input, shape index: {}]   ;;  %s4542_s4 = inlined_call_operand.vmem [shape: f32[2,1,128], index: 4, kind: input, shape index: {}]   ;;  %s4543_s5 = inlined_call_operand.vmem [shape: f32[2,1,128], index: 5, kind: input, shape index: {}]   ;;  %s4544_s6 = inlined_call_operand.hbm [shape: bf16[128,1536], index: 6, kind: input, shape index: {}]   ;;  %s4545_s7 = inlined_call_operand.hbm [shape: bf16[4,128,128], index: 7, kind: input, shape index: {}]   ;;  %s4546_s8 = inlined_call_operand.hbm [shape: bf16[4,128,128], index: 8, kind: input, shape index: {}]   ;;  %s4547_s9 = inlined_call_operand.vmem [shape: f32[1,128], index: 9, kind: input, shape index: {}]   ;;  %s4548_s10 = inlined_call_operand.hbm [shape: f32[2,8,128], index: 10, kind: output, shape index: {}]  }
   0x1   :  { %4555 = sst [smem:[#allocation18_spill]] %s4544_s6 }
   0x2   :  { %4556 = sst [smem:[#allocation19_spill]] %s4545_s7 }
   0x3   :  { %4557 = sst [smem:[#allocation20_spill]] %s4548_s10 }
   0x4   :  { %15 = vsyncpa [#allocation4], 0 }
   0x5   :  { %17 = vsyncpa [#allocation4 + $0x1], 0 }
   0x6   :  { %18 = vsyncpa [#allocation7], 0 }
   0x7   :  { %19 = vsyncpa [#allocation10], 0 }
   0x8   :  { %20 = vsyncpa [#allocation5], 0 }
   0x9   :  { %22 = vsyncpa [#allocation5 + $0x1], 0  ;;  %s4157_s13 = smov 0   ;;  %s4159_s14 = smov 0  }
   0xa   :  { %s4161_s15 = smov 0   ;;  %s4163_s16 = smov 0  }
   0xb   :  { %s4165_s17 = smov 0   ;;  %s4167_s18 = smov 0  }
   0xc LB: > { %4558 = sst [smem:[#allocation16_spill]] %s4068_s13  ;;  %s3044_s19 = sadd.s32 4294967295, %s4088_s18   ;;  %s4088_s18 = sphi %s4167_s18, %s28_s18   ;;  %s4084_s17 = sphi %s4165_s17, %s4581_s17   ;;  %s4080_s16 = sphi %s4163_s16, %s4580_s16   ;;  %s4076_s15 = sphi %s4161_s15, %s4579_s15   ;;  %s4072_s14 = sphi %s4159_s14, %s4578_s14   ;;  %s4068_s13 = sphi %s4157_s13, %s4577_s13  }
   0xd   : > { %s3045_s20 = sadd.s32 4294967294, %s4088_s18   ;;  %p140_p0 = scmp.ne.s32.totalorder %s4072_s14, %s4068_s13 }
   0xe   : > { %p4191_p1 = scmp.eq.s32.totalorder %s3044_s19, 0  ;;  %p4195_p2 = scmp.eq.s32.totalorder %s3044_s19, 1 }
   0xf   : > { %p308_p3 = scmp.eq.s32.totalorder %s3045_s20, 1  ;;  %p3046_p5 = scmp.ge.s32.totalorder %s4088_s18, 1 }
  0x10   : > { %s4559_s21 = scalar_select %p4191_p1, 1, 0 }
  0x11   : > { %p4201_p4 = por %p4191_p1, %p140_p0  ;;  %p4206_p6 = por %p308_p3, %p140_p0 }
  0x12   : > { %p315_p7 = scmp.lt.s32.totalorder %s4088_s18, 3  ;;  %s4090_s26 = smov [#allocation6]  }
  0x13   : > { %s4561_s23 = scalar_select %p4201_p4, 1, 0 }
  0x14   : > { %s4562_s24 = scalar_select %p4206_p6, 1, 0 }
  0x15   : > { %p4211_p8 = pnand %p3046_p5, %p315_p7  ;;  %s327_s27 = sshll.u32 %s4090_s26, 4  ;;  %s328_s27 = int_to_ptr.vmem [resolvable:$true] %s327_s27 }
  0x16   : > { %4563 = sst [smem:[#allocation17_spill]] %s4562_s24  ;;  %s4091_s29 = smov [#allocation8]  }
  0x17   : > { %p3583_p9 = pneg %p4211_p8  ;;  %s340_s30 = sshll.u32 %s4091_s29, 4  ;;  %s341_s30 = int_to_ptr.vmem [resolvable:$true] %s340_s30 }
  0x18   : > { %s3905_s11 = scalar_lea.vmem %s328_s27, 12288  ;;  %p3913_p5 = scmp.lt.s32.totalorder %s328_s27, %s328_s27 }
  0x19   : > { %p4220_p11 = pnand %p3583_p9, %p4191_p1  ;;  %p3906_p13 = scmp.ne.s32.totalorder %s328_s27, %s3905_s11 }
  0x1a   : > { %p3914_p7 = scmp.lt.s32.totalorder %s3905_s11, %s3905_s11 }
  0x1b   : > { %p3896_p12 = pneg %p4220_p11 }
  0x1c   : > { %p3915_p10 = por %p3914_p7, %p3913_p5 }
  0x1d   : > { %p3908_p0 = pnand %p3906_p13, %p3896_p12 }
  0x1f   : > { %p3909_p3 = pneg %p3908_p0 }
  0x21   : > { %p3916_p9 = pnand %p3915_p10, %p3909_p3 }
  0x23   : > { %3919 = shalt.err (!%p3916_p9)
}
  0x24   : > { %s4092_s12 = smov 768   ;;  %s4093_s19 = smov 48  }
  0x25   : > { %s4566_s6 = sld [smem:[#allocation18_spill]]  ;;  %s3931_s29 = scalar_lea.vmem %s341_s30, 4096 }
  0x26   : > { %p3932_p6 = scmp.ne.s32.totalorder %s341_s30, %s3931_s29  ;;  %p3939_p1 = scmp.lt.s32.totalorder %s341_s30, %s341_s30 }
  0x27   : > { %p3940_p4 = scmp.lt.s32.totalorder %s3931_s29, %s3931_s29 }
  0x28   : > { %p3934_p13 = pnand %p3932_p6, %p3896_p12 }
  0x29   : > { %p3941_p5 = por %p3940_p4, %p3939_p1 }
  0x2a   : > { %p3935_p0 = pneg %p3934_p13 }
  0x2b   : > { %3586 = dma.hbm_to_vmem [thread:$0]  (!%p4220_p11), %s4566_s6, 12288, %s328_s27, [#allocation7], %s4092_s12, %s4092_s12, %s4093_s19  }
  0x2c   : > { %p3942_p10 = pnand %p3941_p5, %p3935_p0 }
  0x2e   : > { %3945 = shalt.err (!%p3942_p10)
}
  0x2f   : > { %s4094_s11 = smov 64   ;;  %s4095_s24 = smov 4  }
  0x30   : > { %s4567_s7 = sld [smem:[#allocation19_spill]]  ;;  %s4096_s27 = smov [#allocation9]  }
  0x31   : > { %s353_s12 = sshll.u32 %s4096_s27, 4  ;;  %s354_s12 = int_to_ptr.vmem [resolvable:$true] %s353_s12 }
  0x32   : > { %s3957_s19 = scalar_lea.vmem %s354_s12, 4096  ;;  %p3965_p4 = scmp.lt.s32.totalorder %s354_s12, %s354_s12 }
  0x33   : > { %p3958_p6 = scmp.ne.s32.totalorder %s354_s12, %s3957_s19  ;;  %p3966_p7 = scmp.lt.s32.totalorder %s3957_s19, %s3957_s19 }
  0x35   : > { %p3960_p3 = pnand %p3958_p6, %p3896_p12  ;;  %p3967_p9 = por %p3966_p7, %p3965_p4 }
  0x36   : > { %3589 = dma.hbm_to_vmem [thread:$0]  (!%p4220_p11), %s4567_s7, 4096, %s341_s30, [#allocation7], %s4094_s11, %s4094_s11, %s4095_s24  }
  0x37   : > { %p3961_p1 = pneg %p3960_p3 }
  0x39   : > { %p3968_p13 = pnand %p3967_p9, %p3961_p1 }
  0x3b   : > { %3971 = shalt.err (!%p3968_p13)
}
  0x3c   : > { %3592 = dma.hbm_to_vmem [thread:$0]  (!%p4220_p11), %s4546_s8, 4096, %s354_s12, [#allocation10], %s4094_s11, %s4094_s11, %s4095_s24  }
  0x3d   : > { %s40_s10 = sadd.s32 1, %s4084_s17  ;;  %s127_s13 = sadd.s32 1, %s4076_s15 }
  0x3e   : > { %p42_p12 = scmp.ge.s32.totalorder %s40_s10, 2  ;;  %p134_p0 = scmp.ne.s32.totalorder %s4076_s15, %s4072_s14 }
  0x3f   : > { %p135_p5 = scmp.eq.s32.totalorder %s4088_s18, 0  ;;  %p3604_p3 = scmp.lt.s32.totalorder %s4088_s18, 2 }
  0x40   : > { %s4583_s10 = smov (%p42_p12, %s40_s10), 0  ;;  %p4259_p6 = por %p4195_p2, %p134_p0 }
  0x41   : > { %p136_p10 = por %p135_p5, %p134_p0  ;;  %s124_s30 = ssub.s32 %s4084_s17, %s4583_s10 }
  0x42   : > { %p125_p1 = scmp.eq.s32.totalorder %s124_s30, 0  ;;  %s393_s29 = sand.u32 1, %s4076_s15  }
  0x43   : > { %s3564_s27 = smul.u32 12, %s393_s29  ;;  %p4271_p11 = pnand %p3604_p3, %p136_p10 }
  0x44   : > { %s4268_s24 = scalar_select %p125_p1, %s4076_s15, %s127_s13  }
  0x45   : > { %s3565_s11 = smul.u32 192, %s4084_s17  ;;  %s397_s12 = scalar_lea.vmem [#allocation3], %s3564_s27 }
  0x46   : > { %s405_s19 = sshll.u32 %s397_s12, 4  ;;  %s394_s7 = scalar_lea.sflag [#allocation4], %s393_s29  ;;  %s406_s19 = int_to_ptr.vmem [resolvable:$true] %s405_s19 }
  0x47   : > { %s403_s6 = scalar_lea.hbm %s4541_s3, %s3565_s11  ;;  %p3974_p2 = pneg %p4271_p11 }
  0x48   : > { %s3985_s30 = scalar_lea.vmem %s406_s19, 192  ;;  %s4097_s13 = smov [#allocation3]  }
  0x49   : > { %p3986_p4 = scmp.ne.s32.totalorder %s406_s19, %s3985_s30  ;;  %s3990_s27 = sshll.u32 %s4097_s13, 4  ;;  %s3991_s27 = int_to_ptr.vmem [resolvable:$false] %s3990_s27 }
  0x4a   : > { %s3992_s12 = scalar_lea.vmem %s3991_s27, 384  ;;  %p3993_p13 = scmp.lt.s32.totalorder %s406_s19, %s3991_s27 }
  0x4b   : > { %p3988_p7 = pnand %p3986_p4, %p3974_p2  ;;  %p3994_p12 = scmp.lt.s32.totalorder %s3992_s12, %s3985_s30 }
  0x4d   : > { %p3989_p9 = pneg %p3988_p7  ;;  %p3995_p0 = por %p3994_p12, %p3993_p13 }
  0x4f   : > { %p3996_p5 = pnand %p3995_p0, %p3989_p9 }
  0x51   : > { %3999 = shalt.err (!%p3996_p5)
}
  0x52   : > { %3596 = dma.hbm_to_vmem [thread:$0]  (!%p4271_p11), %s403_s6, 192, %s406_s19, %s394_s7  }
  0x53   : > { %426 = sbr.rel (%p4211_p8) target bundleno = 3037 (0xbdd), region = 60  ;;  %s4285_s29 = sand.u32 (!%p4211_p8), 1, %s4072_s14  }
  0x54   : > { %s3566_s11 = smul.u32 (!%p4211_p8), 12, %s4285_s29  ;;  %s429_s26 = scalar_lea.sflag (!%p4211_p8), [#allocation4], %s4285_s29 }
  0x55   : > { %p4570_p10 = scmp.ne.s32.totalorder (!%p4211_p8), %s4561_s23, 0 }
  0x56   : > { %s4289_s22 = scalar_lea.vmem (!%p4211_p8), [#allocation3], %s3566_s11 }
  0x58   : > { %4051 = dma.done.wait (%p4570_p10), %s429_s26, 192  }
  0x59   : > { %4053 = vsyncadd (%p4570_p10), %s429_s26, 4294967104  ;;  %p4571_p3 = scmp.ne.s32.totalorder %s4559_s21, 0 }
  0x5b   : > { %4055 = dma.done.wait (%p4571_p3), [#allocation7], 16384  }
  0x5c   : > { %4057 = vsyncadd (%p4571_p3), [#allocation7], 4294950912 }
  0x5d   : > { %4059 = dma.done.wait (%p4571_p3), [#allocation10], 4096  }
  0x5e   : > { %4061 = vsyncadd (%p4571_p3), [#allocation10], 4294963200  ;;  %p501_p8 = scmp.lt.s32.totalorder %s4080_s16, 1  ;;  %v3668_v4 = vld [vmem:[#allocation6 + $0x2a4] ss:$48 sps:$4 sm:$0xff]   ;;  %v542_v16 = vlaneseq  ;;  %v4098_v45 = vmov 0  }
  0x5f   : > { %v3670_v5 = vld [vmem:[#allocation6 + $0x2ac] ss:$48 sps:$4 sm:$0xff]   ;;  %v3672_v6 = vld [vmem:[#allocation6 + $0x2a0] ss:$48 sps:$4 sm:$0xff]   ;;  %v3673_v7 = vld [vmem:[#allocation6 + $0x2a8] ss:$48 sps:$4 sm:$0xff]   ;;  %1130 = vmatprep.subr.bf16.mxu0 %v3668_v4  ;;  %1162 = vmatprep.mubr.bf16.mxu0 %v4098_v45 }
  0x60   : > { %s4305_s6 = scalar_select %p501_p8, %s4080_s16, 1  ;;  %v3674_v8 = vld [vmem:[#allocation6 + $0x244] ss:$48 sps:$4 sm:$0xff]   ;;  %v3676_v9 = vld [vmem:[#allocation6 + $0x24c] ss:$48 sps:$4 sm:$0xff]   ;;  %1171 = vmatprep.subr.bf16.mxu1 %v3670_v5  ;;  %1131 = vmatpush1.bf16.msra.mxu0 %v3672_v6  ;;  %v543_v17 = vand.u32 127, %v542_v16 }
  0x61   : > { %v3678_v10 = vld [vmem:[#allocation6 + $0x240] ss:$48 sps:$4 sm:$0xff]   ;;  %1172 = vmatpush1.bf16.msra.mxu1 %v3673_v7  ;;  %v3679_v11 = vld [vmem:[#allocation6 + $0x248] ss:$48 sps:$4 sm:$0xff]   ;;  %v3680_v12 = vld [vmem:[#allocation6 + $0x1e4] ss:$48 sps:$4 sm:$0xff]   ;;  %1132 = vmatprep.subr.bf16.mxu0 %v3674_v8 }
  0x62   : > { %s3057_s7 = sshll.u32 %s4305_s6, 2  ;;  %s514_s19 = scalar_lea.vmem %s4540_s2, %s4305_s6  ;;  %v3682_v13 = vld [vmem:[#allocation6 + $0x1ec] ss:$48 sps:$4 sm:$0xff]   ;;  %1173 = vmatprep.subr.bf16.mxu1 %v3676_v9  ;;  %v3684_v14 = vld [vmem:[#allocation6 + $0x1e0] ss:$48 sps:$4 sm:$0xff]   ;;  %vm544_vm0 = vcmp.lt.s32.totalorder %v543_v17, 32  ;;  %1203 = vmatprep.mubr.bf16.mxu1 %v4098_v45 }
  0x63   : > { %s504_s13 = scalar_lea.vmem %s4538_s0, %s3057_s7  ;;  %v3059_v0 = vld [vmem:[%s514_s19] ss:$0 sm:$0xff]  ;;  %v3686_v23 = vld [vmem:[#allocation6 + $0x184] ss:$48 sps:$4 sm:$0xff]   ;;  %v3688_v24 = vld [vmem:[#allocation6 + $0x18c] ss:$48 sps:$4 sm:$0xff]   ;;  %3667 = vset.pattern.permute.xlu0 %v4098_v45  ;;  %s520_s7 = scalar_lea.vmem %s4543_s5, %s4305_s6 }
  0x64   : > { %v529_v1 = vld [vmem:[%s504_s13] sm:$0xf]  ;;  %1133 = vmatpush1.bf16.msra.mxu0 %v3678_v10  ;;  %v3690_v25 = vld [vmem:[#allocation6 + $0x180] ss:$48 sps:$4 sm:$0xff]   ;;  %v3692_v27 = vld [vmem:[#allocation6 + $0x124] ss:$48 sps:$4 sm:$0xff]   ;;  %s517_s19 = scalar_lea.vmem %s4542_s4, %s4305_s6 }
  0x65   : > { %v530_v2 = vunpack.c.l.bf16 %v529_v1  ;;  %v3685_v15 = vld [vmem:[#allocation6 + $0x1e8] ss:$48 sps:$4 sm:$0xff]   ;;  %1174 = vmatpush1.bf16.msra.mxu1 %v3679_v11  ;;  %1134 = vmatprep.subr.bf16.mxu0 %v3680_v12  ;;  %v3694_v28 = vld [vmem:[#allocation6 + $0x12c] ss:$48 sps:$4 sm:$0xff]   ;;  %v3696_v29 = vld [vmem:[#allocation6 + $0x120] ss:$48 sps:$4 sm:$0xff]  }
  0x66   : > { %1175 = vmatprep.subr.bf16.mxu1 %v3682_v13  ;;  %v3691_v26 = vld [vmem:[#allocation6 + $0x188] ss:$48 sps:$4 sm:$0xff]   ;;  %v3698_v31 = vld [vmem:[#allocation6 + $0xc4] ss:$48 sps:$4 sm:$0xff]   ;;  %v3700_v32 = vld [vmem:[#allocation6 + $0xcc] ss:$48 sps:$4 sm:$0xff]  }
  0x67   : > { %v537_v3 = vmul.f32 %v3059_v0, %v530_v2  ;;  %v3697_v30 = vld [vmem:[#allocation6 + $0x128] ss:$48 sps:$4 sm:$0xff]   ;;  %v3702_v33 = vld [vmem:[#allocation6 + $0xc0] ss:$48 sps:$4 sm:$0xff]   ;;  %v3704_v35 = vld [vmem:[#allocation6 + $0x64] ss:$48 sps:$4 sm:$0xff]  }
  0x68   : > { %1135 = vmatpush1.bf16.msra.mxu0 %v3684_v14  ;;  %v3703_v34 = vld [vmem:[#allocation6 + $0xc8] ss:$48 sps:$4 sm:$0xff]   ;;  %v3706_v36 = vld [vmem:[#allocation6 + $0x6c] ss:$48 sps:$4 sm:$0xff]   ;;  %v3708_v37 = vld [vmem:[#allocation6 + $0x60] ss:$48 sps:$4 sm:$0xff]  }
  0x69   : > { %538 = vadd.xlane.f32.xlu0 %v537_v3  ;;  %1176 = vmatpush1.bf16.msra.mxu1 %v3685_v15  ;;  %v3709_v38 = vld [vmem:[#allocation6 + $0x68] ss:$48 sps:$4 sm:$0xff]   ;;  %v3710_v39 = vld [vmem:[#allocation6 + $0x4] ss:$48 sps:$4 sm:$0xff]   ;;  %v3712_v40 = vld [vmem:[#allocation6 + $0xc] ss:$48 sps:$4 sm:$0xff]  }
  0x6a   : > { %1136 = vmatprep.subr.bf16.mxu0 %v3686_v23  ;;  %1177 = vmatprep.subr.bf16.mxu1 %v3688_v24  ;;  %v3714_v41 = vld [vmem:[#allocation6] ss:$48 sps:$4 sm:$0xff]   ;;  %v3715_v42 = vld [vmem:[#allocation6 + $0x8] ss:$48 sps:$4 sm:$0xff]   ;;  %v3718_v43 = vld [vmem:[#allocation6 + $0x2b4] ss:$48 sps:$4 sm:$0xff]  }
  0x6b   : > { %v3721_v44 = vld [vmem:[#allocation6 + $0x2bc] ss:$48 sps:$4 sm:$0xff]   ;;  %v3716_v51 = vld [vmem:[#allocation6 + $0x2b0] ss:$48 sps:$4 sm:$0xff]   ;;  %v3719_v52 = vld [vmem:[#allocation6 + $0x2b8] ss:$48 sps:$4 sm:$0xff]  }
  0x6c   : > { %1137 = vmatpush1.bf16.msra.mxu0 %v3690_v25  ;;  %v3724_v54 = vld [vmem:[#allocation6 + $0x254] ss:$48 sps:$4 sm:$0xff]   ;;  %v3727_v55 = vld [vmem:[#allocation6 + $0x25c] ss:$48 sps:$4 sm:$0xff]   ;;  %v3722_v56 = vld [vmem:[#allocation6 + $0x250] ss:$48 sps:$4 sm:$0xff]  }
  0x6d   : > { %1178 = vmatpush1.bf16.msra.mxu1 %v3691_v26  ;;  %1138 = vmatprep.subr.bf16.mxu0 %v3692_v27  ;;  %v3725_v57 = vld [vmem:[#allocation6 + $0x258] ss:$48 sps:$4 sm:$0xff]   ;;  %v3730_v58 = vld [vmem:[#allocation6 + $0x1f4] ss:$48 sps:$4 sm:$0xff]   ;;  %v3733_v59 = vld [vmem:[#allocation6 + $0x1fc] ss:$48 sps:$4 sm:$0xff]  }
  0x6e   : > { %1179 = vmatprep.subr.bf16.mxu1 %v3694_v28  ;;  %v3728_v60 = vld [vmem:[#allocation6 + $0x1f0] ss:$48 sps:$4 sm:$0xff]   ;;  %v3731_v61 = vld [vmem:[#allocation6 + $0x1f8] ss:$48 sps:$4 sm:$0xff]   ;;  %v3736_v62 = vld [vmem:[#allocation6 + $0x194] ss:$48 sps:$4 sm:$0xff]  }
  0x6f   : > { %v3739_v63 = vld [vmem:[#allocation6 + $0x19c] ss:$48 sps:$4 sm:$0xff]   ;;  %v3734_v0 = vld [vmem:[#allocation6 + $0x190] ss:$48 sps:$4 sm:$0xff]   ;;  %v3737_v1 = vld [vmem:[#allocation6 + $0x198] ss:$48 sps:$4 sm:$0xff]  }
  0x70   : > { %1139 = vmatpush1.bf16.msra.mxu0 %v3696_v29  ;;  %v3742_v2 = vld [vmem:[#allocation6 + $0x134] ss:$48 sps:$4 sm:$0xff]   ;;  %v3740_v4 = vld [vmem:[#allocation6 + $0x130] ss:$48 sps:$4 sm:$0xff]   ;;  %v3743_v5 = vld [vmem:[#allocation6 + $0x138] ss:$48 sps:$4 sm:$0xff]  }
  0x71   : > { %1180 = vmatpush1.bf16.msra.mxu1 %v3697_v30  ;;  %1140 = vmatprep.subr.bf16.mxu0 %v3698_v31  ;;  %v3748_v6 = vld [vmem:[#allocation6 + $0xd4] ss:$48 sps:$4 sm:$0xff]   ;;  %v3751_v7 = vld [vmem:[#allocation6 + $0xdc] ss:$48 sps:$4 sm:$0xff]   ;;  %v3746_v8 = vld [vmem:[#allocation6 + $0xd0] ss:$48 sps:$4 sm:$0xff]  }
  0x72   : > { %1181 = vmatprep.subr.bf16.mxu1 %v3700_v32  ;;  %v3749_v9 = vld [vmem:[#allocation6 + $0xd8] ss:$48 sps:$4 sm:$0xff]   ;;  %v3754_v10 = vld [vmem:[#allocation6 + $0x74] ss:$48 sps:$4 sm:$0xff]   ;;  %v3757_v11 = vld [vmem:[#allocation6 + $0x7c] ss:$48 sps:$4 sm:$0xff]  }
  0x73   : > { %v3752_v12 = vld [vmem:[#allocation6 + $0x70] ss:$48 sps:$4 sm:$0xff]   ;;  %v3755_v13 = vld [vmem:[#allocation6 + $0x78] ss:$48 sps:$4 sm:$0xff]   ;;  %v3760_v14 = vld [vmem:[#allocation6 + $0x14] ss:$48 sps:$4 sm:$0xff]  }
  0x74   : > { %1141 = vmatpush1.bf16.msra.mxu0 %v3702_v33  ;;  %v3763_v15 = vld [vmem:[#allocation6 + $0x1c] ss:$48 sps:$4 sm:$0xff]   ;;  %v3758_v17 = vld [vmem:[#allocation6 + $0x10] ss:$48 sps:$4 sm:$0xff]   ;;  %v3772_v23 = vld [vmem:[#allocation6 + $0x264] ss:$48 sps:$4 sm:$0xff]  }
  0x75   : > { %1182 = vmatpush1.bf16.msra.mxu1 %v3703_v34  ;;  %1142 = vmatprep.subr.bf16.mxu0 %v3704_v35  ;;  %v3775_v24 = vld [vmem:[#allocation6 + $0x26c] ss:$48 sps:$4 sm:$0xff]   ;;  %v3770_v25 = vld [vmem:[#allocation6 + $0x260] ss:$48 sps:$4 sm:$0xff]   ;;  %v3773_v26 = vld [vmem:[#allocation6 + $0x268] ss:$48 sps:$4 sm:$0xff]  }
  0x76   : > { %1183 = vmatprep.subr.bf16.mxu1 %v3706_v36  ;;  %v3778_v27 = vld [vmem:[#allocation6 + $0x204] ss:$48 sps:$4 sm:$0xff]   ;;  %v3781_v28 = vld [vmem:[#allocation6 + $0x20c] ss:$48 sps:$4 sm:$0xff]   ;;  %v3776_v29 = vld [vmem:[#allocation6 + $0x200] ss:$48 sps:$4 sm:$0xff]  }
  0x77   : > { %v3779_v30 = vld [vmem:[#allocation6 + $0x208] ss:$48 sps:$4 sm:$0xff]   ;;  %v3784_v31 = vld [vmem:[#allocation6 + $0x1a4] ss:$48 sps:$4 sm:$0xff]   ;;  %v3787_v32 = vld [vmem:[#allocation6 + $0x1ac] ss:$48 sps:$4 sm:$0xff]  }
  0x78   : > { %1143 = vmatpush1.bf16.msra.mxu0 %v3708_v37  ;;  %v3782_v33 = vld [vmem:[#allocation6 + $0x1a0] ss:$48 sps:$4 sm:$0xff]   ;;  %v3785_v34 = vld [vmem:[#allocation6 + $0x1a8] ss:$48 sps:$4 sm:$0xff]   ;;  %v3790_v35 = vld [vmem:[#allocation6 + $0x144] ss:$48 sps:$4 sm:$0xff]  }
  0x79   : > { %1184 = vmatpush1.bf16.msra.mxu1 %v3709_v38  ;;  %1144 = vmatprep.subr.bf16.mxu0 %v3710_v39  ;;  %v3793_v36 = vld [vmem:[#allocation6 + $0x14c] ss:$48 sps:$4 sm:$0xff]   ;;  %v3788_v37 = vld [vmem:[#allocation6 + $0x140] ss:$48 sps:$4 sm:$0xff]   ;;  %v3791_v38 = vld [vmem:[#allocation6 + $0x148] ss:$48 sps:$4 sm:$0xff]  }
  0x7a   : > { %1185 = vmatprep.subr.bf16.mxu1 %v3712_v40  ;;  %v3796_v39 = vld [vmem:[#allocation6 + $0xe4] ss:$48 sps:$4 sm:$0xff]   ;;  %v3799_v40 = vld [vmem:[#allocation6 + $0xec] ss:$48 sps:$4 sm:$0xff]   ;;  %vm4100_vm1 = vmmov 0   ;;  %vm1573_vm2 = vcmask 1043456  }
  0x7b   : > { %vm1557_vm3 = vcmask 64512   ;;  %s3058_s21 = sshll.u32 %s4305_s6, 3  ;;  %s3056_s20 = sshll.u32 %s4285_s29, 3 }
  0x7c   : > { %1145 = vmatpush1.bf16.msra.mxu0 %v3714_v41  ;;  %v3794_v41 = vld [vmem:[#allocation6 + $0xe0] ss:$48 sps:$4 sm:$0xff]   ;;  %s511_s11 = scalar_lea.vmem %s4539_s1, %s3058_s21  ;;  %s3235_s6 = sshll.u32 %s4080_s16, 7 }
  0x7d   : > { %1186 = vmatpush1.bf16.msra.mxu1 %v3715_v42  ;;  %1212 = vmatprep.subr.bf16.mxu0 %v3718_v43  ;;  %v3797_v42 = vld [vmem:[#allocation6 + $0xe8] ss:$48 sps:$4 sm:$0xff]   ;;  %v3802_v43 = vld [vmem:[#allocation6 + $0x84] ss:$48 sps:$4 sm:$0xff]   ;;  %s500_s21 = scalar_lea.vmem [#allocation11], %s3056_s20  ;;  %s4572_s26 = sld [smem:[#allocation20_spill]] }
  0x7e   : > { %1253 = vmatprep.subr.bf16.mxu1 %v3721_v44  ;;  %v3805_v44 = vld [vmem:[#allocation6 + $0x8c] ss:$48 sps:$4 sm:$0xff]   ;;  %s2848_s27 = sshll.u32 %s500_s21, 4  ;;  %s4101_s25 = smov [#allocation11]   ;;  %s2849_s27 = int_to_ptr.vmem [resolvable:$true] %s2848_s27 }
  0x7f   : > { %s4000_s23 = scalar_lea.vmem %s2849_s27, 128  ;;  %s4004_s16 = sshll.u32 %s4101_s25, 4  ;;  %s4005_s16 = int_to_ptr.vmem [resolvable:$false] %s4004_s16 }
  0x80   : > { %p4001_p1 = scmp.ne.s32.totalorder %s2849_s27, %s4000_s23  ;;  %p4007_p4 = scmp.lt.s32.totalorder %s2849_s27, %s4005_s16 }
  0x82   : > { %p4002_p11 = pnand %p4001_p1, %p4259_p6 }
  0x84   : > { %p4003_p2 = pneg %p4002_p11 }
  0xf2   : > { %v539_v18 = vpop.xlane.xlu0 %538 }
  0xf3   : > { %v540_v19 = vmul.f32 0.03125, %v539_v18  ;;  %v3761_v18 = vld [vmem:[#allocation6 + $0x18] ss:$48 sps:$4 sm:$0xff]  }
  0xf5   : > { %v541_v20 = vsub.f32 %v537_v3, %v540_v19  ;;  %v3745_v3 = vld [vmem:[#allocation6 + $0x13c] ss:$48 sps:$4 sm:$0xff]   ;;  %v3766_v19 = vld [vmem:[#allocation6 + $0x2c4] ss:$48 sps:$4 sm:$0xff]  }
  0xf7   : > { %v545_v21 = vsel %vm544_vm0, %v541_v20, 0.0  ;;  %v3769_v20 = vld [vmem:[#allocation6 + $0x2cc] ss:$48 sps:$4 sm:$0xff]  }
  0xf8   : > { %v546_v22 = vmul.f32 %v545_v21, %v545_v21 }
  0xfa   : > { %547 = vadd.xlane.f32.xlu0 %v546_v22  ;;  %v3767_v22 = vld [vmem:[#allocation6 + $0x2c8] ss:$48 sps:$4 sm:$0xff]  }
 0x183   : > { %v548_v46 = vpop.xlane.xlu0 %547 }
 0x184   : > { %v549_v47 = vmul.f32 0.03125, %v548_v46  ;;  %v3803_v46 = vld [vmem:[#allocation6 + $0x88] ss:$48 sps:$4 sm:$0xff]  }
 0x186   : > { %v550_v48 = vadd.f32 1e-05, %v549_v47  ;;  %v3808_v47 = vld [vmem:[#allocation6 + $0x24] ss:$48 sps:$4 sm:$0xff]  }
 0x188   : > { %3876 = vrsqrt.f32 %v550_v48  ;;  %v3811_v48 = vld [vmem:[#allocation6 + $0x2c] ss:$48 sps:$4 sm:$0xff]  }
 0x195   : > { %v3877_v49 = vpop.eup %3876 }
 0x196   : > { %v552_v50 = vmul.f32 %v3877_v49, %v545_v21  ;;  %v3764_v21 = vld [vmem:[#allocation6 + $0x2c0] ss:$48 sps:$4 sm:$0xff]  }
 0x197   : > { %v3806_v49 = vld [vmem:[#allocation6 + $0x20] ss:$48 sps:$4 sm:$0xff]  }
 0x198   : > { %v4319_v53 = vpack.c.bf16 %v552_v50, %v552_v50  ;;  %v3809_v50 = vld [vmem:[#allocation6 + $0x28] ss:$48 sps:$4 sm:$0xff]  }
 0x19a   : > { %1163 = vmatmul.mubr.bf16.vlgmr.msra.gmra.mxu0 %v4319_v53  ;;  %1204 = vmatmul.mubr.bf16.vlgmr.msra.gmra.mxu1 %v4319_v53 }
 0x19b   : > { %1213 = vmatpush1.bf16.msra.mxu0 %v3716_v51  ;;  %1254 = vmatpush1.bf16.msra.mxu1 %v3719_v52  ;;  %v4099_v51 = vmov 0.0   ;;  %v4338_v52 = vshrl.u32 %v542_v16, 7 }
 0x19c   : > { %1214 = vmatprep.subr.bf16.mxu0 %v3724_v54  ;;  %1255 = vmatprep.subr.bf16.mxu1 %v3727_v55 }
 0x19d   : > { %1244 = vmatprep.mubr.bf16.mxu0 %v4098_v45  ;;  %1285 = vmatprep.mubr.bf16.mxu1 %v4098_v45  ;;  %v1380_v54 = vsub.s32 0, %v4338_v52  ;;  %v1388_v55 = vsub.s32 2, %v4338_v52 }
 0x19f   : > { %1215 = vmatpush1.bf16.msra.mxu0 %v3722_v56  ;;  %1256 = vmatpush1.bf16.msra.mxu1 %v3725_v57  ;;  %v1392_v56 = vsub.s32 3, %v4338_v52  ;;  %v527_v57 = vld [vmem:[%s4289_s22] sm:$0xff] }
 0x1a0   : > { %1216 = vmatprep.subr.bf16.mxu0 %v3730_v58  ;;  %1257 = vmatprep.subr.bf16.mxu1 %v3733_v59  ;;  %v1381_v58 = vrot.slane %v527_v57, %v1380_v54  ;;  %v1389_v59 = vrot.slane %v527_v57, %v1388_v55 }
 0x1a3   : > { %1217 = vmatpush1.bf16.msra.mxu0 %v3728_v60  ;;  %1258 = vmatpush1.bf16.msra.mxu1 %v3731_v61  ;;  %v1393_v61 = vrot.slane %v527_v57, %v1392_v56 }
 0x1a4   : > { %1218 = vmatprep.subr.bf16.mxu0 %v3736_v62  ;;  %1259 = vmatprep.subr.bf16.mxu1 %v3739_v63 }
 0x1a7   : > { %1219 = vmatpush1.bf16.msra.mxu0 %v3734_v0  ;;  %1260 = vmatpush1.bf16.msra.mxu1 %v3737_v1 }
 0x1a8   : > { %1220 = vmatprep.subr.bf16.mxu0 %v3742_v2  ;;  %1261 = vmatprep.subr.bf16.mxu1 %v3745_v3 }
 0x1ab   : > { %1221 = vmatpush1.bf16.msra.mxu0 %v3740_v4  ;;  %1262 = vmatpush1.bf16.msra.mxu1 %v3743_v5 }
 0x1ac   : > { %1222 = vmatprep.subr.bf16.mxu0 %v3748_v6  ;;  %1263 = vmatprep.subr.bf16.mxu1 %v3751_v7 }
 0x1af   : > { %1223 = vmatpush1.bf16.msra.mxu0 %v3746_v8  ;;  %1264 = vmatpush1.bf16.msra.mxu1 %v3749_v9 }
 0x1b0   : > { %1224 = vmatprep.subr.bf16.mxu0 %v3754_v10  ;;  %1265 = vmatprep.subr.bf16.mxu1 %v3757_v11  ;;  %v1396_v11 = vsub.s32 4, %v4338_v52 }
 0x1b3   : > { %1225 = vmatpush1.bf16.msra.mxu0 %v3752_v12  ;;  %1266 = vmatpush1.bf16.msra.mxu1 %v3755_v13  ;;  %v1404_v12 = vsub.s32 6, %v4338_v52  ;;  %v1400_v13 = vsub.s32 5, %v4338_v52 }
 0x1b4   : > { %1226 = vmatprep.subr.bf16.mxu0 %v3760_v14  ;;  %1267 = vmatprep.subr.bf16.mxu1 %v3763_v15  ;;  %v1408_v14 = vsub.s32 7, %v4338_v52  ;;  %v1397_v15 = vrot.slane %v527_v57, %v1396_v11 }
 0x1b7   : > { %1227 = vmatpush1.bf16.msra.mxu0 %v3758_v17  ;;  %1268 = vmatpush1.bf16.msra.mxu1 %v3761_v18  ;;  %v1405_v17 = vrot.slane %v527_v57, %v1404_v12  ;;  %v1401_v18 = vrot.slane %v527_v57, %v1400_v13 }
 0x1b8   : > { %1294 = vmatprep.subr.bf16.mxu0 %v3766_v19  ;;  %1335 = vmatprep.subr.bf16.mxu1 %v3769_v20  ;;  %v1409_v19 = vrot.slane %v527_v57, %v1408_v14 }
 0x1ba   : > { %1245 = vmatmul.mubr.bf16.vlgmr.msra.gmra.mxu0 %v4319_v53  ;;  %1286 = vmatmul.mubr.bf16.vlgmr.msra.gmra.mxu1 %v4319_v53 }
 0x1bb   : > { %1295 = vmatpush1.bf16.msra.mxu0 %v3764_v21  ;;  %1336 = vmatpush1.bf16.msra.mxu1 %v3767_v22 }
 0x1bc   : > { %1296 = vmatprep.subr.bf16.mxu0 %v3772_v23  ;;  %1337 = vmatprep.subr.bf16.mxu1 %v3775_v24 }
 0x1bd   : > { %1326 = vmatprep.mubr.bf16.mxu0 %v4098_v45  ;;  %1367 = vmatprep.mubr.bf16.mxu1 %v4098_v45  ;;  %v3800_v45 = vld [vmem:[#allocation6 + $0x80] ss:$48 sps:$4 sm:$0xff]  }
 0x1bf   : > { %1297 = vmatpush1.bf16.msra.mxu0 %v3770_v25  ;;  %1338 = vmatpush1.bf16.msra.mxu1 %v3773_v26 }
 0x1c0   : > { %1298 = vmatprep.subr.bf16.mxu0 %v3778_v27  ;;  %1339 = vmatprep.subr.bf16.mxu1 %v3781_v28 }
 0x1c3   : > { %1299 = vmatpush1.bf16.msra.mxu0 %v3776_v29  ;;  %1340 = vmatpush1.bf16.msra.mxu1 %v3779_v30 }
 0x1c4   : > { %1300 = vmatprep.subr.bf16.mxu0 %v3784_v31  ;;  %1341 = vmatprep.subr.bf16.mxu1 %v3787_v32 }
 0x1c7   : > { %1301 = vmatpush1.bf16.msra.mxu0 %v3782_v33  ;;  %1342 = vmatpush1.bf16.msra.mxu1 %v3785_v34 }
 0x1c8   : > { %1302 = vmatprep.subr.bf16.mxu0 %v3790_v35  ;;  %1343 = vmatprep.subr.bf16.mxu1 %v3793_v36 }
 0x1cb   : > { %1303 = vmatpush1.bf16.msra.mxu0 %v3788_v37  ;;  %1344 = vmatpush1.bf16.msra.mxu1 %v3791_v38  ;;  %v528_v37 = vld [vmem:[%s4289_s22 + $0x8] sm:$0xf]  ;;  %s4496_s22 = scalar_lea.hbm %s4572_s26, %s3235_s6 }
 0x1cc   : > { %1304 = vmatprep.subr.bf16.mxu0 %v3796_v39  ;;  %1345 = vmatprep.subr.bf16.mxu1 %v3799_v40  ;;  %v1413_v39 = vrot.slane %v528_v37, %v1380_v54  ;;  %v1421_v40 = vrot.slane %v528_v37, %v1388_v55 }
 0x1cf   : > { %1305 = vmatpush1.bf16.msra.mxu0 %v3794_v41  ;;  %1346 = vmatpush1.bf16.msra.mxu1 %v3797_v42  ;;  %v1425_v42 = vrot.slane %v528_v37, %v1392_v56 }
 0x1d0   : > { %1306 = vmatprep.subr.bf16.mxu0 %v3802_v43  ;;  %1347 = vmatprep.subr.bf16.mxu1 %v3805_v44 }
 0x1d3   : > { %1307 = vmatpush1.bf16.msra.mxu0 %v3800_v45  ;;  %1348 = vmatpush1.bf16.msra.mxu1 %v3803_v46 }
 0x1d4   : > { %1308 = vmatprep.subr.bf16.mxu0 %v3808_v47  ;;  %1349 = vmatprep.subr.bf16.mxu1 %v3811_v48 }
 0x1d7   : > { %1309 = vmatpush1.bf16.msra.mxu0 %v3806_v49  ;;  %1350 = vmatpush1.bf16.msra.mxu1 %v3809_v50 }
 0x1d8   : > { %3356 = vmatprep.subr.bf16.mxu0 %v4099_v51  ;;  %3362 = vmatprep.subr.bf16.mxu1 %v4099_v51 }
 0x1da   : > { %1327 = vmatmul.mubr.bf16.vlgmr.msra.gmra.mxu0 %v4319_v53  ;;  %1368 = vmatmul.mubr.bf16.vlgmr.msra.gmra.mxu1 %v4319_v53  ;;  %v1384_v53 = vsub.s32 1, %v4338_v52 }
 0x1db   : > { %3358 = vmatprep.mubr.msk.bf16.mxu0 %vm4100_vm1, %v4099_v51  ;;  %3364 = vmatprep.mubr.msk.bf16.mxu1 %vm4100_vm1, %v4099_v51 }
 0x1dc   : > { %v1385_v60 = vrot.slane %v527_v57, %v1384_v53  ;;  %v1417_v41 = vrot.slane %v528_v37, %v1384_v53  ;;  %v3821_v37 = vld [vmem:[#allocation8 + $0x10] sm:$0xff]  }
 0x25a   : > { %v1164_v62 = vpop.f32.mrf.mxu0  ;;  %v1205_v63 = vpop.f32.mrf.mxu1 }
 0x25b   : > { %v1438_v2 = vmul.f32 %v1381_v58, %v1164_v62  ;;  %v1440_v16 = vmul.f32 %v1389_v59, %v1205_v63 }
 0x25c   : > { %v1166_v0 = vpop.f32.mrf.mxu0  ;;  %v1207_v1 = vpop.f32.mrf.mxu1 }
 0x25d   : > { %v1439_v3 = vmul.f32 %v1385_v60, %v1166_v0  ;;  %v1441_v4 = vmul.f32 %v1393_v61, %v1207_v1 }
 0x25e   : > { %v1168_v5 = vpop.f32.mrf.mxu0  ;;  %v1209_v6 = vpop.f32.mrf.mxu1 }
 0x25f   : > { %v3241_v7 = vpack.c.bf16 %v1439_v3, %v1438_v2  ;;  %v3246_v8 = vpack.c.bf16 %v1441_v4, %v1440_v16 }
 0x260   : > { %v1169_v9 = vpop.f32.mrf.mxu0  ;;  %v1210_v10 = vpop.f32.mrf.mxu1 }
 0x261   : > { %3242 = vst [vmem:[#allocation2] sm:$0xff] %v3241_v7   ;;  %3247 = vst [vmem:[#allocation2 + $0x8] sm:$0xff] %v3246_v8  }
 0x268   : > { %v1512_v35 = vld [vmem:[#allocation2] sm:$0xf]  ;;  %v3158_v38 = vld [vmem:[#allocation2 + $0x4] sm:$0xf] }
 0x27a   : > { %v1246_v20 = vpop.f32.mrf.mxu0  ;;  %v1287_v21 = vpop.f32.mrf.mxu1 }
 0x27b   : > { %v1442_v24 = vmul.f32 %v1397_v15, %v1246_v20  ;;  %v1444_v25 = vmul.f32 %v1405_v17, %v1287_v21  ;;  %v3814_v15 = vld [vmem:[#allocation8 + $0x78] sm:$0xff]   ;;  %v3816_v17 = vld [vmem:[#allocation8 + $0x70] sm:$0xff]  }
 0x27c   : > { %v1248_v22 = vpop.f32.mrf.mxu0  ;;  %v1289_v23 = vpop.f32.mrf.mxu1  ;;  %v3822_v20 = vld [vmem:[#allocation8 + $0x58] sm:$0xff]   ;;  %v3824_v21 = vld [vmem:[#allocation8 + $0x50] sm:$0xff]  }
 0x27d   : > { %v1443_v26 = vmul.f32 %v1401_v18, %v1248_v22  ;;  %v1445_v27 = vmul.f32 %v1409_v19, %v1289_v23  ;;  %v3818_v18 = vld [vmem:[#allocation8 + $0x68] sm:$0xff]   ;;  %v3820_v19 = vld [vmem:[#allocation8 + $0x60] sm:$0xff]  }
 0x27e   : > { %v1250_v28 = vpop.f32.mrf.mxu0  ;;  %v1291_v29 = vpop.f32.mrf.mxu1 }
 0x27f   : > { %v3251_v30 = vpack.c.bf16 %v1443_v26, %v1442_v24  ;;  %v3256_v31 = vpack.c.bf16 %v1445_v27, %v1444_v25 }
 0x280   : > { %v1251_v32 = vpop.f32.mrf.mxu0  ;;  %v1292_v33 = vpop.f32.mrf.mxu1 }
 0x281   : > { %3252 = vst [vmem:[#allocation2 + $0x10] sm:$0xff] %v3251_v30   ;;  %3257 = vst [vmem:[#allocation2 + $0x18] sm:$0xff] %v3256_v31   ;;  %v3812_v31 = vld [vmem:[#allocation8 + $0x38] sm:$0xff]   ;;  %v3813_v33 = vld [vmem:[#allocation8 + $0x30] sm:$0xff]  }
 0x288   : > { %v1514_v34 = vld [vmem:[#allocation2 + $0x10] sm:$0xf]  ;;  %v1659_v36 = vld [vmem:[#allocation2 + $0x14] sm:$0xf] }
 0x289   : > { %3357 = vmatpush3.bf16.xpose.msra.mxu0 %v1514_v34  ;;  %v3815_v34 = vld [vmem:[#allocation8 + $0x28] sm:$0xff]  }
 0x28a   : > { %3368 = vmatprep.subr.bf16.mxu0 %v4099_v51 }
 0x290   : > { %3359 = vmatmul.mubr.bf16.vlgmr.msra.gmra.mxu0 %v1512_v35  ;;  %v3817_v35 = vld [vmem:[#allocation8 + $0x20] sm:$0xff]  }
 0x291   : > { %3369 = vmatpush3.bf16.xpose.msra.mxu0 %v1659_v36  ;;  %3370 = vmatprep.mubr.msk.bf16.mxu0 %vm4100_vm1, %v4099_v51  ;;  %v3819_v36 = vld [vmem:[#allocation8 + $0x18] sm:$0xff]  }
 0x292   : > { %3380 = vmatprep.subr.bf16.mxu0 %v4099_v51 }
 0x298   : > { %3371 = vmatmul.mubr.bf16.vlgmr.msra.gmra.mxu0 %v3158_v38  ;;  %v3823_v38 = vld [vmem:[#allocation8 + $0x8] sm:$0xff]  }
 0x299   : > { %3396 = vmatprep.mubr.msk.bf16.mxu0 %vm4100_vm1, %v4099_v51  ;;  %3381 = vmatpush3.bf16.msra.mxu0 %v3814_v15 }
 0x29a   : > { %v1328_v43 = vpop.f32.mrf.mxu0  ;;  %v1369_v44 = vpop.f32.mrf.mxu1  ;;  %3382 = vmatprep.subr.bf16.mxu0 %v4099_v51 }
 0x29b   : > { %v1446_v47 = vmul.f32 %v1413_v39, %v1328_v43  ;;  %v1448_v48 = vmul.f32 %v1421_v40, %v1369_v44  ;;  %v3825_v39 = vld [vmem:[#allocation8] sm:$0xff]   ;;  %v3826_v40 = vld [vmem:[#allocation8 + $0x48] sm:$0xff]   ;;  %v3827_v43 = vld [vmem:[#allocation9 + $0x38] sm:$0xff]  }
 0x29c   : > { %v1330_v45 = vpop.f32.mrf.mxu0  ;;  %v1371_v46 = vpop.f32.mrf.mxu1 }
 0x29d   : > { %v1447_v49 = vmul.f32 %v1417_v41, %v1330_v45  ;;  %v1449_v50 = vmul.f32 %v1425_v42, %v1371_v46  ;;  %3383 = vmatpush3.bf16.msra.mxu0 %v3816_v17  ;;  %v3828_v41 = vld [vmem:[#allocation8 + $0x40] sm:$0xff]  }
 0x29e   : > { %v1332_v52 = vpop.f32.mrf.mxu0  ;;  %v1373_v57 = vpop.f32.mrf.mxu1  ;;  %3384 = vmatprep.subr.bf16.mxu0 %v4099_v51 }
 0x29f   : > { %v3261_v58 = vpack.c.bf16 %v1447_v49, %v1446_v47  ;;  %v3266_v59 = vpack.c.bf16 %v1449_v50, %v1448_v48  ;;  %v3829_v47 = vld [vmem:[#allocation9 + $0x30] sm:$0xff]   ;;  %v3830_v50 = vld [vmem:[#allocation9 + $0x78] sm:$0xff]   ;;  %v3831_v52 = vld [vmem:[#allocation9 + $0x28] sm:$0xff]  }
 0x2a0   : > { %v1333_v60 = vpop.f32.mrf.mxu0  ;;  %v1374_v54 = vpop.f32.mrf.mxu1 }
 0x2a1   : > { %3262 = vst [vmem:[#allocation2 + $0x20] sm:$0xff] %v3261_v58   ;;  %3267 = vst [vmem:[#allocation2 + $0x28] sm:$0xff] %v3266_v59   ;;  %3385 = vmatpush3.bf16.msra.mxu0 %v3818_v18  ;;  %v3832_v60 = vld [vmem:[#allocation9 + $0x70] sm:$0xff]   ;;  %v3833_v54 = vld [vmem:[#allocation9 + $0x20] sm:$0xff]  }
 0x2a2   : > { %3386 = vmatprep.subr.bf16.mxu0 %v4099_v51 }
 0x2a5   : > { %3387 = vmatpush3.bf16.msra.mxu0 %v3820_v19 }
 0x2a6   : > { %3388 = vmatprep.subr.bf16.mxu0 %v4099_v51 }
 0x2a8   : > { %v1516_v55 = vld [vmem:[#allocation2 + $0x20] sm:$0xf]  ;;  %v1661_v26 = vld [vmem:[#allocation2 + $0x24] sm:$0xf] }
 0x2a9   : > { %v1575_v53 = vsel %vm1573_vm2, %v1516_v55, 0  ;;  %3389 = vmatpush3.bf16.msra.mxu0 %v3822_v20  ;;  %v1718_v28 = vsel %vm1573_vm2, %v1661_v26, 0 }
 0x2aa   : > { %3363 = vmatpush3.bf16.msra.mxu1 %v1575_v53  ;;  %3390 = vmatprep.subr.bf16.mxu0 %v4099_v51  ;;  %v3834_v53 = vld [vmem:[#allocation9 + $0x68] sm:$0xff]  }
 0x2ab   : > { %3374 = vmatprep.subr.bf16.mxu1 %v4099_v51 }
 0x2ad   : > { %3391 = vmatpush3.bf16.msra.mxu0 %v3824_v21 }
 0x2ae   : > { %3392 = vmatprep.subr.bf16.mxu0 %v4099_v51 }
 0x2b1   : > { %3393 = vmatpush3.bf16.msra.mxu0 %v3826_v40  ;;  %v3853_v40 = vld [vmem:[#allocation8 + $0xb0] sm:$0xff]  }
 0x2b2   : > { %3394 = vmatprep.subr.bf16.mxu0 %v4099_v51 }
 0x2b5   : > { %3395 = vmatpush3.bf16.msra.mxu0 %v3828_v41  ;;  %v3854_v41 = vld [vmem:[#allocation8 + $0xa8] sm:$0xff]  }
 0x2b6   : > { %3420 = vmatprep.subr.bf16.mxu0 %v4099_v51 }
 0x350   : > { %v1551_v56 = vpop.f32.mrf.mxu0 }
 0x351   : > { %v1558_v61 = vsel %vm1557_vm3, %v1551_v56, -inf }
 0x352   : > { %1559 = vmax.xlane.f32.xlu1 %v1558_v61  ;;  %v3360_v62 = vpop.f32.mrf.mxu0  ;;  %v3836_v61 = vld [vmem:[#allocation9 + $0x60] sm:$0xff]  }
 0x353   : > { %v3837_v62 = vld [vmem:[#allocation9 + $0x10] sm:$0xff]  }
 0x354   : > { %v1554_v63 = vpop.f32.mrf.mxu0 }
 0x355   : > { %v3838_v63 = vld [vmem:[#allocation9 + $0x58] sm:$0xff]  }
 0x356   : > { %v3361_v0 = vpop.f32.mrf.mxu0 }
 0x357   : > { %v3839_v0 = vld [vmem:[#allocation9 + $0x8] sm:$0xff]  }
 0x358   : > { %v1696_v1 = vpop.f32.mrf.mxu0 }
 0x359   : > { %v1702_v2 = vsel %vm1557_vm3, %v1696_v1, -inf }
 0x35a   : > { %1703 = vmax.xlane.f32.xlu1 %v1702_v2  ;;  %v3372_v16 = vpop.f32.mrf.mxu0  ;;  %v3841_v2 = vld [vmem:[#allocation9] sm:$0xff]  }
 0x35b   : > { %v3842_v16 = vld [vmem:[#allocation9 + $0x48] sm:$0xff]  }
 0x35c   : > { %v1699_v3 = vpop.f32.mrf.mxu0 }
 0x35d   : > { %v2158_v3 = vld [vmem:[#allocation2 + $0x28] sm:$0xf] }
 0x35e   : > { %v3373_v4 = vpop.f32.mrf.mxu0 }
 0x35f   : > { %v3157_v4 = vld [vmem:[#allocation2 + $0x20] sm:$0xf] }
 0x3db   : > { %v1560_v5 = vpop.xlane.xlu1 %1559 }
 0x3dc   : > { %v1561_v6 = vsub.f32 %v1551_v56, %v1560_v5  ;;  %v3835_v56 = vld [vmem:[#allocation9 + $0x18] sm:$0xff]   ;;  %v2215_v5 = vsel %vm1573_vm2, %v2158_v3, 0 }
 0x3de   : > { %v1562_v7 = vmul.f32 1.442695, %v1561_v6  ;;  %v3843_v6 = vld [vmem:[#allocation9 + $0x40] sm:$0xff]  }
 0x3e0   : > { %3878 = vpow2.f32 %v1562_v7  ;;  %v3176_v7 = vld [vmem:[#allocation2 + $0x24] sm:$0xf] }
 0x3e3   : > { %v1704_v8 = vpop.xlane.xlu1 %1703 }
 0x3e4   : > { %v1705_v9 = vsub.f32 %v1696_v1, %v1704_v8  ;;  %v3840_v1 = vld [vmem:[#allocation9 + $0x50] sm:$0xff]  }
 0x3e5   : > { %v2156_v8 = vld [vmem:[#allocation2 + $0x18] sm:$0xf] }
 0x3e6   : > { %v1706_v10 = vmul.f32 1.442695, %v1705_v9  ;;  %v3193_v9 = vld [vmem:[#allocation2 + $0x8] sm:$0xf] }
 0x3e8   : > { %3880 = vpow2.f32 %v1706_v10 }
 0x3ed   : > { %v3879_v11 = vpop.eup %3878 }
 0x3ee   : > { %v1564_v12 = vsel %vm1557_vm3, %v3879_v11, 0.0 }
 0x3ef   : > { %1565 = vadd.xlane.f32.xlu0 %v1564_v12 }
 0x3f5   : > { %v3881_v13 = vpop.eup %3880 }
 0x3f6   : > { %v1708_v14 = vsel %vm1557_vm3, %v3881_v13, 0.0 }
 0x3f7   : > { %1709 = vadd.xlane.f32.xlu1 %v1708_v14 }
 0x478   : > { %v1566_v22 = vpop.xlane.xlu0 %1565 }
 0x479   : > { %3882 = vrcp.f32 %v1566_v22 }
 0x480   : > { %v1710_v23 = vpop.xlane.xlu1 %1709 }
 0x481   : > { %3884 = vrcp.f32 %v1710_v23 }
 0x486   : > { %v3883_v24 = vpop.eup %3882 }
 0x487   : > { %v1568_v25 = vmul.f32 %v3883_v24, %v3879_v11 }
 0x489   : > { %v1569_v27 = vpack.c.bf16 %v1568_v25, %v1568_v25 }
 0x48b   : > { %3365 = vmatmul.mubr.msk.bf16.vlgmr.msra.gmra.mxu1 %vm1557_vm3, %v1569_v27 }
 0x48c   : > { %3375 = vmatpush3.bf16.msra.mxu1 %v1718_v28  ;;  %3376 = vmatprep.mubr.msk.bf16.mxu1 %vm4100_vm1, %v4099_v51 }
 0x48d   : > { %3400 = vmatprep.subr.bf16.mxu1 %v4099_v51 }
 0x48e   : > { %v3885_v29 = vpop.eup %3884 }
 0x48f   : > { %v1712_v30 = vmul.f32 %v3885_v29, %v3881_v13 }
 0x491   : > { %v1713_v32 = vpack.c.bf16 %v1712_v30, %v1712_v30 }
 0x493   : > { %3377 = vmatmul.mubr.msk.bf16.vlgmr.msra.gmra.mxu1 %vm1557_vm3, %v1713_v32 }
 0x494   : > { %3401 = vmatpush3.bf16.msra.mxu1 %v3812_v31  ;;  %3416 = vmatprep.mubr.msk.bf16.mxu1 %vm4100_vm1, %v4099_v51 }
 0x495   : > { %3402 = vmatprep.subr.bf16.mxu1 %v4099_v51 }
 0x498   : > { %3403 = vmatpush3.bf16.msra.mxu1 %v3813_v33 }
 0x499   : > { %3404 = vmatprep.subr.bf16.mxu1 %v4099_v51 }
 0x49c   : > { %3405 = vmatpush3.bf16.msra.mxu1 %v3815_v34 }
 0x49d   : > { %3406 = vmatprep.subr.bf16.mxu1 %v4099_v51 }
 0x4a0   : > { %3407 = vmatpush3.bf16.msra.mxu1 %v3817_v35 }
 0x4a1   : > { %3408 = vmatprep.subr.bf16.mxu1 %v4099_v51 }
 0x4a4   : > { %3409 = vmatpush3.bf16.msra.mxu1 %v3819_v36 }
 0x4a5   : > { %3410 = vmatprep.subr.bf16.mxu1 %v4099_v51 }
 0x4a8   : > { %3411 = vmatpush3.bf16.msra.mxu1 %v3821_v37 }
 0x4a9   : > { %3412 = vmatprep.subr.bf16.mxu1 %v4099_v51 }
 0x4ac   : > { %3413 = vmatpush3.bf16.msra.mxu1 %v3823_v38 }
 0x4ad   : > { %3414 = vmatprep.subr.bf16.mxu1 %v4099_v51 }
 0x4b0   : > { %3415 = vmatpush3.bf16.msra.mxu1 %v3825_v39  ;;  %v3852_v39 = vld [vmem:[#allocation8 + $0xb8] sm:$0xff]  }
 0x4b1   : > { %3440 = vmatprep.subr.bf16.mxu1 %v4099_v51 }
 0x54b   : > { %v1611_v42 = vpop.f32.mrf.mxu1 }
 0x54c   : > { %v1617_v44 = vpack.c.bf16 %v1611_v42, %v1611_v42  ;;  %v3855_v42 = vld [vmem:[#allocation8 + $0xa0] sm:$0xff]  }
 0x54d   : > { %v3366_v45 = vpop.f32.mrf.mxu1 }
 0x54e   : > { %3417 = vmatmul.mubr.bf16.vlgmr.msra.gmra.mxu1 %v1617_v44  ;;  %v3857_v44 = vld [vmem:[#allocation8 + $0x90] sm:$0xff]   ;;  %v3858_v45 = vld [vmem:[#allocation8 + $0x88] sm:$0xff]  }
 0x54f   : > { %3441 = vmatpush3.bf16.msra.mxu1 %v3827_v43  ;;  %v1614_v46 = vpop.f32.mrf.mxu1  ;;  %3456 = vmatprep.mubr.msk.bf16.mxu1 %vm4100_vm1, %v4099_v51  ;;  %v3856_v43 = vld [vmem:[#allocation8 + $0x98] sm:$0xff]  }
 0x550   : > { %3442 = vmatprep.subr.bf16.mxu1 %v4099_v51  ;;  %v3859_v46 = vld [vmem:[#allocation8 + $0x80] sm:$0xff]  }
 0x551   : > { %v3367_v48 = vpop.f32.mrf.mxu1 }
 0x553   : > { %3443 = vmatpush3.bf16.msra.mxu1 %v3829_v47  ;;  %v1754_v49 = vpop.f32.mrf.mxu1 }
 0x554   : > { %v1760_v57 = vpack.c.bf16 %v1754_v49, %v1754_v49  ;;  %3444 = vmatprep.subr.bf16.mxu1 %v4099_v51 }
 0x555   : > { %v3378_v58 = vpop.f32.mrf.mxu1 }
 0x556   : > { %3397 = vmatmul.mubr.bf16.vlgmr.msra.gmra.mxu0 %v1760_v57  ;;  %v3845_v57 = vld [vmem:[#allocation9 + $0xb0] sm:$0xff]   ;;  %v3846_v58 = vld [vmem:[#allocation9 + $0xa8] sm:$0xff]  }
 0x557   : > { %3421 = vmatpush3.bf16.msra.mxu0 %v3830_v50  ;;  %3445 = vmatpush3.bf16.msra.mxu1 %v3831_v52  ;;  %v1757_v59 = vpop.f32.mrf.mxu1  ;;  %v3844_v50 = vld [vmem:[#allocation9 + $0xb8] sm:$0xff]  }
 0x558   : > { %3422 = vmatprep.subr.bf16.mxu0 %v4099_v51  ;;  %3446 = vmatprep.subr.bf16.mxu1 %v4099_v51  ;;  %v3847_v59 = vld [vmem:[#allocation9 + $0xa0] sm:$0xff]  }
 0x559   : > { %v3379_v55 = vpop.f32.mrf.mxu1  ;;  %3436 = vmatprep.mubr.msk.bf16.mxu0 %vm4100_vm1, %v4099_v51 }
 0x55a   : > { %v3850_v55 = vld [vmem:[#allocation9 + $0x88] sm:$0xff]  }
 0x55b   : > { %3423 = vmatpush3.bf16.msra.mxu0 %v3832_v60  ;;  %3447 = vmatpush3.bf16.msra.mxu1 %v3833_v54  ;;  %v3848_v60 = vld [vmem:[#allocation9 + $0x98] sm:$0xff]   ;;  %v3849_v54 = vld [vmem:[#allocation9 + $0x90] sm:$0xff]  }
 0x55c   : > { %3424 = vmatprep.subr.bf16.mxu0 %v4099_v51  ;;  %3448 = vmatprep.subr.bf16.mxu1 %v4099_v51 }
 0x55f   : > { %3425 = vmatpush3.bf16.msra.mxu0 %v3834_v53  ;;  %3449 = vmatpush3.bf16.msra.mxu1 %v3835_v56  ;;  %v3851_v53 = vld [vmem:[#allocation9 + $0x80] sm:$0xff]  }
 0x560   : > { %3426 = vmatprep.subr.bf16.mxu0 %v4099_v51  ;;  %3450 = vmatprep.subr.bf16.mxu1 %v4099_v51  ;;  %v2481_v56 = vld [vmem:[#allocation2 + $0x2c] sm:$0xf] }
 0x563   : > { %3427 = vmatpush3.bf16.msra.mxu0 %v3836_v61  ;;  %3451 = vmatpush3.bf16.msra.mxu1 %v3837_v62  ;;  %v3203_v61 = vld [vmem:[#allocation2 + $0x28] sm:$0xf]  ;;  %v2538_v62 = vsel %vm1573_vm2, %v2481_v56, 0  ;;  %v3231_v56 = vld [vmem:[%s517_s19] ss:$0 sm:$0xff]  ;;  %s4006_s19 = scalar_lea.vmem %s4005_s16, 256 }
 0x564   : > { %3428 = vmatprep.subr.bf16.mxu0 %v4099_v51  ;;  %3452 = vmatprep.subr.bf16.mxu1 %v4099_v51  ;;  %p4008_p7 = scmp.lt.s32.totalorder %s4006_s19, %s4000_s23 }
 0x566   : > { %p4009_p9 = por %p4008_p7, %p4007_p4 }
 0x567   : > { %3429 = vmatpush3.bf16.msra.mxu0 %v3838_v63  ;;  %3453 = vmatpush3.bf16.msra.mxu1 %v3839_v0 }
 0x568   : > { %3430 = vmatprep.subr.bf16.mxu0 %v4099_v51  ;;  %3454 = vmatprep.subr.bf16.mxu1 %v4099_v51  ;;  %p4010_p13 = pnand %p4009_p9, %p4003_p2 }
 0x56b   : > { %3431 = vmatpush3.bf16.msra.mxu0 %v3840_v1  ;;  %3455 = vmatpush3.bf16.msra.mxu1 %v3841_v2  ;;  %v2479_v2 = vld [vmem:[#allocation2 + $0x1c] sm:$0xf] }
 0x56c   : > { %3432 = vmatprep.subr.bf16.mxu0 %v4099_v51  ;;  %3466 = vmatprep.subr.bf16.mxu1 %v4099_v51 }
 0x56e   : > { %3457 = vmatmul.mubr.bf16.vlgmr.msra.gmra.mxu1 %v3157_v4  ;;  %v3212_v4 = vld [vmem:[#allocation2 + $0xc] sm:$0xf] }
 0x56f   : > { %3433 = vmatpush3.bf16.msra.mxu0 %v3842_v16  ;;  %3467 = vmatpush3.bf16.msra.mxu1 %v2215_v5 }
 0x570   : > { %3434 = vmatprep.subr.bf16.mxu0 %v4099_v51  ;;  %3468 = vmatprep.mubr.msk.bf16.mxu1 %vm4100_vm1, %v4099_v51 }
 0x571   : > { %3492 = vmatprep.subr.bf16.mxu1 %v4099_v51 }
 0x573   : > { %3435 = vmatpush3.bf16.msra.mxu0 %v3843_v6 }
 0x574   : > { %3460 = vmatprep.subr.bf16.mxu0 %v4099_v51 }
 0x576   : > { %3437 = vmatmul.mubr.bf16.vlgmr.msra.gmra.mxu0 %v3176_v7 }
 0x577   : > { %3461 = vmatpush3.bf16.xpose.msra.mxu0 %v2156_v8  ;;  %3462 = vmatprep.mubr.msk.bf16.mxu0 %vm4100_vm1, %v4099_v51 }
 0x578   : > { %3472 = vmatprep.subr.bf16.mxu0 %v4099_v51 }
 0x57e   : > { %3463 = vmatmul.mubr.bf16.vlgmr.msra.gmra.mxu0 %v3193_v9 }
 0x57f   : > { %3488 = vmatprep.mubr.msk.bf16.mxu0 %vm4100_vm1, %v4099_v51  ;;  %3473 = vmatpush3.bf16.msra.mxu0 %v3852_v39  ;;  %v3862_v39 = vld [vmem:[#allocation9 + $0xe8] sm:$0xff]  }
 0x580   : > { %3474 = vmatprep.subr.bf16.mxu0 %v4099_v51 }
 0x583   : > { %3475 = vmatpush3.bf16.msra.mxu0 %v3853_v40  ;;  %v3863_v40 = vld [vmem:[#allocation9 + $0xe0] sm:$0xff]  }
 0x584   : > { %3476 = vmatprep.subr.bf16.mxu0 %v4099_v51 }
 0x587   : > { %3477 = vmatpush3.bf16.msra.mxu0 %v3854_v41  ;;  %v3864_v41 = vld [vmem:[#allocation9 + $0xd8] sm:$0xff]  }
 0x588   : > { %3478 = vmatprep.subr.bf16.mxu0 %v4099_v51 }
 0x58b   : > { %3479 = vmatpush3.bf16.msra.mxu0 %v3855_v42  ;;  %v3865_v42 = vld [vmem:[#allocation9 + $0xd0] sm:$0xff]  }
 0x58c   : > { %3480 = vmatprep.subr.bf16.mxu0 %v4099_v51 }
 0x58f   : > { %3481 = vmatpush3.bf16.msra.mxu0 %v3856_v43  ;;  %v3866_v43 = vld [vmem:[#allocation9 + $0xc8] sm:$0xff]  }
 0x590   : > { %3482 = vmatprep.subr.bf16.mxu0 %v4099_v51 }
 0x593   : > { %3483 = vmatpush3.bf16.msra.mxu0 %v3857_v44  ;;  %v3867_v44 = vld [vmem:[#allocation9 + $0xc0] sm:$0xff]  }
 0x594   : > { %3484 = vmatprep.subr.bf16.mxu0 %v4099_v51 }
 0x597   : > { %3485 = vmatpush3.bf16.msra.mxu0 %v3858_v45  ;;  %v3222_v45 = vld [vmem:[#allocation2 + $0x2c] sm:$0xf] }
 0x598   : > { %3486 = vmatprep.subr.bf16.mxu0 %v4099_v51 }
 0x59b   : > { %3487 = vmatpush3.bf16.msra.mxu0 %v3859_v46  ;;  %v3875_v46 = vld [vmem:[#allocation8 + $0xc0] sm:$0xff]  }
 0x59c   : > { %3512 = vmatprep.subr.bf16.mxu0 %v4099_v51 }
 0x60e   : > { %v1948_v10 = vpop.f32.mrf.mxu1 }
 0x610   : > { %v3418_v11 = vpop.f32.mrf.mxu1 }
 0x612   : > { %v1951_v12 = vpop.f32.mrf.mxu1 }
 0x614   : > { %v3419_v13 = vpop.f32.mrf.mxu1 }
 0x616   : > { %v1860_v14 = vpop.f32.mrf.mxu0 }
 0x617   : > { %v4415_v15 = vadd.f32 %v1948_v10, %v1860_v14 }
 0x618   : > { %v3398_v17 = vpop.f32.mrf.mxu0 }
 0x61a   : > { %v1863_v18 = vpop.f32.mrf.mxu0 }
 0x61c   : > { %v3399_v19 = vpop.f32.mrf.mxu0 }
 0x62e   : > { %v2145_v20 = vpop.f32.mrf.mxu1 }
 0x630   : > { %v3458_v21 = vpop.f32.mrf.mxu1 }
 0x632   : > { %v2148_v22 = vpop.f32.mrf.mxu1 }
 0x634   : > { %v3459_v23 = vpop.f32.mrf.mxu1 }
 0x636   : > { %v2057_v24 = vpop.f32.mrf.mxu0 }
 0x637   : > { %v4417_v25 = vadd.f32 %v2145_v20, %v2057_v24 }
 0x638   : > { %v3438_v26 = vpop.f32.mrf.mxu0 }
 0x63a   : > { %v2060_v27 = vpop.f32.mrf.mxu0 }
 0x63b   : > { %v3869_v27 = vld [vmem:[#allocation8 + $0xf0] sm:$0xff]  }
 0x63c   : > { %v3439_v28 = vpop.f32.mrf.mxu0 }
 0x63d   : > { %v3870_v28 = vld [vmem:[#allocation8 + $0xe8] sm:$0xff]  }
 0x63e   : > { %v2193_v29 = vpop.f32.mrf.mxu0 }
 0x63f   : > { %v2199_v30 = vsel %vm1557_vm3, %v2193_v29, -inf }
 0x640   : > { %2200 = vmax.xlane.f32.xlu0 %v2199_v30  ;;  %v3464_v31 = vpop.f32.mrf.mxu0  ;;  %v3872_v30 = vld [vmem:[#allocation8 + $0xd8] sm:$0xff]  }
 0x641   : > { %v3873_v31 = vld [vmem:[#allocation8 + $0xd0] sm:$0xff]  }
 0x642   : > { %v2196_v32 = vpop.f32.mrf.mxu0 }
 0x643   : > { %v3874_v32 = vld [vmem:[#allocation8 + $0xc8] sm:$0xff]  }
 0x644   : > { %v3465_v33 = vpop.f32.mrf.mxu0 }
 0x6c9   : > { %v2201_v34 = vpop.xlane.xlu0 %2200 }
 0x6ca   : > { %v2202_v35 = vsub.f32 %v2193_v29, %v2201_v34  ;;  %v3871_v29 = vld [vmem:[#allocation8 + $0xe0] sm:$0xff]  }
 0x6cc   : > { %v2203_v36 = vmul.f32 1.442695, %v2202_v35 }
 0x6ce   : > { %3886 = vpow2.f32 %v2203_v36  ;;  %v3860_v36 = vld [vmem:[#allocation9 + $0xf8] sm:$0xff]  }
 0x6db   : > { %v3887_v37 = vpop.eup %3886 }
 0x6dc   : > { %v2205_v38 = vsel %vm1557_vm3, %v3887_v37, 0.0 }
 0x6dd   : > { %2206 = vadd.xlane.f32.xlu1 %v2205_v38  ;;  %v3861_v38 = vld [vmem:[#allocation9 + $0xf0] sm:$0xff]  }
 0x766   : > { %v2207_v47 = vpop.xlane.xlu1 %2206 }
 0x767   : > { %3888 = vrcp.f32 %v2207_v47  ;;  %v2814_v47 = vld [vmem:[%s511_s11] sm:$0xff] }
 0x774   : > { %v3889_v48 = vpop.eup %3888 }
 0x775   : > { %v2209_v49 = vmul.f32 %v3889_v48, %v3887_v37 }
 0x777   : > { %v2210_v52 = vpack.c.bf16 %v2209_v49, %v2209_v49 }
 0x779   : > { %3469 = vmatmul.mubr.msk.bf16.vlgmr.msra.gmra.mxu1 %vm1557_vm3, %v2210_v52 }
 0x77a   : > { %3493 = vmatpush3.bf16.msra.mxu1 %v3844_v50  ;;  %3508 = vmatprep.mubr.msk.bf16.mxu1 %vm4100_vm1, %v4099_v51 }
 0x77b   : > { %3494 = vmatprep.subr.bf16.mxu1 %v4099_v51 }
 0x77e   : > { %3495 = vmatpush3.bf16.msra.mxu1 %v3845_v57 }
 0x77f   : > { %3496 = vmatprep.subr.bf16.mxu1 %v4099_v51 }
 0x782   : > { %3497 = vmatpush3.bf16.msra.mxu1 %v3846_v58 }
 0x783   : > { %3498 = vmatprep.subr.bf16.mxu1 %v4099_v51 }
 0x786   : > { %3499 = vmatpush3.bf16.msra.mxu1 %v3847_v59 }
 0x787   : > { %3500 = vmatprep.subr.bf16.mxu1 %v4099_v51 }
 0x78a   : > { %3501 = vmatpush3.bf16.msra.mxu1 %v3848_v60 }
 0x78b   : > { %3502 = vmatprep.subr.bf16.mxu1 %v4099_v51 }
 0x78e   : > { %3503 = vmatpush3.bf16.msra.mxu1 %v3849_v54 }
 0x78f   : > { %3504 = vmatprep.subr.bf16.mxu1 %v4099_v51 }
 0x792   : > { %3505 = vmatpush3.bf16.msra.mxu1 %v3850_v55  ;;  %v3232_v55 = vld [vmem:[%s520_s7] ss:$0 sm:$0xff]  ;;  %s2834_s7 = scalar_lea.sflag [#allocation5], %s4285_s29 }
 0x793   : > { %3506 = vmatprep.subr.bf16.mxu1 %v4099_v51 }
 0x796   : > { %3507 = vmatpush3.bf16.msra.mxu1 %v3851_v53 }
 0x797   : > { %3518 = vmatprep.subr.bf16.mxu1 %v4099_v51 }
 0x799   : > { %3509 = vmatmul.mubr.bf16.vlgmr.msra.gmra.mxu1 %v3203_v61 }
 0x79a   : > { %3519 = vmatpush3.bf16.msra.mxu1 %v2538_v62  ;;  %3520 = vmatprep.mubr.msk.bf16.mxu1 %vm4100_vm1, %v4099_v51 }
 0x79b   : > { %3544 = vmatprep.subr.bf16.mxu1 %v4099_v51 }
 0x839   : > { %v2251_v63 = vpop.f32.mrf.mxu1 }
 0x83a   : > { %v2257_v0 = vpack.c.bf16 %v2251_v63, %v2251_v63 }
 0x83b   : > { %v3470_v1 = vpop.f32.mrf.mxu1 }
 0x83c   : > { %3489 = vmatmul.mubr.bf16.vlgmr.msra.gmra.mxu0 %v2257_v0 }
 0x83d   : > { %3513 = vmatpush3.bf16.xpose.msra.mxu0 %v2479_v2  ;;  %v2254_v16 = vpop.f32.mrf.mxu1  ;;  %3514 = vmatprep.mubr.msk.bf16.mxu0 %vm4100_vm1, %v4099_v51 }
 0x83e   : > { %3524 = vmatprep.subr.bf16.mxu0 %v4099_v51 }
 0x83f   : > { %v3471_v3 = vpop.f32.mrf.mxu1 }
 0x840   : > { %v3233_v3 = vld [vmem:[%s4547_s9] ss:$0 sm:$0xff] }
 0x844   : > { %3515 = vmatmul.mubr.bf16.vlgmr.msra.gmra.mxu0 %v3212_v4 }
 0x845   : > { %3540 = vmatprep.mubr.msk.bf16.mxu0 %vm4100_vm1, %v4099_v51 }
 0x859   : > { %v2467_v5 = vpop.f32.mrf.mxu1 }
 0x85a   : > { %v4450_v6 = vadd.f32 %v2467_v5, %v4417_v25 }
 0x85b   : > { %v3510_v7 = vpop.f32.mrf.mxu1 }
 0x85d   : > { %v2470_v8 = vpop.f32.mrf.mxu1 }
 0x85f   : > { %v3511_v9 = vpop.f32.mrf.mxu1 }
 0x8fc   : > { %v2357_v10 = vpop.f32.mrf.mxu0 }
 0x8fd   : > { %v4453_v11 = vadd.f32 %v2357_v10, %v4415_v15  ;;  %v3868_v15 = vld [vmem:[#allocation8 + $0xf8] sm:$0xff]  }
 0x8fe   : > { %v3490_v12 = vpop.f32.mrf.mxu0  ;;  %3525 = vmatpush3.bf16.msra.mxu0 %v3868_v15 }
 0x8ff   : > { %3526 = vmatprep.subr.bf16.mxu0 %v4099_v51 }
 0x900   : > { %v2360_v13 = vpop.f32.mrf.mxu0 }
 0x902   : > { %v3491_v14 = vpop.f32.mrf.mxu0  ;;  %3527 = vmatpush3.bf16.msra.mxu0 %v3869_v27 }
 0x903   : > { %3528 = vmatprep.subr.bf16.mxu0 %v4099_v51 }
 0x904   : > { %v2516_v17 = vpop.f32.mrf.mxu0 }
 0x905   : > { %v2522_v18 = vsel %vm1557_vm3, %v2516_v17, -inf }
 0x906   : > { %2523 = vmax.xlane.f32.xlu0 %v2522_v18  ;;  %v3516_v19 = vpop.f32.mrf.mxu0  ;;  %3529 = vmatpush3.bf16.msra.mxu0 %v3870_v28 }
 0x907   : > { %3530 = vmatprep.subr.bf16.mxu0 %v4099_v51 }
 0x908   : > { %v2519_v20 = vpop.f32.mrf.mxu0 }
 0x90a   : > { %v3517_v21 = vpop.f32.mrf.mxu0  ;;  %3531 = vmatpush3.bf16.msra.mxu0 %v3871_v29 }
 0x90b   : > { %3532 = vmatprep.subr.bf16.mxu0 %v4099_v51 }
 0x90e   : > { %3533 = vmatpush3.bf16.msra.mxu0 %v3872_v30 }
 0x90f   : > { %3534 = vmatprep.subr.bf16.mxu0 %v4099_v51 }
 0x912   : > { %3535 = vmatpush3.bf16.msra.mxu0 %v3873_v31 }
 0x913   : > { %3536 = vmatprep.subr.bf16.mxu0 %v4099_v51 }
 0x916   : > { %3537 = vmatpush3.bf16.msra.mxu0 %v3874_v32 }
 0x917   : > { %3538 = vmatprep.subr.bf16.mxu0 %v4099_v51 }
 0x91a   : > { %3539 = vmatpush3.bf16.msra.mxu0 %v3875_v46 }
 0x91c   : > { %2817 = vperm.xlu0 %3667, %v2814_v47  }
 0x98f   : > { %v2524_v22 = vpop.xlane.xlu0 %2523 }
 0x990   : > { %v2525_v23 = vsub.f32 %v2516_v17, %v2524_v22 }
 0x992   : > { %v2526_v24 = vmul.f32 1.442695, %v2525_v23 }
 0x994   : > { %3890 = vpow2.f32 %v2526_v24 }
 0x997   : > { %v2818_v2 = vpop.permute.xlu0 %2817 }
 0x9a1   : > { %v3891_v25 = vpop.eup %3890 }
 0x9a2   : > { %v2528_v26 = vsel %vm1557_vm3, %v3891_v25, 0.0 }
 0x9a3   : > { %2529 = vadd.xlane.f32.xlu1 %v2528_v26 }
 0xa2c   : > { %v2530_v33 = vpop.xlane.xlu1 %2529 }
 0xa2d   : > { %3892 = vrcp.f32 %v2530_v33 }
 0xa3a   : > { %v3893_v34 = vpop.eup %3892 }
 0xa3b   : > { %v2532_v35 = vmul.f32 %v3893_v34, %v3891_v25 }
 0xa3d   : > { %v2533_v37 = vpack.c.bf16 %v2532_v35, %v2532_v35 }
 0xa3f   : > { %3521 = vmatmul.mubr.msk.bf16.vlgmr.msra.gmra.mxu1 %vm1557_vm3, %v2533_v37 }
 0xa40   : > { %3545 = vmatpush3.bf16.msra.mxu1 %v3860_v36  ;;  %3560 = vmatprep.mubr.msk.bf16.mxu1 %vm4100_vm1, %v4099_v51 }
 0xa41   : > { %3546 = vmatprep.subr.bf16.mxu1 %v4099_v51 }
 0xa44   : > { %3547 = vmatpush3.bf16.msra.mxu1 %v3861_v38 }
 0xa45   : > { %3548 = vmatprep.subr.bf16.mxu1 %v4099_v51 }
 0xa48   : > { %3549 = vmatpush3.bf16.msra.mxu1 %v3862_v39 }
 0xa49   : > { %3550 = vmatprep.subr.bf16.mxu1 %v4099_v51 }
 0xa4c   : > { %3551 = vmatpush3.bf16.msra.mxu1 %v3863_v40 }
 0xa4d   : > { %3552 = vmatprep.subr.bf16.mxu1 %v4099_v51 }
 0xa50   : > { %3553 = vmatpush3.bf16.msra.mxu1 %v3864_v41 }
 0xa51   : > { %3554 = vmatprep.subr.bf16.mxu1 %v4099_v51 }
 0xa54   : > { %3555 = vmatpush3.bf16.msra.mxu1 %v3865_v42 }
 0xa55   : > { %3556 = vmatprep.subr.bf16.mxu1 %v4099_v51 }
 0xa58   : > { %3557 = vmatpush3.bf16.msra.mxu1 %v3866_v43 }
 0xa59   : > { %3558 = vmatprep.subr.bf16.mxu1 %v4099_v51 }
 0xa5c   : > { %3559 = vmatpush3.bf16.msra.mxu1 %v3867_v44 }
 0xa5f   : > { %3561 = vmatmul.mubr.bf16.vlgmr.msra.gmra.mxu1 %v3222_v45 }
 0xaff   : > { %v2574_v48 = vpop.f32.mrf.mxu1 }
 0xb00   : > { %v2580_v49 = vpack.c.bf16 %v2574_v48, %v2574_v48 }
 0xb01   : > { %v3522_v50 = vpop.f32.mrf.mxu1 }
 0xb02   : > { %3541 = vmatmul.mubr.bf16.vlgmr.msra.gmra.mxu0 %v2580_v49 }
 0xb03   : > { %v2577_v52 = vpop.f32.mrf.mxu1 }
 0xb05   : > { %v3523_v51 = vpop.f32.mrf.mxu1 }
 0xb1f   : > { %v2790_v57 = vpop.f32.mrf.mxu1 }
 0xb20   : > { %v2796_v58 = vadd.f32 %v2790_v57, %v4450_v6 }
 0xb21   : > { %v3562_v59 = vpop.f32.mrf.mxu1 }
 0xb22   : > { %v2812_v63 = vmul.f32 %v3232_v55, %v2796_v58 }
 0xb23   : > { %v2793_v60 = vpop.f32.mrf.mxu1 }
 0xb25   : > { %v3563_v54 = vpop.f32.mrf.mxu1 }
 0xbc2   : > { %v2680_v53 = vpop.f32.mrf.mxu0 }
 0xbc3   : > { %v2686_v61 = vadd.f32 %v2680_v53, %v4453_v11 }
 0xbc4   : > { %v3542_v62 = vpop.f32.mrf.mxu0 }
 0xbc5   : > { %v2804_v0 = vmul.f32 %v3231_v56, %v2686_v61 }
 0xbc6   : > { %v2683_v1 = vpop.f32.mrf.mxu0 }
 0xbc7   : > { %v2813_v16 = vadd.f32 %v2812_v63, %v2804_v0 }
 0xbc8   : > { %v3543_v4 = vpop.f32.mrf.mxu0 }
 0xbc9   : > { %v2820_v5 = vadd.f32 %v2818_v2, %v2813_v16 }
 0xbcb   : > { %v2828_v6 = vadd.f32 %v3233_v3, %v2820_v5 }
 0xbcd   : > { %vm2829_vm4 = vcmp.ge.f32.partialorder %v2828_v6, 0.0  ;;  %v2830_v7 = vmul.f32 0.2, %v2828_v6 }
 0xbcf   : > { %v2831_v8 = vsel %vm2829_vm4, %v2828_v6, %v2830_v7 }
 0xbd0   : > { %2832 = vst [vmem:[%s500_s21] sm:$0xff] %v2831_v8 }
 0xbd1   : > { %4013 = shalt.err (!%p4010_p13)
}
 0xbd2   : > { %s4014_s20 = scalar_lea.hbm %s4496_s22, 128  ;;  %s4018_s13 = scalar_lea.hbm %s4572_s26, 256 }
 0xbd3   : > { %p4015_p12 = scmp.ne.s32.totalorder %s4496_s22, %s4014_s20  ;;  %p4019_p10 = scmp.lt.s32.totalorder %s4496_s22, %s4572_s26 }
 0xbd4   : > { %p4020_p3 = scmp.lt.s32.totalorder %s4018_s13, %s4014_s20 }
 0xbd5   : > { %p4016_p0 = pnand %p4015_p12, %p4259_p6 }
 0xbd6   : > { %p4021_p8 = por %p4020_p3, %p4019_p10 }
 0xbd7   : > { %p4017_p5 = pneg %p4016_p0 }
 0xbd9   : > { %p4022_p1 = pnand %p4021_p8, %p4017_p5 }
 0xbdb   : > { %4025 = shalt.err (!%p4022_p1)
}
 0xbdc   : > { %3581 = dma.vmem_to_hbm [thread:$0]  (%p4259_p6), %s2849_s27, 128, %s4496_s22, %s2834_s7  }
 0xbdd PF: > { %s4573_s12 = sld [smem:[#allocation16_spill]]  ;;  %p4576_p2 = scmp.ge.s32.totalorder %s4088_s18, 2 }
 0xbde   : > { %s4574_s11 = sld [smem:[#allocation17_spill]] }
 0xbe3   : > { %s2860_s23 = sand.u32 1, %s4573_s12  }
 0xbe4   : > { %p4575_p11 = scmp.ne.s32.totalorder %s4574_s11, 0  ;;  %s2861_s25 = scalar_lea.sflag [#allocation5], %s2860_s23 }
 0xbe6   : > { %p3598_p4 = pnand %p4576_p2, %p4575_p11 }
 0xbe8   : > { %p3599_p7 = pneg %p3598_p4 }
 0xbea   : > { %4063 = dma.done.wait (%p3599_p7), %s2861_s25, 128  }
 0xbeb   : > { %4065 = vsyncadd (%p3599_p7), %s2861_s25, 4294967168  ;;  %s28_s18 = sadd.s32 1, %s4088_s18   ;;  %s4577_s13 = smov %s4072_s14 }
 0xbec   : > { %p25_p9 = scmp.ge.s32.totalorder %s28_s18, 4   ;;  %s4578_s14 = smov %s4076_s15 }
 0xbed   : > { %s4579_s15 = smov %s4268_s24  ;;  %s4580_s16 = smov %s4084_s17 }
 0xbee   : > { %s4581_s17 = smov %s4583_s10  ;;  %27 = sbr.rel (!%p25_p9) target bundleno = 12 (0xc), region = 169 }
 0xbf3   :  { %2866 = vsyncpa [#allocation4], 1 }
 0xbf4   :  { %2868 = vsyncpa [#allocation4 + $0x1], 1 }
 0xbf5   :  { %2869 = vsyncpa [#allocation7], 1 }
 0xbf6   :  { %2870 = vsyncpa [#allocation10], 1 }
 0xbf7   :  { %2871 = vsyncpa [#allocation5], 1 }
 0xbf8   :  { %2873 = vsyncpa [#allocation5 + $0x1], 1 }

// kernel: tpu_custom_call.1
= control target key start
LH: loop header
LB: loop body
LE: loop exit
PB: predicated region body
PF: predicated region fallthrough
CT: control target
= control target key end

     0   :  { %s4538_s0 = inlined_call_operand.vmem [shape: bf16[2,8,128], index: 0, kind: input, shape index: {}]   ;;  %s4539_s1 = inlined_call_operand.vmem [shape: f32[2,8,1], index: 1, kind: input, shape index: {}]   ;;  %s4540_s2 = inlined_call_operand.vmem [shape: f32[2,1,128], index: 2, kind: input, shape index: {}]   ;;  %s4541_s3 = inlined_call_operand.hbm [shape: f32[2,1,1536], index: 3, kind: input, shape index: {}]   ;;  %s4542_s4 = inlined_call_operand.vmem [shape: f32[2,1,128], index: 4, kind: input, shape index: {}]   ;;  %s4543_s5 = inlined_call_operand.vmem [shape: f32[2,1,128], index: 5, kind: input, shape index: {}]   ;;  %s4544_s6 = inlined_call_operand.hbm [shape: bf16[128,1536], index: 6, kind: input, shape index: {}]   ;;  %s4545_s7 = inlined_call_operand.hbm [shape: bf16[4,128,128], index: 7, kind: input, shape index: {}]   ;;  %s4546_s8 = inlined_call_operand.hbm [shape: bf16[4,128,128], index: 8, kind: input, shape index: {}]   ;;  %s4547_s9 = inlined_call_operand.vmem [shape: f32[1,128], index: 9, kind: input, shape index: {}]   ;;  %s4548_s10 = inlined_call_operand.hbm [shape: f32[2,8,128], index: 10, kind: output, shape index: {}]  }
   0x1   :  { %4555 = sst [smem:[#allocation18_spill]] %s4544_s6 }
   0x2   :  { %4556 = sst [smem:[#allocation19_spill]] %s4545_s7 }
   0x3   :  { %4557 = sst [smem:[#allocation20_spill]] %s4548_s10 }
   0x4   :  { %15 = vsyncpa [#allocation4], 0 }
   0x5   :  { %17 = vsyncpa [#allocation4 + $0x1], 0 }
   0x6   :  { %18 = vsyncpa [#allocation7], 0 }
   0x7   :  { %19 = vsyncpa [#allocation10], 0 }
   0x8   :  { %20 = vsyncpa [#allocation5], 0 }
   0x9   :  { %22 = vsyncpa [#allocation5 + $0x1], 0  ;;  %s4157_s13 = smov 0   ;;  %s4159_s14 = smov 0  }
   0xa   :  { %s4161_s15 = smov 0   ;;  %s4163_s16 = smov 0  }
   0xb   :  { %s4165_s17 = smov 0   ;;  %s4167_s18 = smov 0  }
   0xc LB: > { %4558 = sst [smem:[#allocation16_spill]] %s4068_s13  ;;  %s3044_s19 = sadd.s32 4294967295, %s4088_s18   ;;  %s4088_s18 = sphi %s4167_s18, %s28_s18   ;;  %s4084_s17 = sphi %s4165_s17, %s4581_s17   ;;  %s4080_s16 = sphi %s4163_s16, %s4580_s16   ;;  %s4076_s15 = sphi %s4161_s15, %s4579_s15   ;;  %s4072_s14 = sphi %s4159_s14, %s4578_s14   ;;  %s4068_s13 = sphi %s4157_s13, %s4577_s13  }
   0xd   : > { %s3045_s20 = sadd.s32 4294967294, %s4088_s18   ;;  %p140_p0 = scmp.ne.s32.totalorder %s4072_s14, %s4068_s13 }
   0xe   : > { %p4191_p1 = scmp.eq.s32.totalorder %s3044_s19, 0  ;;  %p4195_p2 = scmp.eq.s32.totalorder %s3044_s19, 1 }
   0xf   : > { %p308_p3 = scmp.eq.s32.totalorder %s3045_s20, 1  ;;  %p3046_p5 = scmp.ge.s32.totalorder %s4088_s18, 1 }
  0x10   : > { %s4559_s21 = scalar_select %p4191_p1, 1, 0 }
  0x11   : > { %p4201_p4 = por %p4191_p1, %p140_p0  ;;  %p4206_p6 = por %p308_p3, %p140_p0 }
  0x12   : > { %p315_p7 = scmp.lt.s32.totalorder %s4088_s18, 3  ;;  %s4090_s26 = smov [#allocation6]  }
  0x13   : > { %s4561_s23 = scalar_select %p4201_p4, 1, 0 }
  0x14   : > { %s4562_s24 = scalar_select %p4206_p6, 1, 0 }
  0x15   : > { %p4211_p8 = pnand %p3046_p5, %p315_p7  ;;  %s327_s27 = sshll.u32 %s4090_s26, 4  ;;  %s328_s27 = int_to_ptr.vmem [resolvable:$true] %s327_s27 }
  0x16   : > { %4563 = sst [smem:[#allocation17_spill]] %s4562_s24  ;;  %s4091_s29 = smov [#allocation8]  }
  0x17   : > { %p3583_p9 = pneg %p4211_p8  ;;  %s340_s30 = sshll.u32 %s4091_s29, 4  ;;  %s341_s30 = int_to_ptr.vmem [resolvable:$true] %s340_s30 }
  0x18   : > { %s3905_s11 = scalar_lea.vmem %s328_s27, 12288  ;;  %p3913_p5 = scmp.lt.s32.totalorder %s328_s27, %s328_s27 }
  0x19   : > { %p4220_p11 = pnand %p3583_p9, %p4191_p1  ;;  %p3906_p13 = scmp.ne.s32.totalorder %s328_s27, %s3905_s11 }
  0x1a   : > { %p3914_p7 = scmp.lt.s32.totalorder %s3905_s11, %s3905_s11 }
  0x1b   : > { %p3896_p12 = pneg %p4220_p11 }
  0x1c   : > { %p3915_p10 = por %p3914_p7, %p3913_p5 }
  0x1d   : > { %p3908_p0 = pnand %p3906_p13, %p3896_p12 }
  0x1f   : > { %p3909_p3 = pneg %p3908_p0 }
  0x21   : > { %p3916_p9 = pnand %p3915_p10, %p3909_p3 }
  0x23   : > { %3919 = shalt.err (!%p3916_p9)
}
  0x24   : > { %s4092_s12 = smov 768   ;;  %s4093_s19 = smov 48  }
  0x25   : > { %s4566_s6 = sld [smem:[#allocation18_spill]]  ;;  %s3931_s29 = scalar_lea.vmem %s341_s30, 4096 }
  0x26   : > { %p3932_p6 = scmp.ne.s32.totalorder %s341_s30, %s3931_s29  ;;  %p3939_p1 = scmp.lt.s32.totalorder %s341_s30, %s341_s30 }
  0x27   : > { %p3940_p4 = scmp.lt.s32.totalorder %s3931_s29, %s3931_s29 }
  0x28   : > { %p3934_p13 = pnand %p3932_p6, %p3896_p12 }
  0x29   : > { %p3941_p5 = por %p3940_p4, %p3939_p1 }
  0x2a   : > { %p3935_p0 = pneg %p3934_p13 }
  0x2b   : > { %3586 = dma.hbm_to_vmem [thread:$0]  (!%p4220_p11), %s4566_s6, 12288, %s328_s27, [#allocation7], %s4092_s12, %s4092_s12, %s4093_s19  }
  0x2c   : > { %p3942_p10 = pnand %p3941_p5, %p3935_p0 }
  0x2e   : > { %3945 = shalt.err (!%p3942_p10)
}
  0x2f   : > { %s4094_s11 = smov 64   ;;  %s4095_s24 = smov 4  }
  0x30   : > { %s4567_s7 = sld [smem:[#allocation19_spill]]  ;;  %s4096_s27 = smov [#allocation9]  }
  0x31   : > { %s353_s12 = sshll.u32 %s4096_s27, 4  ;;  %s354_s12 = int_to_ptr.vmem [resolvable:$true] %s353_s12 }
  0x32   : > { %s3957_s19 = scalar_lea.vmem %s354_s12, 4096  ;;  %p3965_p4 = scmp.lt.s32.totalorder %s354_s12, %s354_s12 }
  0x33   : > { %p3958_p6 = scmp.ne.s32.totalorder %s354_s12, %s3957_s19  ;;  %p3966_p7 = scmp.lt.s32.totalorder %s3957_s19, %s3957_s19 }
  0x35   : > { %p3960_p3 = pnand %p3958_p6, %p3896_p12  ;;  %p3967_p9 = por %p3966_p7, %p3965_p4 }
  0x36   : > { %3589 = dma.hbm_to_vmem [thread:$0]  (!%p4220_p11), %s4567_s7, 4096, %s341_s30, [#allocation7], %s4094_s11, %s4094_s11, %s4095_s24  }
  0x37   : > { %p3961_p1 = pneg %p3960_p3 }
  0x39   : > { %p3968_p13 = pnand %p3967_p9, %p3961_p1 }
  0x3b   : > { %3971 = shalt.err (!%p3968_p13)
}
  0x3c   : > { %3592 = dma.hbm_to_vmem [thread:$0]  (!%p4220_p11), %s4546_s8, 4096, %s354_s12, [#allocation10], %s4094_s11, %s4094_s11, %s4095_s24  }
  0x3d   : > { %s40_s10 = sadd.s32 1, %s4084_s17  ;;  %s127_s13 = sadd.s32 1, %s4076_s15 }
  0x3e   : > { %p42_p12 = scmp.ge.s32.totalorder %s40_s10, 2  ;;  %p134_p0 = scmp.ne.s32.totalorder %s4076_s15, %s4072_s14 }
  0x3f   : > { %p135_p5 = scmp.eq.s32.totalorder %s4088_s18, 0  ;;  %p3604_p3 = scmp.lt.s32.totalorder %s4088_s18, 2 }
  0x40   : > { %s4583_s10 = smov (%p42_p12, %s40_s10), 0  ;;  %p4259_p6 = por %p4195_p2, %p134_p0 }
  0x41   : > { %p136_p10 = por %p135_p5, %p134_p0  ;;  %s124_s30 = ssub.s32 %s4084_s17, %s4583_s10 }
  0x42   : > { %p125_p1 = scmp.eq.s32.totalorder %s124_s30, 0  ;;  %s393_s29 = sand.u32 1, %s4076_s15  }
  0x43   : > { %s3564_s27 = smul.u32 12, %s393_s29  ;;  %p4271_p11 = pnand %p3604_p3, %p136_p10 }
  0x44   : > { %s4268_s24 = scalar_select %p125_p1, %s4076_s15, %s127_s13  }
  0x45   : > { %s3565_s11 = smul.u32 192, %s4084_s17  ;;  %s397_s12 = scalar_lea.vmem [#allocation3], %s3564_s27 }
  0x46   : > { %s405_s19 = sshll.u32 %s397_s12, 4  ;;  %s394_s7 = scalar_lea.sflag [#allocation4], %s393_s29  ;;  %s406_s19 = int_to_ptr.vmem [resolvable:$true] %s405_s19 }
  0x47   : > { %s403_s6 = scalar_lea.hbm %s4541_s3, %s3565_s11  ;;  %p3974_p2 = pneg %p4271_p11 }
  0x48   : > { %s3985_s30 = scalar_lea.vmem %s406_s19, 192  ;;  %s4097_s13 = smov [#allocation3]  }
  0x49   : > { %p3986_p4 = scmp.ne.s32.totalorder %s406_s19, %s3985_s30  ;;  %s3990_s27 = sshll.u32 %s4097_s13, 4  ;;  %s3991_s27 = int_to_ptr.vmem [resolvable:$false] %s3990_s27 }
  0x4a   : > { %s3992_s12 = scalar_lea.vmem %s3991_s27, 384  ;;  %p3993_p13 = scmp.lt.s32.totalorder %s406_s19, %s3991_s27 }
  0x4b   : > { %p3988_p7 = pnand %p3986_p4, %p3974_p2  ;;  %p3994_p12 = scmp.lt.s32.totalorder %s3992_s12, %s3985_s30 }
  0x4d   : > { %p3989_p9 = pneg %p3988_p7  ;;  %p3995_p0 = por %p3994_p12, %p3993_p13 }
  0x4f   : > { %p3996_p5 = pnand %p3995_p0, %p3989_p9 }
  0x51   : > { %3999 = shalt.err (!%p3996_p5)
}
  0x52   : > { %3596 = dma.hbm_to_vmem [thread:$0]  (!%p4271_p11), %s403_s6, 192, %s406_s19, %s394_s7  }
  0x53   : > { %426 = sbr.rel (%p4211_p8) target bundleno = 3037 (0xbdd), region = 60  ;;  %s4285_s29 = sand.u32 (!%p4211_p8), 1, %s4072_s14  }
  0x54   : > { %s3566_s11 = smul.u32 (!%p4211_p8), 12, %s4285_s29  ;;  %s429_s26 = scalar_lea.sflag (!%p4211_p8), [#allocation4], %s4285_s29 }
  0x55   : > { %p4570_p10 = scmp.ne.s32.totalorder (!%p4211_p8), %s4561_s23, 0 }
  0x56   : > { %s4289_s22 = scalar_lea.vmem (!%p4211_p8), [#allocation3], %s3566_s11 }
  0x58   : > { %4051 = dma.done.wait (%p4570_p10), %s429_s26, 192  }
  0x59   : > { %4053 = vsyncadd (%p4570_p10), %s429_s26, 4294967104  ;;  %p4571_p3 = scmp.ne.s32.totalorder %s4559_s21, 0 }
  0x5b   : > { %4055 = dma.done.wait (%p4571_p3), [#allocation7], 16384  }
  0x5c   : > { %4057 = vsyncadd (%p4571_p3), [#allocation7], 4294950912 }
  0x5d   : > { %4059 = dma.done.wait (%p4571_p3), [#allocation10], 4096  }
  0x5e   : > { %4061 = vsyncadd (%p4571_p3), [#allocation10], 4294963200  ;;  %p501_p8 = scmp.lt.s32.totalorder %s4080_s16, 1  ;;  %v3668_v4 = vld [vmem:[#allocation6 + $0x2a4] ss:$48 sps:$4 sm:$0xff]   ;;  %v542_v16 = vlaneseq  ;;  %v4098_v45 = vmov 0  }
  0x5f   : > { %v3670_v5 = vld [vmem:[#allocation6 + $0x2ac] ss:$48 sps:$4 sm:$0xff]   ;;  %v3672_v6 = vld [vmem:[#allocation6 + $0x2a0] ss:$48 sps:$4 sm:$0xff]   ;;  %v3673_v7 = vld [vmem:[#allocation6 + $0x2a8] ss:$48 sps:$4 sm:$0xff]   ;;  %1130 = vmatprep.subr.bf16.mxu0 %v3668_v4  ;;  %1162 = vmatprep.mubr.bf16.mxu0 %v4098_v45 }
  0x60   : > { %s4305_s6 = scalar_select %p501_p8, %s4080_s16, 1  ;;  %v3674_v8 = vld [vmem:[#allocation6 + $0x244] ss:$48 sps:$4 sm:$0xff]   ;;  %v3676_v9 = vld [vmem:[#allocation6 + $0x24c] ss:$48 sps:$4 sm:$0xff]   ;;  %1171 = vmatprep.subr.bf16.mxu1 %v3670_v5  ;;  %1131 = vmatpush1.bf16.msra.mxu0 %v3672_v6  ;;  %v543_v17 = vand.u32 127, %v542_v16 }
  0x61   : > { %v3678_v10 = vld [vmem:[#allocation6 + $0x240] ss:$48 sps:$4 sm:$0xff]   ;;  %1172 = vmatpush1.bf16.msra.mxu1 %v3673_v7  ;;  %v3679_v11 = vld [vmem:[#allocation6 + $0x248] ss:$48 sps:$4 sm:$0xff]   ;;  %v3680_v12 = vld [vmem:[#allocation6 + $0x1e4] ss:$48 sps:$4 sm:$0xff]   ;;  %1132 = vmatprep.subr.bf16.mxu0 %v3674_v8 }
  0x62   : > { %s3057_s7 = sshll.u32 %s4305_s6, 2  ;;  %s514_s19 = scalar_lea.vmem %s4540_s2, %s4305_s6  ;;  %v3682_v13 = vld [vmem:[#allocation6 + $0x1ec] ss:$48 sps:$4 sm:$0xff]   ;;  %1173 = vmatprep.subr.bf16.mxu1 %v3676_v9  ;;  %v3684_v14 = vld [vmem:[#allocation6 + $0x1e0] ss:$48 sps:$4 sm:$0xff]   ;;  %vm544_vm0 = vcmp.lt.s32.totalorder %v543_v17, 32  ;;  %1203 = vmatprep.mubr.bf16.mxu1 %v4098_v45 }
  0x63   : > { %s504_s13 = scalar_lea.vmem %s4538_s0, %s3057_s7  ;;  %v3059_v0 = vld [vmem:[%s514_s19] ss:$0 sm:$0xff]  ;;  %v3686_v23 = vld [vmem:[#allocation6 + $0x184] ss:$48 sps:$4 sm:$0xff]   ;;  %v3688_v24 = vld [vmem:[#allocation6 + $0x18c] ss:$48 sps:$4 sm:$0xff]   ;;  %3667 = vset.pattern.permute.xlu0 %v4098_v45  ;;  %s520_s7 = scalar_lea.vmem %s4543_s5, %s4305_s6 }
  0x64   : > { %v529_v1 = vld [vmem:[%s504_s13] sm:$0xf]  ;;  %1133 = vmatpush1.bf16.msra.mxu0 %v3678_v10  ;;  %v3690_v25 = vld [vmem:[#allocation6 + $0x180] ss:$48 sps:$4 sm:$0xff]   ;;  %v3692_v27 = vld [vmem:[#allocation6 + $0x124] ss:$48 sps:$4 sm:$0xff]   ;;  %s517_s19 = scalar_lea.vmem %s4542_s4, %s4305_s6 }
  0x65   : > { %v530_v2 = vunpack.c.l.bf16 %v529_v1  ;;  %v3685_v15 = vld [vmem:[#allocation6 + $0x1e8] ss:$48 sps:$4 sm:$0xff]   ;;  %1174 = vmatpush1.bf16.msra.mxu1 %v3679_v11  ;;  %1134 = vmatprep.subr.bf16.mxu0 %v3680_v12  ;;  %v3694_v28 = vld [vmem:[#allocation6 + $0x12c] ss:$48 sps:$4 sm:$0xff]   ;;  %v3696_v29 = vld [vmem:[#allocation6 + $0x120] ss:$48 sps:$4 sm:$0xff]  }
  0x66   : > { %1175 = vmatprep.subr.bf16.mxu1 %v3682_v13  ;;  %v3691_v26 = vld [vmem:[#allocation6 + $0x188] ss:$48 sps:$4 sm:$0xff]   ;;  %v3698_v31 = vld [vmem:[#allocation6 + $0xc4] ss:$48 sps:$4 sm:$0xff]   ;;  %v3700_v32 = vld [vmem:[#allocation6 + $0xcc] ss:$48 sps:$4 sm:$0xff]  }
  0x67   : > { %v537_v3 = vmul.f32 %v3059_v0, %v530_v2  ;;  %v3697_v30 = vld [vmem:[#allocation6 + $0x128] ss:$48 sps:$4 sm:$0xff]   ;;  %v3702_v33 = vld [vmem:[#allocation6 + $0xc0] ss:$48 sps:$4 sm:$0xff]   ;;  %v3704_v35 = vld [vmem:[#allocation6 + $0x64] ss:$48 sps:$4 sm:$0xff]  }
  0x68   : > { %1135 = vmatpush1.bf16.msra.mxu0 %v3684_v14  ;;  %v3703_v34 = vld [vmem:[#allocation6 + $0xc8] ss:$48 sps:$4 sm:$0xff]   ;;  %v3706_v36 = vld [vmem:[#allocation6 + $0x6c] ss:$48 sps:$4 sm:$0xff]   ;;  %v3708_v37 = vld [vmem:[#allocation6 + $0x60] ss:$48 sps:$4 sm:$0xff]  }
  0x69   : > { %538 = vadd.xlane.f32.xlu0 %v537_v3  ;;  %1176 = vmatpush1.bf16.msra.mxu1 %v3685_v15  ;;  %v3709_v38 = vld [vmem:[#allocation6 + $0x68] ss:$48 sps:$4 sm:$0xff]   ;;  %v3710_v39 = vld [vmem:[#allocation6 + $0x4] ss:$48 sps:$4 sm:$0xff]   ;;  %v3712_v40 = vld [vmem:[#allocation6 + $0xc] ss:$48 sps:$4 sm:$0xff]  }
  0x6a   : > { %1136 = vmatprep.subr.bf16.mxu0 %v3686_v23  ;;  %1177 = vmatprep.subr.bf16.mxu1 %v3688_v24  ;;  %v3714_v41 = vld [vmem:[#allocation6] ss:$48 sps:$4 sm:$0xff]   ;;  %v3715_v42 = vld [vmem:[#allocation6 + $0x8] ss:$48 sps:$4 sm:$0xff]   ;;  %v3718_v43 = vld [vmem:[#allocation6 + $0x2b4] ss:$48 sps:$4 sm:$0xff]  }
  0x6b   : > { %v3721_v44 = vld [vmem:[#allocation6 + $0x2bc] ss:$48 sps:$4 sm:$0xff]   ;;  %v3716_v51 = vld [vmem:[#allocation6 + $0x2b0] ss:$48 sps:$4 sm:$0xff]   ;;  %v3719_v52 = vld [vmem:[#allocation6 + $0x2b8] ss:$48 sps:$4 sm:$0xff]  }
  0x6c   : > { %1137 = vmatpush1.bf16.msra.mxu0 %v3690_v25  ;;  %v3724_v54 = vld [vmem:[#allocation6 + $0x254] ss:$48 sps:$4 sm:$0xff]   ;;  %v3727_v55 = vld [vmem:[#allocation6 + $0x25c] ss:$48 sps:$4 sm:$0xff]   ;;  %v3722_v56 = vld [vmem:[#allocation6 + $0x250] ss:$48 sps:$4 sm:$0xff]  }
  0x6d   : > { %1178 = vmatpush1.bf16.msra.mxu1 %v3691_v26  ;;  %1138 = vmatprep.subr.bf16.mxu0 %v3692_v27  ;;  %v3725_v57 = vld [vmem:[#allocation6 + $0x258] ss:$48 sps:$4 sm:$0xff]   ;;  %v3730_v58 = vld [vmem:[#allocation6 + $0x1f4] ss:$48 sps:$4 sm:$0xff]   ;;  %v3733_v59 = vld [vmem:[#allocation6 + $0x1fc] ss:$48 sps:$4 sm:$0xff]  }
  0x6e   : > { %1179 = vmatprep.subr.bf16.mxu1 %v3694_v28  ;;  %v3728_v60 = vld [vmem:[#allocation6 + $0x1f0] ss:$48 sps:$4 sm:$0xff]   ;;  %v3731_v61 = vld [vmem:[#allocation6 + $0x1f8] ss:$48 sps:$4 sm:$0xff]   ;;  %v3736_v62 = vld [vmem:[#allocation6 + $0x194] ss:$48 sps:$4 sm:$0xff]  }
  0x6f   : > { %v3739_v63 = vld [vmem:[#allocation6 + $0x19c] ss:$48 sps:$4 sm:$0xff]   ;;  %v3734_v0 = vld [vmem:[#allocation6 + $0x190] ss:$48 sps:$4 sm:$0xff]   ;;  %v3737_v1 = vld [vmem:[#allocation6 + $0x198] ss:$48 sps:$4 sm:$0xff]  }
  0x70   : > { %1139 = vmatpush1.bf16.msra.mxu0 %v3696_v29  ;;  %v3742_v2 = vld [vmem:[#allocation6 + $0x134] ss:$48 sps:$4 sm:$0xff]   ;;  %v3740_v4 = vld [vmem:[#allocation6 + $0x130] ss:$48 sps:$4 sm:$0xff]   ;;  %v3743_v5 = vld [vmem:[#allocation6 + $0x138] ss:$48 sps:$4 sm:$0xff]  }
  0x71   : > { %1180 = vmatpush1.bf16.msra.mxu1 %v3697_v30  ;;  %1140 = vmatprep.subr.bf16.mxu0 %v3698_v31  ;;  %v3748_v6 = vld [vmem:[#allocation6 + $0xd4] ss:$48 sps:$4 sm:$0xff]   ;;  %v3751_v7 = vld [vmem:[#allocation6 + $0xdc] ss:$48 sps:$4 sm:$0xff]   ;;  %v3746_v8 = vld [vmem:[#allocation6 + $0xd0] ss:$48 sps:$4 sm:$0xff]  }
  0x72   : > { %1181 = vmatprep.subr.bf16.mxu1 %v3700_v32  ;;  %v3749_v9 = vld [vmem:[#allocation6 + $0xd8] ss:$48 sps:$4 sm:$0xff]   ;;  %v3754_v10 = vld [vmem:[#allocation6 + $0x74] ss:$48 sps:$4 sm:$0xff]   ;;  %v3757_v11 = vld [vmem:[#allocation6 + $0x7c] ss:$48 sps:$4 sm:$0xff]  }
  0x73   : > { %v3752_v12 = vld [vmem:[#allocation6 + $0x70] ss:$48 sps:$4 sm:$0xff]   ;;  %v3755_v13 = vld [vmem:[#allocation6 + $0x78] ss:$48 sps:$4 sm:$0xff]   ;;  %v3760_v14 = vld [vmem:[#allocation6 + $0x14] ss:$48 sps:$4 sm:$0xff]  }
  0x74   : > { %1141 = vmatpush1.bf16.msra.mxu0 %v3702_v33  ;;  %v3763_v15 = vld [vmem:[#allocation6 + $0x1c] ss:$48 sps:$4 sm:$0xff]   ;;  %v3758_v17 = vld [vmem:[#allocation6 + $0x10] ss:$48 sps:$4 sm:$0xff]   ;;  %v3772_v23 = vld [vmem:[#allocation6 + $0x264] ss:$48 sps:$4 sm:$0xff]  }
  0x75   : > { %1182 = vmatpush1.bf16.msra.mxu1 %v3703_v34  ;;  %1142 = vmatprep.subr.bf16.mxu0 %v3704_v35  ;;  %v3775_v24 = vld [vmem:[#allocation6 + $0x26c] ss:$48 sps:$4 sm:$0xff]   ;;  %v3770_v25 = vld [vmem:[#allocation6 + $0x260] ss:$48 sps:$4 sm:$0xff]   ;;  %v3773_v26 = vld [vmem:[#allocation6 + $0x268] ss:$48 sps:$4 sm:$0xff]  }
  0x76   : > { %1183 = vmatprep.subr.bf16.mxu1 %v3706_v36  ;;  %v3778_v27 = vld [vmem:[#allocation6 + $0x204] ss:$48 sps:$4 sm:$0xff]   ;;  %v3781_v28 = vld [vmem:[#allocation6 + $0x20c] ss:$48 sps:$4 sm:$0xff]   ;;  %v3776_v29 = vld [vmem:[#allocation6 + $0x200] ss:$48 sps:$4 sm:$0xff]  }
  0x77   : > { %v3779_v30 = vld [vmem:[#allocation6 + $0x208] ss:$48 sps:$4 sm:$0xff]   ;;  %v3784_v31 = vld [vmem:[#allocation6 + $0x1a4] ss:$48 sps:$4 sm:$0xff]   ;;  %v3787_v32 = vld [vmem:[#allocation6 + $0x1ac] ss:$48 sps:$4 sm:$0xff]  }
  0x78   : > { %1143 = vmatpush1.bf16.msra.mxu0 %v3708_v37  ;;  %v3782_v33 = vld [vmem:[#allocation6 + $0x1a0] ss:$48 sps:$4 sm:$0xff]   ;;  %v3785_v34 = vld [vmem:[#allocation6 + $0x1a8] ss:$48 sps:$4 sm:$0xff]   ;;  %v3790_v35 = vld [vmem:[#allocation6 + $0x144] ss:$48 sps:$4 sm:$0xff]  }
  0x79   : > { %1184 = vmatpush1.bf16.msra.mxu1 %v3709_v38  ;;  %1144 = vmatprep.subr.bf16.mxu0 %v3710_v39  ;;  %v3793_v36 = vld [vmem:[#allocation6 + $0x14c] ss:$48 sps:$4 sm:$0xff]   ;;  %v3788_v37 = vld [vmem:[#allocation6 + $0x140] ss:$48 sps:$4 sm:$0xff]   ;;  %v3791_v38 = vld [vmem:[#allocation6 + $0x148] ss:$48 sps:$4 sm:$0xff]  }
  0x7a   : > { %1185 = vmatprep.subr.bf16.mxu1 %v3712_v40  ;;  %v3796_v39 = vld [vmem:[#allocation6 + $0xe4] ss:$48 sps:$4 sm:$0xff]   ;;  %v3799_v40 = vld [vmem:[#allocation6 + $0xec] ss:$48 sps:$4 sm:$0xff]   ;;  %vm4100_vm1 = vmmov 0   ;;  %vm1573_vm2 = vcmask 1043456  }
  0x7b   : > { %vm1557_vm3 = vcmask 64512   ;;  %s3058_s21 = sshll.u32 %s4305_s6, 3  ;;  %s3056_s20 = sshll.u32 %s4285_s29, 3 }
  0x7c   : > { %1145 = vmatpush1.bf16.msra.mxu0 %v3714_v41  ;;  %v3794_v41 = vld [vmem:[#allocation6 + $0xe0] ss:$48 sps:$4 sm:$0xff]   ;;  %s511_s11 = scalar_lea.vmem %s4539_s1, %s3058_s21  ;;  %s3235_s6 = sshll.u32 %s4080_s16, 7 }
  0x7d   : > { %1186 = vmatpush1.bf16.msra.mxu1 %v3715_v42  ;;  %1212 = vmatprep.subr.bf16.mxu0 %v3718_v43  ;;  %v3797_v42 = vld [vmem:[#allocation6 + $0xe8] ss:$48 sps:$4 sm:$0xff]   ;;  %v3802_v43 = vld [vmem:[#allocation6 + $0x84] ss:$48 sps:$4 sm:$0xff]   ;;  %s500_s21 = scalar_lea.vmem [#allocation11], %s3056_s20  ;;  %s4572_s26 = sld [smem:[#allocation20_spill]] }
  0x7e   : > { %1253 = vmatprep.subr.bf16.mxu1 %v3721_v44  ;;  %v3805_v44 = vld [vmem:[#allocation6 + $0x8c] ss:$48 sps:$4 sm:$0xff]   ;;  %s2848_s27 = sshll.u32 %s500_s21, 4  ;;  %s4101_s25 = smov [#allocation11]   ;;  %s2849_s27 = int_to_ptr.vmem [resolvable:$true] %s2848_s27 }
  0x7f   : > { %s4000_s23 = scalar_lea.vmem %s2849_s27, 128  ;;  %s4004_s16 = sshll.u32 %s4101_s25, 4  ;;  %s4005_s16 = int_to_ptr.vmem [resolvable:$false] %s4004_s16 }
  0x80   : > { %p4001_p1 = scmp.ne.s32.totalorder %s2849_s27, %s4000_s23  ;;  %p4007_p4 = scmp.lt.s32.totalorder %s2849_s27, %s4005_s16 }
  0x82   : > { %p4002_p11 = pnand %p4001_p1, %p4259_p6 }
  0x84   : > { %p4003_p2 = pneg %p4002_p11 }
  0xf2   : > { %v539_v18 = vpop.xlane.xlu0 %538 }
  0xf3   : > { %v540_v19 = vmul.f32 0.03125, %v539_v18  ;;  %v3761_v18 = vld [vmem:[#allocation6 + $0x18] ss:$48 sps:$4 sm:$0xff]  }
  0xf5   : > { %v541_v20 = vsub.f32 %v537_v3, %v540_v19  ;;  %v3745_v3 = vld [vmem:[#allocation6 + $0x13c] ss:$48 sps:$4 sm:$0xff]   ;;  %v3766_v19 = vld [vmem:[#allocation6 + $0x2c4] ss:$48 sps:$4 sm:$0xff]  }
  0xf7   : > { %v545_v21 = vsel %vm544_vm0, %v541_v20, 0.0  ;;  %v3769_v20 = vld [vmem:[#allocation6 + $0x2cc] ss:$48 sps:$4 sm:$0xff]  }
  0xf8   : > { %v546_v22 = vmul.f32 %v545_v21, %v545_v21 }
  0xfa   : > { %547 = vadd.xlane.f32.xlu0 %v546_v22  ;;  %v3767_v22 = vld [vmem:[#allocation6 + $0x2c8] ss:$48 sps:$4 sm:$0xff]  }
 0x183   : > { %v548_v46 = vpop.xlane.xlu0 %547 }
 0x184   : > { %v549_v47 = vmul.f32 0.03125, %v548_v46  ;;  %v3803_v46 = vld [vmem:[#allocation6 + $0x88] ss:$48 sps:$4 sm:$0xff]  }
 0x186   : > { %v550_v48 = vadd.f32 1e-05, %v549_v47  ;;  %v3808_v47 = vld [vmem:[#allocation6 + $0x24] ss:$48 sps:$4 sm:$0xff]  }
 0x188   : > { %3876 = vrsqrt.f32 %v550_v48  ;;  %v3811_v48 = vld [vmem:[#allocation6 + $0x2c] ss:$48 sps:$4 sm:$0xff]  }
 0x195   : > { %v3877_v49 = vpop.eup %3876 }
 0x196   : > { %v552_v50 = vmul.f32 %v3877_v49, %v545_v21  ;;  %v3764_v21 = vld [vmem:[#allocation6 + $0x2c0] ss:$48 sps:$4 sm:$0xff]  }
 0x197   : > { %v3806_v49 = vld [vmem:[#allocation6 + $0x20] ss:$48 sps:$4 sm:$0xff]  }
 0x198   : > { %v4319_v53 = vpack.c.bf16 %v552_v50, %v552_v50  ;;  %v3809_v50 = vld [vmem:[#allocation6 + $0x28] ss:$48 sps:$4 sm:$0xff]  }
 0x19a   : > { %1163 = vmatmul.mubr.bf16.vlgmr.msra.gmra.mxu0 %v4319_v53  ;;  %1204 = vmatmul.mubr.bf16.vlgmr.msra.gmra.mxu1 %v4319_v53 }
 0x19b   : > { %1213 = vmatpush1.bf16.msra.mxu0 %v3716_v51  ;;  %1254 = vmatpush1.bf16.msra.mxu1 %v3719_v52  ;;  %v4099_v51 = vmov 0.0   ;;  %v4338_v52 = vshrl.u32 %v542_v16, 7 }
 0x19c   : > { %1214 = vmatprep.subr.bf16.mxu0 %v3724_v54  ;;  %1255 = vmatprep.subr.bf16.mxu1 %v3727_v55 }
 0x19d   : > { %1244 = vmatprep.mubr.bf16.mxu0 %v4098_v45  ;;  %1285 = vmatprep.mubr.bf16.mxu1 %v4098_v45  ;;  %v1380_v54 = vsub.s32 0, %v4338_v52  ;;  %v1388_v55 = vsub.s32 2, %v4338_v52 }
 0x19f   : > { %1215 = vmatpush1.bf16.msra.mxu0 %v3722_v56  ;;  %1256 = vmatpush1.bf16.msra.mxu1 %v3725_v57  ;;  %v1392_v56 = vsub.s32 3, %v4338_v52  ;;  %v527_v57 = vld [vmem:[%s4289_s22] sm:$0xff] }
 0x1a0   : > { %1216 = vmatprep.subr.bf16.mxu0 %v3730_v58  ;;  %1257 = vmatprep.subr.bf16.mxu1 %v3733_v59  ;;  %v1381_v58 = vrot.slane %v527_v57, %v1380_v54  ;;  %v1389_v59 = vrot.slane %v527_v57, %v1388_v55 }
 0x1a3   : > { %1217 = vmatpush1.bf16.msra.mxu0 %v3728_v60  ;;  %1258 = vmatpush1.bf16.msra.mxu1 %v3731_v61  ;;  %v1393_v61 = vrot.slane %v527_v57, %v1392_v56 }
 0x1a4   : > { %1218 = vmatprep.subr.bf16.mxu0 %v3736_v62  ;;  %1259 = vmatprep.subr.bf16.mxu1 %v3739_v63 }
 0x1a7   : > { %1219 = vmatpush1.bf16.msra.mxu0 %v3734_v0  ;;  %1260 = vmatpush1.bf16.msra.mxu1 %v3737_v1 }
 0x1a8   : > { %1220 = vmatprep.subr.bf16.mxu0 %v3742_v2  ;;  %1261 = vmatprep.subr.bf16.mxu1 %v3745_v3 }
 0x1ab   : > { %1221 = vmatpush1.bf16.msra.mxu0 %v3740_v4  ;;  %1262 = vmatpush1.bf16.msra.mxu1 %v3743_v5 }
 0x1ac   : > { %1222 = vmatprep.subr.bf16.mxu0 %v3748_v6  ;;  %1263 = vmatprep.subr.bf16.mxu1 %v3751_v7 }
 0x1af   : > { %1223 = vmatpush1.bf16.msra.mxu0 %v3746_v8  ;;  %1264 = vmatpush1.bf16.msra.mxu1 %v3749_v9 }
 0x1b0   : > { %1224 = vmatprep.subr.bf16.mxu0 %v3754_v10  ;;  %1265 = vmatprep.subr.bf16.mxu1 %v3757_v11  ;;  %v1396_v11 = vsub.s32 4, %v4338_v52 }
 0x1b3   : > { %1225 = vmatpush1.bf16.msra.mxu0 %v3752_v12  ;;  %1266 = vmatpush1.bf16.msra.mxu1 %v3755_v13  ;;  %v1404_v12 = vsub.s32 6, %v4338_v52  ;;  %v1400_v13 = vsub.s32 5, %v4338_v52 }
 0x1b4   : > { %1226 = vmatprep.subr.bf16.mxu0 %v3760_v14  ;;  %1267 = vmatprep.subr.bf16.mxu1 %v3763_v15  ;;  %v1408_v14 = vsub.s32 7, %v4338_v52  ;;  %v1397_v15 = vrot.slane %v527_v57, %v1396_v11 }
 0x1b7   : > { %1227 = vmatpush1.bf16.msra.mxu0 %v3758_v17  ;;  %1268 = vmatpush1.bf16.msra.mxu1 %v3761_v18  ;;  %v1405_v17 = vrot.slane %v527_v57, %v1404_v12  ;;  %v1401_v18 = vrot.slane %v527_v57, %v1400_v13 }
 0x1b8   : > { %1294 = vmatprep.subr.bf16.mxu0 %v3766_v19  ;;  %1335 = vmatprep.subr.bf16.mxu1 %v3769_v20  ;;  %v1409_v19 = vrot.slane %v527_v57, %v1408_v14 }
 0x1ba   : > { %1245 = vmatmul.mubr.bf16.vlgmr.msra.gmra.mxu0 %v4319_v53  ;;  %1286 = vmatmul.mubr.bf16.vlgmr.msra.gmra.mxu1 %v4319_v53 }
 0x1bb   : > { %1295 = vmatpush1.bf16.msra.mxu0 %v3764_v21  ;;  %1336 = vmatpush1.bf16.msra.mxu1 %v3767_v22 }
 0x1bc   : > { %1296 = vmatprep.subr.bf16.mxu0 %v3772_v23  ;;  %1337 = vmatprep.subr.bf16.mxu1 %v3775_v24 }
 0x1bd   : > { %1326 = vmatprep.mubr.bf16.mxu0 %v4098_v45  ;;  %1367 = vmatprep.mubr.bf16.mxu1 %v4098_v45  ;;  %v3800_v45 = vld [vmem:[#allocation6 + $0x80] ss:$48 sps:$4 sm:$0xff]  }
 0x1bf   : > { %1297 = vmatpush1.bf16.msra.mxu0 %v3770_v25  ;;  %1338 = vmatpush1.bf16.msra.mxu1 %v3773_v26 }
 0x1c0   : > { %1298 = vmatprep.subr.bf16.mxu0 %v3778_v27  ;;  %1339 = vmatprep.subr.bf16.mxu1 %v3781_v28 }
 0x1c3   : > { %1299 = vmatpush1.bf16.msra.mxu0 %v3776_v29  ;;  %1340 = vmatpush1.bf16.msra.mxu1 %v3779_v30 }
 0x1c4   : > { %1300 = vmatprep.subr.bf16.mxu0 %v3784_v31  ;;  %1341 = vmatprep.subr.bf16.mxu1 %v3787_v32 }
 0x1c7   : > { %1301 = vmatpush1.bf16.msra.mxu0 %v3782_v33  ;;  %1342 = vmatpush1.bf16.msra.mxu1 %v3785_v34 }
 0x1c8   : > { %1302 = vmatprep.subr.bf16.mxu0 %v3790_v35  ;;  %1343 = vmatprep.subr.bf16.mxu1 %v3793_v36 }
 0x1cb   : > { %1303 = vmatpush1.bf16.msra.mxu0 %v3788_v37  ;;  %1344 = vmatpush1.bf16.msra.mxu1 %v3791_v38  ;;  %v528_v37 = vld [vmem:[%s4289_s22 + $0x8] sm:$0xf]  ;;  %s4496_s22 = scalar_lea.hbm %s4572_s26, %s3235_s6 }
 0x1cc   : > { %1304 = vmatprep.subr.bf16.mxu0 %v3796_v39  ;;  %1345 = vmatprep.subr.bf16.mxu1 %v3799_v40  ;;  %v1413_v39 = vrot.slane %v528_v37, %v1380_v54  ;;  %v1421_v40 = vrot.slane %v528_v37, %v1388_v55 }
 0x1cf   : > { %1305 = vmatpush1.bf16.msra.mxu0 %v3794_v41  ;;  %1346 = vmatpush1.bf16.msra.mxu1 %v3797_v42  ;;  %v1425_v42 = vrot.slane %v528_v37, %v1392_v56 }
 0x1d0   : > { %1306 = vmatprep.subr.bf16.mxu0 %v3802_v43  ;;  %1347 = vmatprep.subr.bf16.mxu1 %v3805_v44 }
 0x1d3   : > { %1307 = vmatpush1.bf16.msra.mxu0 %v3800_v45  ;;  %1348 = vmatpush1.bf16.msra.mxu1 %v3803_v46 }
 0x1d4   : > { %1308 = vmatprep.subr.bf16.mxu0 %v3808_v47  ;;  %1349 = vmatprep.subr.bf16.mxu1 %v3811_v48 }
 0x1d7   : > { %1309 = vmatpush1.bf16.msra.mxu0 %v3806_v49  ;;  %1350 = vmatpush1.bf16.msra.mxu1 %v3809_v50 }
 0x1d8   : > { %3356 = vmatprep.subr.bf16.mxu0 %v4099_v51  ;;  %3362 = vmatprep.subr.bf16.mxu1 %v4099_v51 }
 0x1da   : > { %1327 = vmatmul.mubr.bf16.vlgmr.msra.gmra.mxu0 %v4319_v53  ;;  %1368 = vmatmul.mubr.bf16.vlgmr.msra.gmra.mxu1 %v4319_v53  ;;  %v1384_v53 = vsub.s32 1, %v4338_v52 }
 0x1db   : > { %3358 = vmatprep.mubr.msk.bf16.mxu0 %vm4100_vm1, %v4099_v51  ;;  %3364 = vmatprep.mubr.msk.bf16.mxu1 %vm4100_vm1, %v4099_v51 }
 0x1dc   : > { %v1385_v60 = vrot.slane %v527_v57, %v1384_v53  ;;  %v1417_v41 = vrot.slane %v528_v37, %v1384_v53  ;;  %v3821_v37 = vld [vmem:[#allocation8 + $0x10] sm:$0xff]  }
 0x25a   : > { %v1164_v62 = vpop.f32.mrf.mxu0  ;;  %v1205_v63 = vpop.f32.mrf.mxu1 }
 0x25b   : > { %v1438_v2 = vmul.f32 %v1381_v58, %v1164_v62  ;;  %v1440_v16 = vmul.f32 %v1389_v59, %v1205_v63 }
 0x25c   : > { %v1166_v0 = vpop.f32.mrf.mxu0  ;;  %v1207_v1 = vpop.f32.mrf.mxu1 }
 0x25d   : > { %v1439_v3 = vmul.f32 %v1385_v60, %v1166_v0  ;;  %v1441_v4 = vmul.f32 %v1393_v61, %v1207_v1 }
 0x25e   : > { %v1168_v5 = vpop.f32.mrf.mxu0  ;;  %v1209_v6 = vpop.f32.mrf.mxu1 }
 0x25f   : > { %v3241_v7 = vpack.c.bf16 %v1439_v3, %v1438_v2  ;;  %v3246_v8 = vpack.c.bf16 %v1441_v4, %v1440_v16 }
 0x260   : > { %v1169_v9 = vpop.f32.mrf.mxu0  ;;  %v1210_v10 = vpop.f32.mrf.mxu1 }
 0x261   : > { %3242 = vst [vmem:[#allocation2] sm:$0xff] %v3241_v7   ;;  %3247 = vst [vmem:[#allocation2 + $0x8] sm:$0xff] %v3246_v8  }
 0x268   : > { %v1512_v35 = vld [vmem:[#allocation2] sm:$0xf]  ;;  %v3158_v38 = vld [vmem:[#allocation2 + $0x4] sm:$0xf] }
 0x27a   : > { %v1246_v20 = vpop.f32.mrf.mxu0  ;;  %v1287_v21 = vpop.f32.mrf.mxu1 }
 0x27b   : > { %v1442_v24 = vmul.f32 %v1397_v15, %v1246_v20  ;;  %v1444_v25 = vmul.f32 %v1405_v17, %v1287_v21  ;;  %v3814_v15 = vld [vmem:[#allocation8 + $0x78] sm:$0xff]   ;;  %v3816_v17 = vld [vmem:[#allocation8 + $0x70] sm:$0xff]  }
 0x27c   : > { %v1248_v22 = vpop.f32.mrf.mxu0  ;;  %v1289_v23 = vpop.f32.mrf.mxu1  ;;  %v3822_v20 = vld [vmem:[#allocation8 + $0x58] sm:$0xff]   ;;  %v3824_v21 = vld [vmem:[#allocation8 + $0x50] sm:$0xff]  }
 0x27d   : > { %v1443_v26 = vmul.f32 %v1401_v18, %v1248_v22  ;;  %v1445_v27 = vmul.f32 %v1409_v19, %v1289_v23  ;;  %v3818_v18 = vld [vmem:[#allocation8 + $0x68] sm:$0xff]   ;;  %v3820_v19 = vld [vmem:[#allocation8 + $0x60] sm:$0xff]  }
 0x27e   : > { %v1250_v28 = vpop.f32.mrf.mxu0  ;;  %v1291_v29 = vpop.f32.mrf.mxu1 }
 0x27f   : > { %v3251_v30 = vpack.c.bf16 %v1443_v26, %v1442_v24  ;;  %v3256_v31 = vpack.c.bf16 %v1445_v27, %v1444_v25 }
 0x280   : > { %v1251_v32 = vpop.f32.mrf.mxu0  ;;  %v1292_v33 = vpop.f32.mrf.mxu1 }
 0x281   : > { %3252 = vst [vmem:[#allocation2 + $0x10] sm:$0xff] %v3251_v30   ;;  %3257 = vst [vmem:[#allocation2 + $0x18] sm:$0xff] %v3256_v31   ;;  %v3812_v31 = vld [vmem:[#allocation8 + $0x38] sm:$0xff]   ;;  %v3813_v33 = vld [vmem:[#allocation8 + $0x30] sm:$0xff]  }
 0x288   : > { %v1514_v34 = vld [vmem:[#allocation2 + $0x10] sm:$0xf]  ;;  %v1659_v36 = vld [vmem:[#allocation2 + $0x14] sm:$0xf] }
 0x289   : > { %3357 = vmatpush3.bf16.xpose.msra.mxu0 %v1514_v34  ;;  %v3815_v34 = vld [vmem:[#allocation8 + $0x28] sm:$0xff]  }
 0x28a   : > { %3368 = vmatprep.subr.bf16.mxu0 %v4099_v51 }
 0x290   : > { %3359 = vmatmul.mubr.bf16.vlgmr.msra.gmra.mxu0 %v1512_v35  ;;  %v3817_v35 = vld [vmem:[#allocation8 + $0x20] sm:$0xff]  }
 0x291   : > { %3369 = vmatpush3.bf16.xpose.msra.mxu0 %v1659_v36  ;;  %3370 = vmatprep.mubr.msk.bf16.mxu0 %vm4100_vm1, %v4099_v51  ;;  %v3819_v36 = vld [vmem:[#allocation8 + $0x18] sm:$0xff]  }
 0x292   : > { %3380 = vmatprep.subr.bf16.mxu0 %v4099_v51 }
 0x298   : > { %3371 = vmatmul.mubr.bf16.vlgmr.msra.gmra.mxu0 %v3158_v38  ;;  %v3823_v38 = vld [vmem:[#allocation8 + $0x8] sm:$0xff]  }
 0x299   : > { %3396 = vmatprep.mubr.msk.bf16.mxu0 %vm4100_vm1, %v4099_v51  ;;  %3381 = vmatpush3.bf16.msra.mxu0 %v3814_v15 }
 0x29a   : > { %v1328_v43 = vpop.f32.mrf.mxu0  ;;  %v1369_v44 = vpop.f32.mrf.mxu1  ;;  %3382 = vmatprep.subr.bf16.mxu0 %v4099_v51 }
 0x29b   : > { %v1446_v47 = vmul.f32 %v1413_v39, %v1328_v43  ;;  %v1448_v48 = vmul.f32 %v1421_v40, %v1369_v44  ;;  %v3825_v39 = vld [vmem:[#allocation8] sm:$0xff]   ;;  %v3826_v40 = vld [vmem:[#allocation8 + $0x48] sm:$0xff]   ;;  %v3827_v43 = vld [vmem:[#allocation9 + $0x38] sm:$0xff]  }
 0x29c   : > { %v1330_v45 = vpop.f32.mrf.mxu0  ;;  %v1371_v46 = vpop.f32.mrf.mxu1 }
 0x29d   : > { %v1447_v49 = vmul.f32 %v1417_v41, %v1330_v45  ;;  %v1449_v50 = vmul.f32 %v1425_v42, %v1371_v46  ;;  %3383 = vmatpush3.bf16.msra.mxu0 %v3816_v17  ;;  %v3828_v41 = vld [vmem:[#allocation8 + $0x40] sm:$0xff]  }
 0x29e   : > { %v1332_v52 = vpop.f32.mrf.mxu0  ;;  %v1373_v57 = vpop.f32.mrf.mxu1  ;;  %3384 = vmatprep.subr.bf16.mxu0 %v4099_v51 }
 0x29f   : > { %v3261_v58 = vpack.c.bf16 %v1447_v49, %v1446_v47  ;;  %v3266_v59 = vpack.c.bf16 %v1449_v50, %v1448_v48  ;;  %v3829_v47 = vld [vmem:[#allocation9 + $0x30] sm:$0xff]   ;;  %v3830_v50 = vld [vmem:[#allocation9 + $0x78] sm:$0xff]   ;;  %v3831_v52 = vld [vmem:[#allocation9 + $0x28] sm:$0xff]  }
 0x2a0   : > { %v1333_v60 = vpop.f32.mrf.mxu0  ;;  %v1374_v54 = vpop.f32.mrf.mxu1 }
 0x2a1   : > { %3262 = vst [vmem:[#allocation2 + $0x20] sm:$0xff] %v3261_v58   ;;  %3267 = vst [vmem:[#allocation2 + $0x28] sm:$0xff] %v3266_v59   ;;  %3385 = vmatpush3.bf16.msra.mxu0 %v3818_v18  ;;  %v3832_v60 = vld [vmem:[#allocation9 + $0x70] sm:$0xff]   ;;  %v3833_v54 = vld [vmem:[#allocation9 + $0x20] sm:$0xff]  }
 0x2a2   : > { %3386 = vmatprep.subr.bf16.mxu0 %v4099_v51 }
 0x2a5   : > { %3387 = vmatpush3.bf16.msra.mxu0 %v3820_v19 }
 0x2a6   : > { %3388 = vmatprep.subr.bf16.mxu0 %v4099_v51 }
 0x2a8   : > { %v1516_v55 = vld [vmem:[#allocation2 + $0x20] sm:$0xf]  ;;  %v1661_v26 = vld [vmem:[#allocation2 + $0x24] sm:$0xf] }
 0x2a9   : > { %v1575_v53 = vsel %vm1573_vm2, %v1516_v55, 0  ;;  %3389 = vmatpush3.bf16.msra.mxu0 %v3822_v20  ;;  %v1718_v28 = vsel %vm1573_vm2, %v1661_v26, 0 }
 0x2aa   : > { %3363 = vmatpush3.bf16.msra.mxu1 %v1575_v53  ;;  %3390 = vmatprep.subr.bf16.mxu0 %v4099_v51  ;;  %v3834_v53 = vld [vmem:[#allocation9 + $0x68] sm:$0xff]  }
 0x2ab   : > { %3374 = vmatprep.subr.bf16.mxu1 %v4099_v51 }
 0x2ad   : > { %3391 = vmatpush3.bf16.msra.mxu0 %v3824_v21 }
 0x2ae   : > { %3392 = vmatprep.subr.bf16.mxu0 %v4099_v51 }
 0x2b1   : > { %3393 = vmatpush3.bf16.msra.mxu0 %v3826_v40  ;;  %v3853_v40 = vld [vmem:[#allocation8 + $0xb0] sm:$0xff]  }
 0x2b2   : > { %3394 = vmatprep.subr.bf16.mxu0 %v4099_v51 }
 0x2b5   : > { %3395 = vmatpush3.bf16.msra.mxu0 %v3828_v41  ;;  %v3854_v41 = vld [vmem:[#allocation8 + $0xa8] sm:$0xff]  }
 0x2b6   : > { %3420 = vmatprep.subr.bf16.mxu0 %v4099_v51 }
 0x350   : > { %v1551_v56 = vpop.f32.mrf.mxu0 }
 0x351   : > { %v1558_v61 = vsel %vm1557_vm3, %v1551_v56, -inf }
 0x352   : > { %1559 = vmax.xlane.f32.xlu1 %v1558_v61  ;;  %v3360_v62 = vpop.f32.mrf.mxu0  ;;  %v3836_v61 = vld [vmem:[#allocation9 + $0x60] sm:$0xff]  }
 0x353   : > { %v3837_v62 = vld [vmem:[#allocation9 + $0x10] sm:$0xff]  }
 0x354   : > { %v1554_v63 = vpop.f32.mrf.mxu0 }
 0x355   : > { %v3838_v63 = vld [vmem:[#allocation9 + $0x58] sm:$0xff]  }
 0x356   : > { %v3361_v0 = vpop.f32.mrf.mxu0 }
 0x357   : > { %v3839_v0 = vld [vmem:[#allocation9 + $0x8] sm:$0xff]  }
 0x358   : > { %v1696_v1 = vpop.f32.mrf.mxu0 }
 0x359   : > { %v1702_v2 = vsel %vm1557_vm3, %v1696_v1, -inf }
 0x35a   : > { %1703 = vmax.xlane.f32.xlu1 %v1702_v2  ;;  %v3372_v16 = vpop.f32.mrf.mxu0  ;;  %v3841_v2 = vld [vmem:[#allocation9] sm:$0xff]  }
 0x35b   : > { %v3842_v16 = vld [vmem:[#allocation9 + $0x48] sm:$0xff]  }
 0x35c   : > { %v1699_v3 = vpop.f32.mrf.mxu0 }
 0x35d   : > { %v2158_v3 = vld [vmem:[#allocation2 + $0x28] sm:$0xf] }
 0x35e   : > { %v3373_v4 = vpop.f32.mrf.mxu0 }
 0x35f   : > { %v3157_v4 = vld [vmem:[#allocation2 + $0x20] sm:$0xf] }
 0x3db   : > { %v1560_v5 = vpop.xlane.xlu1 %1559 }
 0x3dc   : > { %v1561_v6 = vsub.f32 %v1551_v56, %v1560_v5  ;;  %v3835_v56 = vld [vmem:[#allocation9 + $0x18] sm:$0xff]   ;;  %v2215_v5 = vsel %vm1573_vm2, %v2158_v3, 0 }
 0x3de   : > { %v1562_v7 = vmul.f32 1.442695, %v1561_v6  ;;  %v3843_v6 = vld [vmem:[#allocation9 + $0x40] sm:$0xff]  }
 0x3e0   : > { %3878 = vpow2.f32 %v1562_v7  ;;  %v3176_v7 = vld [vmem:[#allocation2 + $0x24] sm:$0xf] }
 0x3e3   : > { %v1704_v8 = vpop.xlane.xlu1 %1703 }
 0x3e4   : > { %v1705_v9 = vsub.f32 %v1696_v1, %v1704_v8  ;;  %v3840_v1 = vld [vmem:[#allocation9 + $0x50] sm:$0xff]  }
 0x3e5   : > { %v2156_v8 = vld [vmem:[#allocation2 + $0x18] sm:$0xf] }
 0x3e6   : > { %v1706_v10 = vmul.f32 1.442695, %v1705_v9  ;;  %v3193_v9 = vld [vmem:[#allocation2 + $0x8] sm:$0xf] }
 0x3e8   : > { %3880 = vpow2.f32 %v1706_v10 }
 0x3ed   : > { %v3879_v11 = vpop.eup %3878 }
 0x3ee   : > { %v1564_v12 = vsel %vm1557_vm3, %v3879_v11, 0.0 }
 0x3ef   : > { %1565 = vadd.xlane.f32.xlu0 %v1564_v12 }
 0x3f5   : > { %v3881_v13 = vpop.eup %3880 }
 0x3f6   : > { %v1708_v14 = vsel %vm1557_vm3, %v3881_v13, 0.0 }
 0x3f7   : > { %1709 = vadd.xlane.f32.xlu1 %v1708_v14 }
 0x478   : > { %v1566_v22 = vpop.xlane.xlu0 %1565 }
 0x479   : > { %3882 = vrcp.f32 %v1566_v22 }
 0x480   : > { %v1710_v23 = vpop.xlane.xlu1 %1709 }
 0x481   : > { %3884 = vrcp.f32 %v1710_v23 }
 0x486   : > { %v3883_v24 = vpop.eup %3882 }
 0x487   : > { %v1568_v25 = vmul.f32 %v3883_v24, %v3879_v11 }
 0x489   : > { %v1569_v27 = vpack.c.bf16 %v1568_v25, %v1568_v25 }
 0x48b   : > { %3365 = vmatmul.mubr.msk.bf16.vlgmr.msra.gmra.mxu1 %vm1557_vm3, %v1569_v27 }
 0x48c   : > { %3375 = vmatpush3.bf16.msra.mxu1 %v1718_v28  ;;  %3376 = vmatprep.mubr.msk.bf16.mxu1 %vm4100_vm1, %v4099_v51 }
 0x48d   : > { %3400 = vmatprep.subr.bf16.mxu1 %v4099_v51 }
 0x48e   : > { %v3885_v29 = vpop.eup %3884 }
 0x48f   : > { %v1712_v30 = vmul.f32 %v3885_v29, %v3881_v13 }
 0x491   : > { %v1713_v32 = vpack.c.bf16 %v1712_v30, %v1712_v30 }
 0x493   : > { %3377 = vmatmul.mubr.msk.bf16.vlgmr.msra.gmra.mxu1 %vm1557_vm3, %v1713_v32 }
 0x494   : > { %3401 = vmatpush3.bf16.msra.mxu1 %v3812_v31  ;;  %3416 = vmatprep.mubr.msk.bf16.mxu1 %vm4100_vm1, %v4099_v51 }
 0x495   : > { %3402 = vmatprep.subr.bf16.mxu1 %v4099_v51 }
 0x498   : > { %3403 = vmatpush3.bf16.msra.mxu1 %v3813_v33 }
 0x499   : > { %3404 = vmatprep.subr.bf16.mxu1 %v4099_v51 }
 0x49c   : > { %3405 = vmatpush3.bf16.msra.mxu1 %v3815_v34 }
 0x49d   : > { %3406 = vmatprep.subr.bf16.mxu1 %v4099_v51 }
 0x4a0   : > { %3407 = vmatpush3.bf16.msra.mxu1 %v3817_v35 }
 0x4a1   : > { %3408 = vmatprep.subr.bf16.mxu1 %v4099_v51 }
 0x4a4   : > { %3409 = vmatpush3.bf16.msra.mxu1 %v3819_v36 }
 0x4a5   : > { %3410 = vmatprep.subr.bf16.mxu1 %v4099_v51 }
 0x4a8   : > { %3411 = vmatpush3.bf16.msra.mxu1 %v3821_v37 }
 0x4a9   : > { %3412 = vmatprep.subr.bf16.mxu1 %v4099_v51 }
 0x4ac   : > { %3413 = vmatpush3.bf16.msra.mxu1 %v3823_v38 }
 0x4ad   : > { %3414 = vmatprep.subr.bf16.mxu1 %v4099_v51 }
 0x4b0   : > { %3415 = vmatpush3.bf16.msra.mxu1 %v3825_v39  ;;  %v3852_v39 = vld [vmem:[#allocation8 + $0xb8] sm:$0xff]  }
 0x4b1   : > { %3440 = vmatprep.subr.bf16.mxu1 %v4099_v51 }
 0x54b   : > { %v1611_v42 = vpop.f32.mrf.mxu1 }
 0x54c   : > { %v1617_v44 = vpack.c.bf16 %v1611_v42, %v1611_v42  ;;  %v3855_v42 = vld [vmem:[#allocation8 + $0xa0] sm:$0xff]  }
 0x54d   : > { %v3366_v45 = vpop.f32.mrf.mxu1 }
 0x54e   : > { %3417 = vmatmul.mubr.bf16.vlgmr.msra.gmra.mxu1 %v1617_v44  ;;  %v3857_v44 = vld [vmem:[#allocation8 + $0x90] sm:$0xff]   ;;  %v3858_v45 = vld [vmem:[#allocation8 + $0x88] sm:$0xff]  }
 0x54f   : > { %3441 = vmatpush3.bf16.msra.mxu1 %v3827_v43  ;;  %v1614_v46 = vpop.f32.mrf.mxu1  ;;  %3456 = vmatprep.mubr.msk.bf16.mxu1 %vm4100_vm1, %v4099_v51  ;;  %v3856_v43 = vld [vmem:[#allocation8 + $0x98] sm:$0xff]  }
 0x550   : > { %3442 = vmatprep.subr.bf16.mxu1 %v4099_v51  ;;  %v3859_v46 = vld [vmem:[#allocation8 + $0x80] sm:$0xff]  }
 0x551   : > { %v3367_v48 = vpop.f32.mrf.mxu1 }
 0x553   : > { %3443 = vmatpush3.bf16.msra.mxu1 %v3829_v47  ;;  %v1754_v49 = vpop.f32.mrf.mxu1 }
 0x554   : > { %v1760_v57 = vpack.c.bf16 %v1754_v49, %v1754_v49  ;;  %3444 = vmatprep.subr.bf16.mxu1 %v4099_v51 }
 0x555   : > { %v3378_v58 = vpop.f32.mrf.mxu1 }
 0x556   : > { %3397 = vmatmul.mubr.bf16.vlgmr.msra.gmra.mxu0 %v1760_v57  ;;  %v3845_v57 = vld [vmem:[#allocation9 + $0xb0] sm:$0xff]   ;;  %v3846_v58 = vld [vmem:[#allocation9 + $0xa8] sm:$0xff]  }
 0x557   : > { %3421 = vmatpush3.bf16.msra.mxu0 %v3830_v50  ;;  %3445 = vmatpush3.bf16.msra.mxu1 %v3831_v52  ;;  %v1757_v59 = vpop.f32.mrf.mxu1  ;;  %v3844_v50 = vld [vmem:[#allocation9 + $0xb8] sm:$0xff]  }
 0x558   : > { %3422 = vmatprep.subr.bf16.mxu0 %v4099_v51  ;;  %3446 = vmatprep.subr.bf16.mxu1 %v4099_v51  ;;  %v3847_v59 = vld [vmem:[#allocation9 + $0xa0] sm:$0xff]  }
 0x559   : > { %v3379_v55 = vpop.f32.mrf.mxu1  ;;  %3436 = vmatprep.mubr.msk.bf16.mxu0 %vm4100_vm1, %v4099_v51 }
 0x55a   : > { %v3850_v55 = vld [vmem:[#allocation9 + $0x88] sm:$0xff]  }
 0x55b   : > { %3423 = vmatpush3.bf16.msra.mxu0 %v3832_v60  ;;  %3447 = vmatpush3.bf16.msra.mxu1 %v3833_v54  ;;  %v3848_v60 = vld [vmem:[#allocation9 + $0x98] sm:$0xff]   ;;  %v3849_v54 = vld [vmem:[#allocation9 + $0x90] sm:$0xff]  }
 0x55c   : > { %3424 = vmatprep.subr.bf16.mxu0 %v4099_v51  ;;  %3448 = vmatprep.subr.bf16.mxu1 %v4099_v51 }
 0x55f   : > { %3425 = vmatpush3.bf16.msra.mxu0 %v3834_v53  ;;  %3449 = vmatpush3.bf16.msra.mxu1 %v3835_v56  ;;  %v3851_v53 = vld [vmem:[#allocation9 + $0x80] sm:$0xff]  }
 0x560   : > { %3426 = vmatprep.subr.bf16.mxu0 %v4099_v51  ;;  %3450 = vmatprep.subr.bf16.mxu1 %v4099_v51  ;;  %v2481_v56 = vld [vmem:[#allocation2 + $0x2c] sm:$0xf] }
 0x563   : > { %3427 = vmatpush3.bf16.msra.mxu0 %v3836_v61  ;;  %3451 = vmatpush3.bf16.msra.mxu1 %v3837_v62  ;;  %v3203_v61 = vld [vmem:[#allocation2 + $0x28] sm:$0xf]  ;;  %v2538_v62 = vsel %vm1573_vm2, %v2481_v56, 0  ;;  %v3231_v56 = vld [vmem:[%s517_s19] ss:$0 sm:$0xff]  ;;  %s4006_s19 = scalar_lea.vmem %s4005_s16, 256 }
 0x564   : > { %3428 = vmatprep.subr.bf16.mxu0 %v4099_v51  ;;  %3452 = vmatprep.subr.bf16.mxu1 %v4099_v51  ;;  %p4008_p7 = scmp.lt.s32.totalorder %s4006_s19, %s4000_s23 }
 0x566   : > { %p4009_p9 = por %p4008_p7, %p4007_p4 }
 0x567   : > { %3429 = vmatpush3.bf16.msra.mxu0 %v3838_v63  ;;  %3453 = vmatpush3.bf16.msra.mxu1 %v3839_v0 }
 0x568   : > { %3430 = vmatprep.subr.bf16.mxu0 %v4099_v51  ;;  %3454 = vmatprep.subr.bf16.mxu1 %v4099_v51  ;;  %p4010_p13 = pnand %p4009_p9, %p4003_p2 }
 0x56b   : > { %3431 = vmatpush3.bf16.msra.mxu0 %v3840_v1  ;;  %3455 = vmatpush3.bf16.msra.mxu1 %v3841_v2  ;;  %v2479_v2 = vld [vmem:[#allocation2 + $0x1c] sm:$0xf] }
 0x56c   : > { %3432 = vmatprep.subr.bf16.mxu0 %v4099_v51  ;;  %3466 = vmatprep.subr.bf16.mxu1 %v4099_v51 }
 0x56e   : > { %3457 = vmatmul.mubr.bf16.vlgmr.msra.gmra.mxu1 %v3157_v4  ;;  %v3212_v4 = vld [vmem:[#allocation2 + $0xc] sm:$0xf] }
 0x56f   : > { %3433 = vmatpush3.bf16.msra.mxu0 %v3842_v16  ;;  %3467 = vmatpush3.bf16.msra.mxu1 %v2215_v5 }
 0x570   : > { %3434 = vmatprep.subr.bf16.mxu0 %v4099_v51  ;;  %3468 = vmatprep.mubr.msk.bf16.mxu1 %vm4100_vm1, %v4099_v51 }
 0x571   : > { %3492 = vmatprep.subr.bf16.mxu1 %v4099_v51 }
 0x573   : > { %3435 = vmatpush3.bf16.msra.mxu0 %v3843_v6 }
 0x574   : > { %3460 = vmatprep.subr.bf16.mxu0 %v4099_v51 }
 0x576   : > { %3437 = vmatmul.mubr.bf16.vlgmr.msra.gmra.mxu0 %v3176_v7 }
 0x577   : > { %3461 = vmatpush3.bf16.xpose.msra.mxu0 %v2156_v8  ;;  %3462 = vmatprep.mubr.msk.bf16.mxu0 %vm4100_vm1, %v4099_v51 }
 0x578   : > { %3472 = vmatprep.subr.bf16.mxu0 %v4099_v51 }
 0x57e   : > { %3463 = vmatmul.mubr.bf16.vlgmr.msra.gmra.mxu0 %v3193_v9 }
 0x57f   : > { %3488 = vmatprep.mubr.msk.bf16.mxu0 %vm4100_vm1, %v4099_v51  ;;  %3473 = vmatpush3.bf16.msra.mxu0 %v3852_v39  ;;  %v3862_v39 = vld [vmem:[#allocation9 + $0xe8] sm:$0xff]  }
 0x580   : > { %3474 = vmatprep.subr.bf16.mxu0 %v4099_v51 }
 0x583   : > { %3475 = vmatpush3.bf16.msra.mxu0 %v3853_v40  ;;  %v3863_v40 = vld [vmem:[#allocation9 + $0xe0] sm:$0xff]  }
 0x584   : > { %3476 = vmatprep.subr.bf16.mxu0 %v4099_v51 }
 0x587   : > { %3477 = vmatpush3.bf16.msra.mxu0 %v3854_v41  ;;  %v3864_v41 = vld [vmem:[#allocation9 + $0xd8] sm:$0xff]  }
 0x588   : > { %3478 = vmatprep.subr.bf16.mxu0 %v4099_v51 }
 0x58b   : > { %3479 = vmatpush3.bf16.msra.mxu0 %v3855_v42  ;;  %v3865_v42 = vld [vmem:[#allocation9 + $0xd0] sm:$0xff]  }
 0x58c   : > { %3480 = vmatprep.subr.bf16.mxu0 %v4099_v51 }
 0x58f   : > { %3481 = vmatpush3.bf16.msra.mxu0 %v3856_v43  ;;  %v3866_v43 = vld [vmem:[#allocation9 + $0xc8] sm:$0xff]  }
 0x590   : > { %3482 = vmatprep.subr.bf16.mxu0 %v4099_v51 }
 0x593   : > { %3483 = vmatpush3.bf16.msra.mxu0 %v3857_v44  ;;  %v3867_v44 = vld [vmem:[#allocation9 + $0xc0] sm:$0xff]  }
 0x594   : > { %3484 = vmatprep.subr.bf16.mxu0 %v4099_v51 }
 0x597   : > { %3485 = vmatpush3.bf16.msra.mxu0 %v3858_v45  ;;  %v3222_v45 = vld [vmem:[#allocation2 + $0x2c] sm:$0xf] }
 0x598   : > { %3486 = vmatprep.subr.bf16.mxu0 %v4099_v51 }
 0x59b   : > { %3487 = vmatpush3.bf16.msra.mxu0 %v3859_v46  ;;  %v3875_v46 = vld [vmem:[#allocation8 + $0xc0] sm:$0xff]  }
 0x59c   : > { %3512 = vmatprep.subr.bf16.mxu0 %v4099_v51 }
 0x60e   : > { %v1948_v10 = vpop.f32.mrf.mxu1 }
 0x610   : > { %v3418_v11 = vpop.f32.mrf.mxu1 }
 0x612   : > { %v1951_v12 = vpop.f32.mrf.mxu1 }
 0x614   : > { %v3419_v13 = vpop.f32.mrf.mxu1 }
 0x616   : > { %v1860_v14 = vpop.f32.mrf.mxu0 }
 0x617   : > { %v4415_v15 = vadd.f32 %v1948_v10, %v1860_v14 }
 0x618   : > { %v3398_v17 = vpop.f32.mrf.mxu0 }
 0x61a   : > { %v1863_v18 = vpop.f32.mrf.mxu0 }
 0x61c   : > { %v3399_v19 = vpop.f32.mrf.mxu0 }
 0x62e   : > { %v2145_v20 = vpop.f32.mrf.mxu1 }
 0x630   : > { %v3458_v21 = vpop.f32.mrf.mxu1 }
 0x632   : > { %v2148_v22 = vpop.f32.mrf.mxu1 }
 0x634   : > { %v3459_v23 = vpop.f32.mrf.mxu1 }
 0x636   : > { %v2057_v24 = vpop.f32.mrf.mxu0 }
 0x637   : > { %v4417_v25 = vadd.f32 %v2145_v20, %v2057_v24 }
 0x638   : > { %v3438_v26 = vpop.f32.mrf.mxu0 }
 0x63a   : > { %v2060_v27 = vpop.f32.mrf.mxu0 }
 0x63b   : > { %v3869_v27 = vld [vmem:[#allocation8 + $0xf0] sm:$0xff]  }
 0x63c   : > { %v3439_v28 = vpop.f32.mrf.mxu0 }
 0x63d   : > { %v3870_v28 = vld [vmem:[#allocation8 + $0xe8] sm:$0xff]  }
 0x63e   : > { %v2193_v29 = vpop.f32.mrf.mxu0 }
 0x63f   : > { %v2199_v30 = vsel %vm1557_vm3, %v2193_v29, -inf }
 0x640   : > { %2200 = vmax.xlane.f32.xlu0 %v2199_v30  ;;  %v3464_v31 = vpop.f32.mrf.mxu0  ;;  %v3872_v30 = vld [vmem:[#allocation8 + $0xd8] sm:$0xff]  }
 0x641   : > { %v3873_v31 = vld [vmem:[#allocation8 + $0xd0] sm:$0xff]  }
 0x642   : > { %v2196_v32 = vpop.f32.mrf.mxu0 }
 0x643   : > { %v3874_v32 = vld [vmem:[#allocation8 + $0xc8] sm:$0xff]  }
 0x644   : > { %v3465_v33 = vpop.f32.mrf.mxu0 }
 0x6c9   : > { %v2201_v34 = vpop.xlane.xlu0 %2200 }
 0x6ca   : > { %v2202_v35 = vsub.f32 %v2193_v29, %v2201_v34  ;;  %v3871_v29 = vld [vmem:[#allocation8 + $0xe0] sm:$0xff]  }
 0x6cc   : > { %v2203_v36 = vmul.f32 1.442695, %v2202_v35 }
 0x6ce   : > { %3886 = vpow2.f32 %v2203_v36  ;;  %v3860_v36 = vld [vmem:[#allocation9 + $0xf8] sm:$0xff]  }
 0x6db   : > { %v3887_v37 = vpop.eup %3886 }
 0x6dc   : > { %v2205_v38 = vsel %vm1557_vm3, %v3887_v37, 0.0 }
 0x6dd   : > { %2206 = vadd.xlane.f32.xlu1 %v2205_v38  ;;  %v3861_v38 = vld [vmem:[#allocation9 + $0xf0] sm:$0xff]  }
 0x766   : > { %v2207_v47 = vpop.xlane.xlu1 %2206 }
 0x767   : > { %3888 = vrcp.f32 %v2207_v47  ;;  %v2814_v47 = vld [vmem:[%s511_s11] sm:$0xff] }
 0x774   : > { %v3889_v48 = vpop.eup %3888 }
 0x775   : > { %v2209_v49 = vmul.f32 %v3889_v48, %v3887_v37 }
 0x777   : > { %v2210_v52 = vpack.c.bf16 %v2209_v49, %v2209_v49 }
 0x779   : > { %3469 = vmatmul.mubr.msk.bf16.vlgmr.msra.gmra.mxu1 %vm1557_vm3, %v2210_v52 }
 0x77a   : > { %3493 = vmatpush3.bf16.msra.mxu1 %v3844_v50  ;;  %3508 = vmatprep.mubr.msk.bf16.mxu1 %vm4100_vm1, %v4099_v51 }
 0x77b   : > { %3494 = vmatprep.subr.bf16.mxu1 %v4099_v51 }
 0x77e   : > { %3495 = vmatpush3.bf16.msra.mxu1 %v3845_v57 }
 0x77f   : > { %3496 = vmatprep.subr.bf16.mxu1 %v4099_v51 }
 0x782   : > { %3497 = vmatpush3.bf16.msra.mxu1 %v3846_v58 }
 0x783   : > { %3498 = vmatprep.subr.bf16.mxu1 %v4099_v51 }
 0x786   : > { %3499 = vmatpush3.bf16.msra.mxu1 %v3847_v59 }
 0x787   : > { %3500 = vmatprep.subr.bf16.mxu1 %v4099_v51 }
 0x78a   : > { %3501 = vmatpush3.bf16.msra.mxu1 %v3848_v60 }
 0x78b   : > { %3502 = vmatprep.subr.bf16.mxu1 %v4099_v51 }
 0x78e   : > { %3503 = vmatpush3.bf16.msra.mxu1 %v3849_v54 }
 0x78f   : > { %3504 = vmatprep.subr.bf16.mxu1 %v4099_v51 }
 0x792   : > { %3505 = vmatpush3.bf16.msra.mxu1 %v3850_v55  ;;  %v3232_v55 = vld [vmem:[%s520_s7] ss:$0 sm:$0xff]  ;;  %s2834_s7 = scalar_lea.sflag [#allocation5], %s4285_s29 }
 0x793   : > { %3506 = vmatprep.subr.bf16.mxu1 %v4099_v51 }
 0x796   : > { %3507 = vmatpush3.bf16.msra.mxu1 %v3851_v53 }
 0x797   : > { %3518 = vmatprep.subr.bf16.mxu1 %v4099_v51 }
 0x799   : > { %3509 = vmatmul.mubr.bf16.vlgmr.msra.gmra.mxu1 %v3203_v61 }
 0x79a   : > { %3519 = vmatpush3.bf16.msra.mxu1 %v2538_v62  ;;  %3520 = vmatprep.mubr.msk.bf16.mxu1 %vm4100_vm1, %v4099_v51 }
 0x79b   : > { %3544 = vmatprep.subr.bf16.mxu1 %v4099_v51 }
 0x839   : > { %v2251_v63 = vpop.f32.mrf.mxu1 }
 0x83a   : > { %v2257_v0 = vpack.c.bf16 %v2251_v63, %v2251_v63 }
 0x83b   : > { %v3470_v1 = vpop.f32.mrf.mxu1 }
 0x83c   : > { %3489 = vmatmul.mubr.bf16.vlgmr.msra.gmra.mxu0 %v2257_v0 }
 0x83d   : > { %3513 = vmatpush3.bf16.xpose.msra.mxu0 %v2479_v2  ;;  %v2254_v16 = vpop.f32.mrf.mxu1  ;;  %3514 = vmatprep.mubr.msk.bf16.mxu0 %vm4100_vm1, %v4099_v51 }
 0x83e   : > { %3524 = vmatprep.subr.bf16.mxu0 %v4099_v51 }
 0x83f   : > { %v3471_v3 = vpop.f32.mrf.mxu1 }
 0x840   : > { %v3233_v3 = vld [vmem:[%s4547_s9] ss:$0 sm:$0xff] }
 0x844   : > { %3515 = vmatmul.mubr.bf16.vlgmr.msra.gmra.mxu0 %v3212_v4 }
 0x845   : > { %3540 = vmatprep.mubr.msk.bf16.mxu0 %vm4100_vm1, %v4099_v51 }
 0x859   : > { %v2467_v5 = vpop.f32.mrf.mxu1 }
 0x85a   : > { %v4450_v6 = vadd.f32 %v2467_v5, %v4417_v25 }
 0x85b   : > { %v3510_v7 = vpop.f32.mrf.mxu1 }
 0x85d   : > { %v2470_v8 = vpop.f32.mrf.mxu1 }
 0x85f   : > { %v3511_v9 = vpop.f32.mrf.mxu1 }
 0x8fc   : > { %v2357_v10 = vpop.f32.mrf.mxu0 }
 0x8fd   : > { %v4453_v11 = vadd.f32 %v2357_v10, %v4415_v15  ;;  %v3868_v15 = vld [vmem:[#allocation8 + $0xf8] sm:$0xff]  }
 0x8fe   : > { %v3490_v12 = vpop.f32.mrf.mxu0  ;;  %3525 = vmatpush3.bf16.msra.mxu0 %v3868_v15 }
 0x8ff   : > { %3526 = vmatprep.subr.bf16.mxu0 %v4099_v51 }
 0x900   : > { %v2360_v13 = vpop.f32.mrf.mxu0 }
 0x902   : > { %v3491_v14 = vpop.f32.mrf.mxu0  ;;  %3527 = vmatpush3.bf16.msra.mxu0 %v3869_v27 }
 0x903   : > { %3528 = vmatprep.subr.bf16.mxu0 %v4099_v51 }
 0x904   : > { %v2516_v17 = vpop.f32.mrf.mxu0 }
 0x905   : > { %v2522_v18 = vsel %vm1557_vm3, %v2516_v17, -inf }
 0x906   : > { %2523 = vmax.xlane.f32.xlu0 %v2522_v18  ;;  %v3516_v19 = vpop.f32.mrf.mxu0  ;;  %3529 = vmatpush3.bf16.msra.mxu0 %v3870_v28 }
 0x907   : > { %3530 = vmatprep.subr.bf16.mxu0 %v4099_v51 }
 0x908   : > { %v2519_v20 = vpop.f32.mrf.mxu0 }
 0x90a   : > { %v3517_v21 = vpop.f32.mrf.mxu0  ;;  %3531 = vmatpush3.bf16.msra.mxu0 %v3871_v29 }
 0x90b   : > { %3532 = vmatprep.subr.bf16.mxu0 %v4099_v51 }
 0x90e   : > { %3533 = vmatpush3.bf16.msra.mxu0 %v3872_v30 }
 0x90f   : > { %3534 = vmatprep.subr.bf16.mxu0 %v4099_v51 }
 0x912   : > { %3535 = vmatpush3.bf16.msra.mxu0 %v3873_v31 }
 0x913   : > { %3536 = vmatprep.subr.bf16.mxu0 %v4099_v51 }
 0x916   : > { %3537 = vmatpush3.bf16.msra.mxu0 %v3874_v32 }
 0x917   : > { %3538 = vmatprep.subr.bf16.mxu0 %v4099_v51 }
 0x91a   : > { %3539 = vmatpush3.bf16.msra.mxu0 %v3875_v46 }
 0x91c   : > { %2817 = vperm.xlu0 %3667, %v2814_v47  }
 0x98f   : > { %v2524_v22 = vpop.xlane.xlu0 %2523 }
 0x990   : > { %v2525_v23 = vsub.f32 %v2516_v17, %v2524_v22 }
 0x992   : > { %v2526_v24 = vmul.f32 1.442695, %v2525_v23 }
 0x994   : > { %3890 = vpow2.f32 %v2526_v24 }
 0x997   : > { %v2818_v2 = vpop.permute.xlu0 %2817 }
 0x9a1   : > { %v3891_v25 = vpop.eup %3890 }
 0x9a2   : > { %v2528_v26 = vsel %vm1557_vm3, %v3891_v25, 0.0 }
 0x9a3   : > { %2529 = vadd.xlane.f32.xlu1 %v2528_v26 }
 0xa2c   : > { %v2530_v33 = vpop.xlane.xlu1 %2529 }
 0xa2d   : > { %3892 = vrcp.f32 %v2530_v33 }
 0xa3a   : > { %v3893_v34 = vpop.eup %3892 }
 0xa3b   : > { %v2532_v35 = vmul.f32 %v3893_v34, %v3891_v25 }
 0xa3d   : > { %v2533_v37 = vpack.c.bf16 %v2532_v35, %v2532_v35 }
 0xa3f   : > { %3521 = vmatmul.mubr.msk.bf16.vlgmr.msra.gmra.mxu1 %vm1557_vm3, %v2533_v37 }
 0xa40   : > { %3545 = vmatpush3.bf16.msra.mxu1 %v3860_v36  ;;  %3560 = vmatprep.mubr.msk.bf16.mxu1 %vm4100_vm1, %v4099_v51 }
 0xa41   : > { %3546 = vmatprep.subr.bf16.mxu1 %v4099_v51 }
 0xa44   : > { %3547 = vmatpush3.bf16.msra.mxu1 %v3861_v38 }
 0xa45   : > { %3548 = vmatprep.subr.bf16.mxu1 %v4099_v51 }
 0xa48   : > { %3549 = vmatpush3.bf16.msra.mxu1 %v3862_v39 }
 0xa49   : > { %3550 = vmatprep.subr.bf16.mxu1 %v4099_v51 }
 0xa4c   : > { %3551 = vmatpush3.bf16.msra.mxu1 %v3863_v40 }
 0xa4d   : > { %3552 = vmatprep.subr.bf16.mxu1 %v4099_v51 }
 0xa50   : > { %3553 = vmatpush3.bf16.msra.mxu1 %v3864_v41 }
 0xa51   : > { %3554 = vmatprep.subr.bf16.mxu1 %v4099_v51 }
 0xa54   : > { %3555 = vmatpush3.bf16.msra.mxu1 %v3865_v42 }
 0xa55   : > { %3556 = vmatprep.subr.bf16.mxu1 %v4099_v51 }
 0xa58   : > { %3557 = vmatpush3.bf16.msra.mxu1 %v3866_v43 }
 0xa59   : > { %3558 = vmatprep.subr.bf16.mxu1 %v4099_v51 }
 0xa5c   : > { %3559 = vmatpush3.bf16.msra.mxu1 %v3867_v44 }
 0xa5f   : > { %3561 = vmatmul.mubr.bf16.vlgmr.msra.gmra.mxu1 %v3222_v45 }
 0xaff   : > { %v2574_v48 = vpop.f32.mrf.mxu1 }
 0xb00   : > { %v2580_v49 = vpack.c.bf16 %v2574_v48, %v2574_v48 }
 0xb01   : > { %v3522_v50 = vpop.f32.mrf.mxu1 }
 0xb02   : > { %3541 = vmatmul.mubr.bf16.vlgmr.msra.gmra.mxu0 %v2580_v49 }
 0xb03   : > { %v2577_v52 = vpop.f32.mrf.mxu1 }
 0xb05   : > { %v3523_v51 = vpop.f32.mrf.mxu1 }
 0xb1f   : > { %v2790_v57 = vpop.f32.mrf.mxu1 }
 0xb20   : > { %v2796_v58 = vadd.f32 %v2790_v57, %v4450_v6 }
 0xb21   : > { %v3562_v59 = vpop.f32.mrf.mxu1 }
 0xb22   : > { %v2812_v63 = vmul.f32 %v3232_v55, %v2796_v58 }
 0xb23   : > { %v2793_v60 = vpop.f32.mrf.mxu1 }
 0xb25   : > { %v3563_v54 = vpop.f32.mrf.mxu1 }
 0xbc2   : > { %v2680_v53 = vpop.f32.mrf.mxu0 }
 0xbc3   : > { %v2686_v61 = vadd.f32 %v2680_v53, %v4453_v11 }
 0xbc4   : > { %v3542_v62 = vpop.f32.mrf.mxu0 }
 0xbc5   : > { %v2804_v0 = vmul.f32 %v3231_v56, %v2686_v61 }
 0xbc6   : > { %v2683_v1 = vpop.f32.mrf.mxu0 }
 0xbc7   : > { %v2813_v16 = vadd.f32 %v2812_v63, %v2804_v0 }
 0xbc8   : > { %v3543_v4 = vpop.f32.mrf.mxu0 }
 0xbc9   : > { %v2820_v5 = vadd.f32 %v2818_v2, %v2813_v16 }
 0xbcb   : > { %v2828_v6 = vadd.f32 %v3233_v3, %v2820_v5 }
 0xbcd   : > { %vm2829_vm4 = vcmp.ge.f32.partialorder %v2828_v6, 0.0  ;;  %v2830_v7 = vmul.f32 0.2, %v2828_v6 }
 0xbcf   : > { %v2831_v8 = vsel %vm2829_vm4, %v2828_v6, %v2830_v7 }
 0xbd0   : > { %2832 = vst [vmem:[%s500_s21] sm:$0xff] %v2831_v8 }
 0xbd1   : > { %4013 = shalt.err (!%p4010_p13)
}
 0xbd2   : > { %s4014_s20 = scalar_lea.hbm %s4496_s22, 128  ;;  %s4018_s13 = scalar_lea.hbm %s4572_s26, 256 }
 0xbd3   : > { %p4015_p12 = scmp.ne.s32.totalorder %s4496_s22, %s4014_s20  ;;  %p4019_p10 = scmp.lt.s32.totalorder %s4496_s22, %s4572_s26 }
 0xbd4   : > { %p4020_p3 = scmp.lt.s32.totalorder %s4018_s13, %s4014_s20 }
 0xbd5   : > { %p4016_p0 = pnand %p4015_p12, %p4259_p6 }
 0xbd6   : > { %p4021_p8 = por %p4020_p3, %p4019_p10 }
 0xbd7   : > { %p4017_p5 = pneg %p4016_p0 }
 0xbd9   : > { %p4022_p1 = pnand %p4021_p8, %p4017_p5 }
 0xbdb   : > { %4025 = shalt.err (!%p4022_p1)
}
 0xbdc   : > { %3581 = dma.vmem_to_hbm [thread:$0]  (%p4259_p6), %s2849_s27, 128, %s4496_s22, %s2834_s7  }
 0xbdd PF: > { %s4573_s12 = sld [smem:[#allocation16_spill]]  ;;  %p4576_p2 = scmp.ge.s32.totalorder %s4088_s18, 2 }
 0xbde   : > { %s4574_s11 = sld [smem:[#allocation17_spill]] }
 0xbe3   : > { %s2860_s23 = sand.u32 1, %s4573_s12  }
 0xbe4   : > { %p4575_p11 = scmp.ne.s32.totalorder %s4574_s11, 0  ;;  %s2861_s25 = scalar_lea.sflag [#allocation5], %s2860_s23 }
 0xbe6   : > { %p3598_p4 = pnand %p4576_p2, %p4575_p11 }
 0xbe8   : > { %p3599_p7 = pneg %p3598_p4 }
 0xbea   : > { %4063 = dma.done.wait (%p3599_p7), %s2861_s25, 128  }
 0xbeb   : > { %4065 = vsyncadd (%p3599_p7), %s2861_s25, 4294967168  ;;  %s28_s18 = sadd.s32 1, %s4088_s18   ;;  %s4577_s13 = smov %s4072_s14 }
 0xbec   : > { %p25_p9 = scmp.ge.s32.totalorder %s28_s18, 4   ;;  %s4578_s14 = smov %s4076_s15 }
 0xbed   : > { %s4579_s15 = smov %s4268_s24  ;;  %s4580_s16 = smov %s4084_s17 }
 0xbee   : > { %s4581_s17 = smov %s4583_s10  ;;  %27 = sbr.rel (!%p25_p9) target bundleno = 12 (0xc), region = 169 }
 0xbf3   :  { %2866 = vsyncpa [#allocation4], 1 }
 0xbf4   :  { %2868 = vsyncpa [#allocation4 + $0x1], 1 }
 0xbf5   :  { %2869 = vsyncpa [#allocation7], 1 }
 0xbf6   :  { %2870 = vsyncpa [#allocation10], 1 }
 0xbf7   :  { %2871 = vsyncpa [#allocation5], 1 }
 0xbf8   :  { %2873 = vsyncpa [#allocation5 + $0x1], 1 }

</bundles_post_ra>
